<compile_context>
chip_gen: v7x
topology: tpu7x:2x2x1
jax: 0.10.0
libtpu: 0.0.40
codegen_flags: <defaults>
</compile_context>

<pallas_src>
import jax
import jax.numpy as jnp
from jax import lax
from jax.experimental import pallas as pl
from jax.experimental.pallas import tpu as pltpu


# ---------------------------------------------------------------------------
# Wrapper-side layout plumbing (pure reshuffles on a tiny image, no heavy math)
# ---------------------------------------------------------------------------
def _space_to_depth(x):
    """(B, H, W, C) -> (B, H//2, W//2, 4*C); channel packing order (p, q, c)."""
    B, H, W, C = x.shape
    x = x.reshape(B, H // 2, 2, W // 2, 2, C)
    x = x.transpose(0, 1, 3, 2, 4, 5)
    return x.reshape(B, H // 2, W // 2, 4 * C)


def _s2d_conv_weights(w):
    """Remap a 3x3 / stride-2 / pad-1 conv weight (3,3,C,O) into the equivalent
    2x2 stride-1 conv over the space-to-depth input (padded one row/col at
    top/left).  Returns (4, 4*C, O) with tap index = a_off*2 + b_off."""
    KH, KW, C, O = w.shape
    assert KH == 3 and KW == 3
    # original tap offset d -> (s2d tap offset, parity):  0->(0,1) 1->(1,0) 2->(1,1)
    amap = {0: (0, 1), 1: (1, 0), 2: (1, 1)}
    out = jnp.zeros((2, 2, 4 * C, O), w.dtype)
    for di in range(3):
        a, p = amap[di]
        for dj in range(3):
            b, q = amap[dj]
            c0 = (p * 2 + q) * C
            out = out.at[a, b, c0:c0 + C, :].set(w[di, dj])
    return out.reshape(4, 4 * C, O)


# ---------------------------------------------------------------------------
# Fused Pallas kernel: stage1 -> (in-VMEM s2d) -> stage2 -> neck -> head
# ---------------------------------------------------------------------------
def _detector_kernel(x1_ref, w1_ref, b1_ref, w2_ref, b2_ref, wn_ref, bn_ref,
                     wh1_ref, bh1_ref, wh2_ref, bh2_ref, o_ref,
                     s2d_ref, pad_ref):
    """One image per grid step.

    x1_ref : (4*H2*W2, 48) bf16   stage-1 im2col'd s2d input, parity-major rows
    w1_ref : (48, C) bf16         K-concatenated stage-1 weights (norm folded)
    w2_ref : (4, 4*C, C) bf16     stage-2 s2d weights
    wn_ref : (C, C) bf16          neck 1x1
    wh1_ref: (9, C, C) bf16       head 3x3
    wh2_ref: (C, NCP) bf16        head 1x1, classes zero-padded to NCP lanes
    biases : (1, C)/(1, NCP) f32
    o_ref  : (H2, W2, NCP) f32    lane-dense padded logits
    s2d_ref: (H2+1, W2+1, 4*C) bf16  stage-1 features in s2d layout (+halo)
    pad_ref: (H2+2, W2+2, C) bf16    neck features zero-padded for head 3x3
    """
    H2, W2, NCP = o_ref.shape
    C = wn_ref.shape[0]
    C4 = 4 * C
    M2 = H2 * W2

    # Zero ONLY the 1-element halos of the persistent scratches (interiors are
    # fully overwritten below).  Done every step so it stays correct when the
    # batch axis is sharded across TensorCores ("parallel").
    s2d_ref[0:1, :, :] = jnp.zeros((1, W2 + 1, C4), s2d_ref.dtype)
    s2d_ref[:, 0:1, :] = jnp.zeros((H2 + 1, 1, C4), s2d_ref.dtype)
    pad_ref[0:1, :, :] = jnp.zeros((1, W2 + 2, C), pad_ref.dtype)
    pad_ref[H2 + 1:H2 + 2, :, :] = jnp.zeros((1, W2 + 2, C), pad_ref.dtype)
    pad_ref[:, 0:1, :] = jnp.zeros((H2 + 2, 1, C), pad_ref.dtype)
    pad_ref[:, W2 + 1:W2 + 2, :] = jnp.zeros((H2 + 2, 1, C), pad_ref.dtype)

    # --- backbone stage 1: one (4*M2, 48) x (48, C) matmul ------------------
    f1 = jnp.dot(x1_ref[...], w1_ref[...], preferred_element_type=jnp.float32)
    f1 = jnp.maximum(f1 + b1_ref[...], 0.0).astype(jnp.bfloat16)

    # rows are parity-major -> each 64-row slab is one (p,q) plane of the
    # space-to-depth layout stage 2 consumes; write into the scratch interior.
    for pq in range(4):
        s2d_ref[1:, 1:, pq * C:(pq + 1) * C] = (
            f1[pq * M2:(pq + 1) * M2, :].reshape(H2, W2, C))

    # --- backbone stage 2: 3x3 stride-2 conv == 2x2 conv over s2d features ---
    acc = jnp.zeros((M2, C), jnp.float32)
    for a in range(2):
        for b in range(2):
            xs = s2d_ref[a:a + H2, b:b + W2, :].reshape(M2, C4)
            acc += jnp.dot(xs, w2_ref[a * 2 + b],
                           preferred_element_type=jnp.float32)
    f2 = jnp.maximum(acc + b2_ref[...], 0.0).astype(jnp.bfloat16)

    # --- neck: 1x1 conv + ReLU ----------------------------------------------
    n = jnp.dot(f2, wn_ref[...], preferred_element_type=jnp.float32) + bn_ref[...]
    n = jnp.maximum(n, 0.0).astype(jnp.bfloat16)
    pad_ref[1:H2 + 1, 1:W2 + 1, :] = n.reshape(H2, W2, C)

    # --- head conv 1: 3x3 pad-1 conv + ReLU ----------------------------------
    acc2 = jnp.zeros((M2, C), jnp.float32)
    for di in range(3):
        for dj in range(3):
            xs = pad_ref[di:di + H2, dj:dj + W2, :].reshape(M2, C)
            acc2 += jnp.dot(xs, wh1_ref[di * 3 + dj],
                            preferred_element_type=jnp.float32)
    h = jnp.maximum(acc2 + bh1_ref[...], 0.0).astype(jnp.bfloat16)

    # --- head conv 2: 1x1 -> class-heatmap logits (lane-dense padded store) --
    logits = jnp.dot(h, wh2_ref[...],
                     preferred_element_type=jnp.float32) + bh2_ref[...]
    o_ref[...] = logits.reshape(H2, W2, NCP)


_COMPILER_PARAMS = pltpu.CompilerParams(
    dimension_semantics=("parallel",),        # batch axis -> both TCs
    vmem_limit_bytes=48 * 1024 * 1024,
)


def _detector_call(x1, w1, b1, w2, b2, wn, bn, wh1, bh1, wh2, bh2, H2, W2):
    B, M1, K1 = x1.shape
    C = wn.shape[0]
    ncp = wh2.shape[-1]
    M2 = H2 * W2
    flops = 2 * B * (M1 * K1 * C
                     + M2 * (16 * C * C + C * C + 9 * C * C + C * ncp))
    bytes_accessed = (x1.size * 2 + B * M2 * ncp * 4
                      + (w1.size + w2.size + wn.size + wh1.size + wh2.size) * 2
                      + (b1.size + b2.size + bn.size + bh1.size + bh2.size) * 4)
    return pl.pallas_call(
        _detector_kernel,
        out_shape=jax.ShapeDtypeStruct((B, H2, W2, ncp), jnp.float32),
        grid=(B,),
        in_specs=[
            pl.BlockSpec((None, M1, K1), lambda i: (i, 0, 0)),
            pl.BlockSpec(w1.shape, lambda i: (0, 0)),     # weights/biases use
            pl.BlockSpec(b1.shape, lambda i: (0, 0)),     # constant index maps
            pl.BlockSpec(w2.shape, lambda i: (0, 0, 0)),  # -> VMEM resident
            pl.BlockSpec(b2.shape, lambda i: (0, 0)),
            pl.BlockSpec(wn.shape, lambda i: (0, 0)),
            pl.BlockSpec(bn.shape, lambda i: (0, 0)),
            pl.BlockSpec(wh1.shape, lambda i: (0, 0, 0)),
            pl.BlockSpec(bh1.shape, lambda i: (0, 0)),
            pl.BlockSpec(wh2.shape, lambda i: (0, 0)),
            pl.BlockSpec(bh2.shape, lambda i: (0, 0)),
        ],
        out_specs=pl.BlockSpec((None, H2, W2, ncp), lambda i: (i, 0, 0, 0)),
        scratch_shapes=[
            pltpu.VMEM((H2 + 1, W2 + 1, 4 * C), jnp.bfloat16),  # s2d features
            pltpu.VMEM((H2 + 2, W2 + 2, C), jnp.bfloat16),      # head 3x3 pad
        ],
        compiler_params=_COMPILER_PARAMS,
        cost_estimate=pl.CostEstimate(flops=int(flops), transcendentals=0,
                                      bytes_accessed=int(bytes_accessed)),
    )(x1, w1, b1, w2, b2, wn, bn, wh1, bh1, wh2, bh2)


# ---------------------------------------------------------------------------
# Synthetic OneStageDetector (inference path)
# ---------------------------------------------------------------------------
class OneStageDetectorPallas:
    def __init__(self, num_classes=16, base_ch=128,
                 pixel_mean=(103.53, 116.28, 123.675),
                 pixel_std=(57.375, 57.12, 58.395)):
        self.num_classes = num_classes
        self.base_ch = base_ch
        self.pixel_mean = jnp.asarray(pixel_mean, jnp.float32)
        self.pixel_std = jnp.asarray(pixel_std, jnp.float32)
        self.size_divisibility = 32   # mirrors backbone._size_divisibility = 32

        def init(key, shape, fan_in):
            return (jax.random.normal(key, shape, jnp.float32)
                    * (1.0 / jnp.sqrt(jnp.float32(fan_in))))

        keys = jax.random.split(jax.random.PRNGKey(42), 10)
        C_in, bc = 3, base_ch
        # backbone: two 3x3 stride-2 convs + ReLU
        self.bb_w1 = init(keys[0], (3, 3, C_in, bc), 9 * C_in)
        self.bb_b1 = 0.05 * jax.random.normal(keys[5], (bc,), jnp.float32)
        self.bb_w2 = init(keys[1], (3, 3, bc, bc), 9 * bc)
        self.bb_b2 = 0.05 * jax.random.normal(keys[6], (bc,), jnp.float32)
        # neck: 1x1 conv + ReLU
        self.nk_w = init(keys[2], (1, 1, bc, bc), bc)
        self.nk_b = 0.05 * jax.random.normal(keys[7], (bc,), jnp.float32)
        # heads: 3x3 conv + ReLU, then 1x1 conv -> class-heatmap logits
        self.hd_w1 = init(keys[3], (3, 3, bc, bc), 9 * bc)
        self.hd_b1 = 0.05 * jax.random.normal(keys[8], (bc,), jnp.float32)
        self.hd_w2 = init(keys[4], (1, 1, bc, num_classes), bc)
        self.hd_b2 = 0.05 * jax.random.normal(keys[9], (num_classes,), jnp.float32)

        # ---- fold preprocess_image ((x - mean)/std) into conv1 -------------
        inv_std = 1.0 / self.pixel_std
        w1f = self.bb_w1 * inv_std[None, None, :, None]
        b1f = self.bb_b1 - jnp.einsum('ijco,c->o', self.bb_w1,
                                      self.pixel_mean * inv_std)

        # ---- pre-pack weights (bf16 MXU operands, f32 biases) --------------
        # stage 1: K-concat the 4 s2d taps -> one (48, bc) weight
        self.w1 = _s2d_conv_weights(w1f).reshape(4 * 4 * C_in, bc).astype(jnp.bfloat16)
        self.b1 = b1f.reshape(1, bc).astype(jnp.float32)
        self.w2 = _s2d_conv_weights(self.bb_w2).astype(jnp.bfloat16)   # (4, 4bc, bc)
        self.b2 = self.bb_b2.reshape(1, bc).astype(jnp.float32)
        self.wn = self.nk_w.reshape(bc, bc).astype(jnp.bfloat16)
        self.bn = self.nk_b.reshape(1, bc).astype(jnp.float32)
        self.wh1 = self.hd_w1.reshape(9, bc, bc).astype(jnp.bfloat16)
        self.bh1 = self.hd_b1.reshape(1, bc).astype(jnp.float32)
        # pad classes up to a lane-dense multiple of 128 for the final store
        ncp = ((num_classes + 127) // 128) * 128
        self.ncp = ncp
        wh2p = jnp.zeros((bc, ncp), jnp.float32).at[:, :num_classes].set(
            self.hd_w2.reshape(bc, num_classes))
        bh2p = jnp.zeros((ncp,), jnp.float32).at[:num_classes].set(self.hd_b2)
        self.wh2p = wh2p.astype(jnp.bfloat16)
        self.bh2p = bh2p.reshape(1, ncp).astype(jnp.float32)

    def inference(self, images_nchw):
        B, C, H, W = images_nchw.shape
        assert C == 3 and H % 4 == 0 and W % 4 == 0   # two stride-2 stages
        H1, W1 = H // 2, W // 2
        H2, W2 = H // 4, W // 4

        # Layout plumbing (XLA, tiny): NCHW -> NHWC, space-to-depth, halo pad
        # with the raw-space pixel mean (== zero pad of the *normalized* image,
        # keeping the folded normalization exact at the borders), 2x2 im2col
        # (K-concat of the 4 taps), and parity-major output-row ordering so the
        # stage-1 results land directly in the s2d layout stage 2 consumes.
        x = jnp.transpose(images_nchw, (0, 2, 3, 1)).astype(jnp.float32)
        y1 = _space_to_depth(x)                                    # (B,H1,W1,12)
        mean12 = jnp.tile(self.pixel_mean, 4)                      # (12,)
        top = jnp.broadcast_to(mean12, (B, 1, W1, 4 * C))
        y1 = jnp.concatenate([top, y1], axis=1)
        left = jnp.broadcast_to(mean12, (B, H1 + 1, 1, 4 * C))
        y1 = jnp.concatenate([left, y1], axis=2)                   # (B,H1+1,W1+1,12)
        x1 = jnp.concatenate(
            [y1[:, a:a + H1, b:b + W1, :] for a in (0, 1) for b in (0, 1)],
            axis=-1)                                               # (B,H1,W1,48)
        x1 = x1.reshape(B, H2, 2, W2, 2, 16 * C).transpose(0, 2, 4, 1, 3, 5)
        x1 = x1.reshape(B, 4 * H2 * W2, 16 * C).astype(jnp.bfloat16)

        # ONE fused Pallas call: stage1 + stage2 + neck + head -> padded logits
        logits = _detector_call(x1, self.w1, self.b1, self.w2, self.b2,
                                self.wn, self.bn, self.wh1, self.bh1,
                                self.wh2p, self.bh2p, H2, W2)
        logits = logits[..., :self.num_classes]
        return jnp.transpose(logits, (0, 3, 1, 2))                 # NCHW

    # TODO(synk): training-mode loss path (heads(features, gt_scene_graph)) and
    # _postprocess (raises NotImplementedError in the spec) have no clean
    # Pallas equivalent here; inference path only.
    def forward(self, images_nchw):
        return self.inference(images_nchw)


# ---------------------------------------------------------------------------
# Pure-JAX reference (spec semantics: explicit normalize + plain f32 convs)
# ---------------------------------------------------------------------------
def _reference_forward(model, images_nchw):
    x = jnp.transpose(images_nchw, (0, 2, 3, 1)).astype(jnp.float32)
    x = (x - model.pixel_mean) / model.pixel_std

    def conv(h, w, b, stride, pad, relu):
        o = lax.conv_general_dilated(
            h, w, (stride, stride), [(pad, pad), (pad, pad)],
            dimension_numbers=("NHWC", "HWIO", "NHWC"))
        o = o + b
        return jnp.maximum(o, 0.0) if relu else o

    h = conv(x, model.bb_w1, model.bb_b1, 2, 1, True)
    h = conv(h, model.bb_w2, model.bb_b2, 2, 1, True)
    h = conv(h, model.nk_w, model.nk_b, 1, 0, True)
    h = conv(h, model.hd_w1, model.hd_b1, 1, 1, True)
    h = conv(h, model.hd_w2, model.hd_b2, 1, 0, False)
    return jnp.transpose(h, (0, 3, 1, 2))


if __name__ == "__main__":
    B, C, H, W = 2, 3, 32, 32   # H, W multiples of size_divisibility = 32
    key = jax.random.PRNGKey(0)
    x = jax.random.uniform(key, (B, C, H, W), jnp.float32, 0.0, 255.0)

    model = OneStageDetectorPallas(num_classes=16, base_ch=128)
    out = jax.block_until_ready(jax.jit(model.forward)(x))

    assert out.shape == (B, 16, H // 4, W // 4)
    assert bool(jnp.all(jnp.isfinite(out)))

    # correctness vs. f32 reference (bf16 MXU operands -> bf16-level tolerance)
    ref = _reference_forward(model, x)
    rel_err = jnp.max(jnp.abs(out - ref)) / (jnp.max(jnp.abs(ref)) + 1e-6)
    assert float(rel_err) < 0.08, f"mismatch vs reference: {float(rel_err)}"

    print("KERNEL_OK")
</pallas_src>

<mosaic_0001>
module attributes {stable_mosaic.version = 11 : i64} {
  func.func @_detector_kernel(%arg0: i32, %arg1: memref<1x256x48xbf16, #tpu.memory_space<vmem>>, %arg2: memref<48x128xbf16, #tpu.memory_space<vmem>>, %arg3: memref<1x128xf32, #tpu.memory_space<vmem>>, %arg4: memref<4x512x128xbf16, #tpu.memory_space<vmem>>, %arg5: memref<1x128xf32, #tpu.memory_space<vmem>>, %arg6: memref<128x128xbf16, #tpu.memory_space<vmem>>, %arg7: memref<1x128xf32, #tpu.memory_space<vmem>>, %arg8: memref<9x128x128xbf16, #tpu.memory_space<vmem>>, %arg9: memref<1x128xf32, #tpu.memory_space<vmem>>, %arg10: memref<128x128xbf16, #tpu.memory_space<vmem>>, %arg11: memref<1x128xf32, #tpu.memory_space<vmem>>, %arg12: memref<1x8x8x128xf32, #tpu.memory_space<vmem>>, %arg13: memref<9x9x512xbf16, #tpu.memory_space<vmem>>, %arg14: memref<10x10x128xbf16, #tpu.memory_space<vmem>>) attributes {dimension_semantics = [#tpu.dimension_semantics<parallel>], iteration_bounds = array<i64: 2>, scalar_prefetch = 0 : i64, scratch_operands = 2 : i64, tpu.core_type = #tpu.core_type<tc>, window_params = [{transform_indices = @transform_0, window_bounds = array<i64: 1, 256, 48>}, {pipeline_mode = #tpu.pipeline_mode<synchronous>, transform_indices = @transform_1, window_bounds = array<i64: 48, 128>}, {pipeline_mode = #tpu.pipeline_mode<synchronous>, transform_indices = @transform_2, window_bounds = array<i64: 1, 128>}, {pipeline_mode = #tpu.pipeline_mode<synchronous>, transform_indices = @transform_3, window_bounds = array<i64: 4, 512, 128>}, {pipeline_mode = #tpu.pipeline_mode<synchronous>, transform_indices = @transform_4, window_bounds = array<i64: 1, 128>}, {pipeline_mode = #tpu.pipeline_mode<synchronous>, transform_indices = @transform_5, window_bounds = array<i64: 128, 128>}, {pipeline_mode = #tpu.pipeline_mode<synchronous>, transform_indices = @transform_6, window_bounds = array<i64: 1, 128>}, {pipeline_mode = #tpu.pipeline_mode<synchronous>, transform_indices = @transform_7, window_bounds = array<i64: 9, 128, 128>}, {pipeline_mode = #tpu.pipeline_mode<synchronous>, transform_indices = @transform_8, window_bounds = array<i64: 1, 128>}, {pipeline_mode = #tpu.pipeline_mode<synchronous>, transform_indices = @transform_9, window_bounds = array<i64: 128, 128>}, {pipeline_mode = #tpu.pipeline_mode<synchronous>, transform_indices = @transform_10, window_bounds = array<i64: 1, 128>}, {transform_indices = @transform_11, window_bounds = array<i64: 1, 8, 8, 128>}]} {
    %cst = arith.constant 0.000000e+00 : bf16
    %0 = vector.broadcast %cst : bf16 to vector<1x9x512xbf16>
    %c0 = arith.constant 0 : index
    %c0_0 = arith.constant 0 : index
    %c0_1 = arith.constant 0 : index
    %1 = vector.load %arg13[%c0, %c0_0, %c0_1] : memref<9x9x512xbf16, #tpu.memory_space<vmem>>, vector<1x9x512xbf16>
    tpu.vector_store %arg13[%c0, %c0_0, %c0_1], %0 {strides = array<i32>} : memref<9x9x512xbf16, #tpu.memory_space<vmem>>, vector<1x9x512xbf16>,
    %cst_2 = arith.constant 0.000000e+00 : bf16
    %2 = vector.broadcast %cst_2 : bf16 to vector<9x1x512xbf16>
    %c0_3 = arith.constant 0 : index
    %c0_4 = arith.constant 0 : index
    %c0_5 = arith.constant 0 : index
    %3 = vector.load %arg13[%c0_3, %c0_4, %c0_5] : memref<9x9x512xbf16, #tpu.memory_space<vmem>>, vector<9x1x512xbf16>
    tpu.vector_store %arg13[%c0_3, %c0_4, %c0_5], %2 {strides = array<i32>} : memref<9x9x512xbf16, #tpu.memory_space<vmem>>, vector<9x1x512xbf16>,
    %cst_6 = arith.constant 0.000000e+00 : bf16
    %4 = vector.broadcast %cst_6 : bf16 to vector<1x10x128xbf16>
    %c0_7 = arith.constant 0 : index
    %c0_8 = arith.constant 0 : index
    %c0_9 = arith.constant 0 : index
    %5 = vector.load %arg14[%c0_7, %c0_8, %c0_9] : memref<10x10x128xbf16, #tpu.memory_space<vmem>>, vector<1x10x128xbf16>
    tpu.vector_store %arg14[%c0_7, %c0_8, %c0_9], %4 {strides = array<i32>} : memref<10x10x128xbf16, #tpu.memory_space<vmem>>, vector<1x10x128xbf16>,
    %cst_10 = arith.constant 0.000000e+00 : bf16
    %6 = vector.broadcast %cst_10 : bf16 to vector<1x10x128xbf16>
    %c9 = arith.constant 9 : index
    %c0_11 = arith.constant 0 : index
    %c0_12 = arith.constant 0 : index
    %7 = vector.load %arg14[%c9, %c0_11, %c0_12] : memref<10x10x128xbf16, #tpu.memory_space<vmem>>, vector<1x10x128xbf16>
    tpu.vector_store %arg14[%c9, %c0_11, %c0_12], %6 {strides = array<i32>} : memref<10x10x128xbf16, #tpu.memory_space<vmem>>, vector<1x10x128xbf16>,
    %cst_13 = arith.constant 0.000000e+00 : bf16
    %8 = vector.broadcast %cst_13 : bf16 to vector<10x1x128xbf16>
    %c0_14 = arith.constant 0 : index
    %c0_15 = arith.constant 0 : index
    %c0_16 = arith.constant 0 : index
    %9 = vector.load %arg14[%c0_14, %c0_15, %c0_16] : memref<10x10x128xbf16, #tpu.memory_space<vmem>>, vector<10x1x128xbf16>
    tpu.vector_store %arg14[%c0_14, %c0_15, %c0_16], %8 {strides = array<i32>} : memref<10x10x128xbf16, #tpu.memory_space<vmem>>, vector<10x1x128xbf16>,
    %cst_17 = arith.constant 0.000000e+00 : bf16
    %10 = vector.broadcast %cst_17 : bf16 to vector<10x1x128xbf16>
    %c0_18 = arith.constant 0 : index
    %c9_19 = arith.constant 9 : index
    %c0_20 = arith.constant 0 : index
    %11 = vector.load %arg14[%c0_18, %c9_19, %c0_20] : memref<10x10x128xbf16, #tpu.memory_space<vmem>>, vector<10x1x128xbf16>
    tpu.vector_store %arg14[%c0_18, %c9_19, %c0_20], %10 {strides = array<i32>} : memref<10x10x128xbf16, #tpu.memory_space<vmem>>, vector<10x1x128xbf16>,
    %c0_21 = arith.constant 0 : index
    %c0_22 = arith.constant 0 : index
    %c0_23 = arith.constant 0 : index
    %12 = vector.load %arg1[%c0_21, %c0_22, %c0_23] : memref<1x256x48xbf16, #tpu.memory_space<vmem>>, vector<1x256x48xbf16>
    %13 = vector.shape_cast %12 : vector<1x256x48xbf16> to vector<256x48xbf16>
    %c0_24 = arith.constant 0 : index
    %c0_25 = arith.constant 0 : index
    %14 = vector.load %arg2[%c0_24, %c0_25] : memref<48x128xbf16, #tpu.memory_space<vmem>>, vector<48x128xbf16>
    %cst_26 = arith.constant dense<0.000000e+00> : vector<256x128xf32>
    %15 = tpu.matmul %13, %14, %cst_26 {dimension_numbers = #tpu.dot_dimension_numbers<[1], [0], [0], [1], [0, 0, 1, 1], [], []>} : vector<256x48xbf16>, vector<48x128xbf16>, vector<256x128xf32> -> vector<256x128xf32>
    %c0_27 = arith.constant 0 : index
    %c0_28 = arith.constant 0 : index
    %16 = vector.load %arg3[%c0_27, %c0_28] : memref<1x128xf32, #tpu.memory_space<vmem>>, vector<1x128xf32>
    %17 = vector.broadcast %16 : vector<1x128xf32> to vector<256x128xf32>
    %18 = arith.addf %15, %17 : vector<256x128xf32>
    %cst_29 = arith.constant 0.000000e+00 : f32
    %19 = vector.broadcast %cst_29 : f32 to vector<256x128xf32>
    %20 = arith.maximumf %18, %19 : vector<256x128xf32>
    %21 = arith.truncf %20 : vector<256x128xf32> to vector<256x128xbf16>
    %22 = vector.extract_strided_slice %21 {offsets = [0, 0], sizes = [64, 128], strides = [1, 1]} : vector<256x128xbf16> to vector<64x128xbf16>
    %23 = vector.shape_cast %22 : vector<64x128xbf16> to vector<8x8x128xbf16>
    %c1 = arith.constant 1 : index
    %c1_30 = arith.constant 1 : index
    %c0_31 = arith.constant 0 : index
    %24 = vector.load %arg13[%c1, %c1_30, %c0_31] : memref<9x9x512xbf16, #tpu.memory_space<vmem>>, vector<8x8x128xbf16>
    tpu.vector_store %arg13[%c1, %c1_30, %c0_31], %23 {strides = array<i32>} : memref<9x9x512xbf16, #tpu.memory_space<vmem>>, vector<8x8x128xbf16>,
    %25 = vector.extract_strided_slice %21 {offsets = [64, 0], sizes = [64, 128], strides = [1, 1]} : vector<256x128xbf16> to vector<64x128xbf16>
    %26 = vector.shape_cast %25 : vector<64x128xbf16> to vector<8x8x128xbf16>
    %c1_32 = arith.constant 1 : index
    %c1_33 = arith.constant 1 : index
    %c128 = arith.constant 128 : index
    %27 = vector.load %arg13[%c1_32, %c1_33, %c128] : memref<9x9x512xbf16, #tpu.memory_space<vmem>>, vector<8x8x128xbf16>
    tpu.vector_store %arg13[%c1_32, %c1_33, %c128], %26 {strides = array<i32>} : memref<9x9x512xbf16, #tpu.memory_space<vmem>>, vector<8x8x128xbf16>,
    %28 = vector.extract_strided_slice %21 {offsets = [128, 0], sizes = [64, 128], strides = [1, 1]} : vector<256x128xbf16> to vector<64x128xbf16>
    %29 = vector.shape_cast %28 : vector<64x128xbf16> to vector<8x8x128xbf16>
    %c1_34 = arith.constant 1 : index
    %c1_35 = arith.constant 1 : index
    %c256 = arith.constant 256 : index
    %30 = vector.load %arg13[%c1_34, %c1_35, %c256] : memref<9x9x512xbf16, #tpu.memory_space<vmem>>, vector<8x8x128xbf16>
    tpu.vector_store %arg13[%c1_34, %c1_35, %c256], %29 {strides = array<i32>} : memref<9x9x512xbf16, #tpu.memory_space<vmem>>, vector<8x8x128xbf16>,
    %31 = vector.extract_strided_slice %21 {offsets = [192, 0], sizes = [64, 128], strides = [1, 1]} : vector<256x128xbf16> to vector<64x128xbf16>
    %32 = vector.shape_cast %31 : vector<64x128xbf16> to vector<8x8x128xbf16>
    %c1_36 = arith.constant 1 : index
    %c1_37 = arith.constant 1 : index
    %c384 = arith.constant 384 : index
    %33 = vector.load %arg13[%c1_36, %c1_37, %c384] : memref<9x9x512xbf16, #tpu.memory_space<vmem>>, vector<8x8x128xbf16>
    tpu.vector_store %arg13[%c1_36, %c1_37, %c384], %32 {strides = array<i32>} : memref<9x9x512xbf16, #tpu.memory_space<vmem>>, vector<8x8x128xbf16>,
    %cst_38 = arith.constant 0.000000e+00 : f32
    %34 = vector.broadcast %cst_38 : f32 to vector<64x128xf32>
    %c0_39 = arith.constant 0 : index
    %c0_40 = arith.constant 0 : index
    %c0_41 = arith.constant 0 : index
    %35 = vector.load %arg13[%c0_39, %c0_40, %c0_41] : memref<9x9x512xbf16, #tpu.memory_space<vmem>>, vector<8x8x512xbf16>
    %36 = vector.shape_cast %35 : vector<8x8x512xbf16> to vector<64x512xbf16>
    %c0_42 = arith.constant 0 : index
    %c0_43 = arith.constant 0 : index
    %c0_44 = arith.constant 0 : index
    %37 = vector.load %arg4[%c0_42, %c0_43, %c0_44] : memref<4x512x128xbf16, #tpu.memory_space<vmem>>, vector<1x512x128xbf16>
    %38 = vector.shape_cast %37 : vector<1x512x128xbf16> to vector<512x128xbf16>
    %cst_45 = arith.constant dense<0.000000e+00> : vector<64x128xf32>
    %39 = tpu.matmul %36, %38, %cst_45 {dimension_numbers = #tpu.dot_dimension_numbers<[1], [0], [0], [1], [0, 0, 1, 1], [], []>} : vector<64x512xbf16>, vector<512x128xbf16>, vector<64x128xf32> -> vector<64x128xf32>
    %40 = arith.addf %34, %39 : vector<64x128xf32>
    %c0_46 = arith.constant 0 : index
    %c1_47 = arith.constant 1 : index
    %c0_48 = arith.constant 0 : index
    %41 = vector.load %arg13[%c0_46, %c1_47, %c0_48] : memref<9x9x512xbf16, #tpu.memory_space<vmem>>, vector<8x8x512xbf16>
    %42 = vector.shape_cast %41 : vector<8x8x512xbf16> to vector<64x512xbf16>
    %c1_49 = arith.constant 1 : index
    %c0_50 = arith.constant 0 : index
    %c0_51 = arith.constant 0 : index
    %43 = vector.load %arg4[%c1_49, %c0_50, %c0_51] : memref<4x512x128xbf16, #tpu.memory_space<vmem>>, vector<1x512x128xbf16>
    %44 = vector.shape_cast %43 : vector<1x512x128xbf16> to vector<512x128xbf16>
    %cst_52 = arith.constant dense<0.000000e+00> : vector<64x128xf32>
    %45 = tpu.matmul %42, %44, %cst_52 {dimension_numbers = #tpu.dot_dimension_numbers<[1], [0], [0], [1], [0, 0, 1, 1], [], []>} : vector<64x512xbf16>, vector<512x128xbf16>, vector<64x128xf32> -> vector<64x128xf32>
    %46 = arith.addf %40, %45 : vector<64x128xf32>
    %c1_53 = arith.constant 1 : index
    %c0_54 = arith.constant 0 : index
    %c0_55 = arith.constant 0 : index
    %47 = vector.load %arg13[%c1_53, %c0_54, %c0_55] : memref<9x9x512xbf16, #tpu.memory_space<vmem>>, vector<8x8x512xbf16>
    %48 = vector.shape_cast %47 : vector<8x8x512xbf16> to vector<64x512xbf16>
    %c2 = arith.constant 2 : index
    %c0_56 = arith.constant 0 : index
    %c0_57 = arith.constant 0 : index
    %49 = vector.load %arg4[%c2, %c0_56, %c0_57] : memref<4x512x128xbf16, #tpu.memory_space<vmem>>, vector<1x512x128xbf16>
    %50 = vector.shape_cast %49 : vector<1x512x128xbf16> to vector<512x128xbf16>
    %cst_58 = arith.constant dense<0.000000e+00> : vector<64x128xf32>
    %51 = tpu.matmul %48, %50, %cst_58 {dimension_numbers = #tpu.dot_dimension_numbers<[1], [0], [0], [1], [0, 0, 1, 1], [], []>} : vector<64x512xbf16>, vector<512x128xbf16>, vector<64x128xf32> -> vector<64x128xf32>
    %52 = arith.addf %46, %51 : vector<64x128xf32>
    %c1_59 = arith.constant 1 : index
    %c1_60 = arith.constant 1 : index
    %c0_61 = arith.constant 0 : index
    %53 = vector.load %arg13[%c1_59, %c1_60, %c0_61] : memref<9x9x512xbf16, #tpu.memory_space<vmem>>, vector<8x8x512xbf16>
    %54 = vector.shape_cast %53 : vector<8x8x512xbf16> to vector<64x512xbf16>
    %c3 = arith.constant 3 : index
    %c0_62 = arith.constant 0 : index
    %c0_63 = arith.constant 0 : index
    %55 = vector.load %arg4[%c3, %c0_62, %c0_63] : memref<4x512x128xbf16, #tpu.memory_space<vmem>>, vector<1x512x128xbf16>
    %56 = vector.shape_cast %55 : vector<1x512x128xbf16> to vector<512x128xbf16>
    %cst_64 = arith.constant dense<0.000000e+00> : vector<64x128xf32>
    %57 = tpu.matmul %54, %56, %cst_64 {dimension_numbers = #tpu.dot_dimension_numbers<[1], [0], [0], [1], [0, 0, 1, 1], [], []>} : vector<64x512xbf16>, vector<512x128xbf16>, vector<64x128xf32> -> vector<64x128xf32>
    %58 = arith.addf %52, %57 : vector<64x128xf32>
    %c0_65 = arith.constant 0 : index
    %c0_66 = arith.constant 0 : index
    %59 = vector.load %arg5[%c0_65, %c0_66] : memref<1x128xf32, #tpu.memory_space<vmem>>, vector<1x128xf32>
    %60 = vector.broadcast %59 : vector<1x128xf32> to vector<64x128xf32>
    %61 = arith.addf %58, %60 : vector<64x128xf32>
    %cst_67 = arith.constant 0.000000e+00 : f32
    %62 = vector.broadcast %cst_67 : f32 to vector<64x128xf32>
    %63 = arith.maximumf %61, %62 : vector<64x128xf32>
    %64 = arith.truncf %63 : vector<64x128xf32> to vector<64x128xbf16>
    %c0_68 = arith.constant 0 : index
    %c0_69 = arith.constant 0 : index
    %65 = vector.load %arg6[%c0_68, %c0_69] : memref<128x128xbf16, #tpu.memory_space<vmem>>, vector<128x128xbf16>
    %cst_70 = arith.constant dense<0.000000e+00> : vector<64x128xf32>
    %66 = tpu.matmul %64, %65, %cst_70 {dimension_numbers = #tpu.dot_dimension_numbers<[1], [0], [0], [1], [0, 0, 1, 1], [], []>} : vector<64x128xbf16>, vector<128x128xbf16>, vector<64x128xf32> -> vector<64x128xf32>
    %c0_71 = arith.constant 0 : index
    %c0_72 = arith.constant 0 : index
    %67 = vector.load %arg7[%c0_71, %c0_72] : memref<1x128xf32, #tpu.memory_space<vmem>>, vector<1x128xf32>
    %68 = vector.broadcast %67 : vector<1x128xf32> to vector<64x128xf32>
    %69 = arith.addf %66, %68 : vector<64x128xf32>
    %cst_73 = arith.constant 0.000000e+00 : f32
    %70 = vector.broadcast %cst_73 : f32 to vector<64x128xf32>
    %71 = arith.maximumf %69, %70 : vector<64x128xf32>
    %72 = arith.truncf %71 : vector<64x128xf32> to vector<64x128xbf16>
    %73 = vector.shape_cast %72 : vector<64x128xbf16> to vector<8x8x128xbf16>
    %c1_74 = arith.constant 1 : index
    %c1_75 = arith.constant 1 : index
    %c0_76 = arith.constant 0 : index
    %74 = vector.load %arg14[%c1_74, %c1_75, %c0_76] : memref<10x10x128xbf16, #tpu.memory_space<vmem>>, vector<8x8x128xbf16>
    tpu.vector_store %arg14[%c1_74, %c1_75, %c0_76], %73 {strides = array<i32>} : memref<10x10x128xbf16, #tpu.memory_space<vmem>>, vector<8x8x128xbf16>,
    %cst_77 = arith.constant 0.000000e+00 : f32
    %75 = vector.broadcast %cst_77 : f32 to vector<64x128xf32>
    %c0_78 = arith.constant 0 : index
    %c0_79 = arith.constant 0 : index
    %c0_80 = arith.constant 0 : index
    %76 = vector.load %arg14[%c0_78, %c0_79, %c0_80] : memref<10x10x128xbf16, #tpu.memory_space<vmem>>, vector<8x8x128xbf16>
    %77 = vector.shape_cast %76 : vector<8x8x128xbf16> to vector<64x128xbf16>
    %c0_81 = arith.constant 0 : index
    %c0_82 = arith.constant 0 : index
    %c0_83 = arith.constant 0 : index
    %78 = vector.load %arg8[%c0_81, %c0_82, %c0_83] : memref<9x128x128xbf16, #tpu.memory_space<vmem>>, vector<1x128x128xbf16>
    %79 = vector.shape_cast %78 : vector<1x128x128xbf16> to vector<128x128xbf16>
    %cst_84 = arith.constant dense<0.000000e+00> : vector<64x128xf32>
    %80 = tpu.matmul %77, %79, %cst_84 {dimension_numbers = #tpu.dot_dimension_numbers<[1], [0], [0], [1], [0, 0, 1, 1], [], []>} : vector<64x128xbf16>, vector<128x128xbf16>, vector<64x128xf32> -> vector<64x128xf32>
    %81 = arith.addf %75, %80 : vector<64x128xf32>
    %c0_85 = arith.constant 0 : index
    %c1_86 = arith.constant 1 : index
    %c0_87 = arith.constant 0 : index
    %82 = vector.load %arg14[%c0_85, %c1_86, %c0_87] : memref<10x10x128xbf16, #tpu.memory_space<vmem>>, vector<8x8x128xbf16>
    %83 = vector.shape_cast %82 : vector<8x8x128xbf16> to vector<64x128xbf16>
    %c1_88 = arith.constant 1 : index
    %c0_89 = arith.constant 0 : index
    %c0_90 = arith.constant 0 : index
    %84 = vector.load %arg8[%c1_88, %c0_89, %c0_90] : memref<9x128x128xbf16, #tpu.memory_space<vmem>>, vector<1x128x128xbf16>
    %85 = vector.shape_cast %84 : vector<1x128x128xbf16> to vector<128x128xbf16>
    %cst_91 = arith.constant dense<0.000000e+00> : vector<64x128xf32>
    %86 = tpu.matmul %83, %85, %cst_91 {dimension_numbers = #tpu.dot_dimension_numbers<[1], [0], [0], [1], [0, 0, 1, 1], [], []>} : vector<64x128xbf16>, vector<128x128xbf16>, vector<64x128xf32> -> vector<64x128xf32>
    %87 = arith.addf %81, %86 : vector<64x128xf32>
    %c0_92 = arith.constant 0 : index
    %c2_93 = arith.constant 2 : index
    %c0_94 = arith.constant 0 : index
    %88 = vector.load %arg14[%c0_92, %c2_93, %c0_94] : memref<10x10x128xbf16, #tpu.memory_space<vmem>>, vector<8x8x128xbf16>
    %89 = vector.shape_cast %88 : vector<8x8x128xbf16> to vector<64x128xbf16>
    %c2_95 = arith.constant 2 : index
    %c0_96 = arith.constant 0 : index
    %c0_97 = arith.constant 0 : index
    %90 = vector.load %arg8[%c2_95, %c0_96, %c0_97] : memref<9x128x128xbf16, #tpu.memory_space<vmem>>, vector<1x128x128xbf16>
    %91 = vector.shape_cast %90 : vector<1x128x128xbf16> to vector<128x128xbf16>
    %cst_98 = arith.constant dense<0.000000e+00> : vector<64x128xf32>
    %92 = tpu.matmul %89, %91, %cst_98 {dimension_numbers = #tpu.dot_dimension_numbers<[1], [0], [0], [1], [0, 0, 1, 1], [], []>} : vector<64x128xbf16>, vector<128x128xbf16>, vector<64x128xf32> -> vector<64x128xf32>
    %93 = arith.addf %87, %92 : vector<64x128xf32>
    %c1_99 = arith.constant 1 : index
    %c0_100 = arith.constant 0 : index
    %c0_101 = arith.constant 0 : index
    %94 = vector.load %arg14[%c1_99, %c0_100, %c0_101] : memref<10x10x128xbf16, #tpu.memory_space<vmem>>, vector<8x8x128xbf16>
    %95 = vector.shape_cast %94 : vector<8x8x128xbf16> to vector<64x128xbf16>
    %c3_102 = arith.constant 3 : index
    %c0_103 = arith.constant 0 : index
    %c0_104 = arith.constant 0 : index
    %96 = vector.load %arg8[%c3_102, %c0_103, %c0_104] : memref<9x128x128xbf16, #tpu.memory_space<vmem>>, vector<1x128x128xbf16>
    %97 = vector.shape_cast %96 : vector<1x128x128xbf16> to vector<128x128xbf16>
    %cst_105 = arith.constant dense<0.000000e+00> : vector<64x128xf32>
    %98 = tpu.matmul %95, %97, %cst_105 {dimension_numbers = #tpu.dot_dimension_numbers<[1], [0], [0], [1], [0, 0, 1, 1], [], []>} : vector<64x128xbf16>, vector<128x128xbf16>, vector<64x128xf32> -> vector<64x128xf32>
    %99 = arith.addf %93, %98 : vector<64x128xf32>
    %c1_106 = arith.constant 1 : index
    %c1_107 = arith.constant 1 : index
    %c0_108 = arith.constant 0 : index
    %100 = vector.load %arg14[%c1_106, %c1_107, %c0_108] : memref<10x10x128xbf16, #tpu.memory_space<vmem>>, vector<8x8x128xbf16>
    %101 = vector.shape_cast %100 : vector<8x8x128xbf16> to vector<64x128xbf16>
    %c4 = arith.constant 4 : index
    %c0_109 = arith.constant 0 : index
    %c0_110 = arith.constant 0 : index
    %102 = vector.load %arg8[%c4, %c0_109, %c0_110] : memref<9x128x128xbf16, #tpu.memory_space<vmem>>, vector<1x128x128xbf16>
    %103 = vector.shape_cast %102 : vector<1x128x128xbf16> to vector<128x128xbf16>
    %cst_111 = arith.constant dense<0.000000e+00> : vector<64x128xf32>
    %104 = tpu.matmul %101, %103, %cst_111 {dimension_numbers = #tpu.dot_dimension_numbers<[1], [0], [0], [1], [0, 0, 1, 1], [], []>} : vector<64x128xbf16>, vector<128x128xbf16>, vector<64x128xf32> -> vector<64x128xf32>
    %105 = arith.addf %99, %104 : vector<64x128xf32>
    %c1_112 = arith.constant 1 : index
    %c2_113 = arith.constant 2 : index
    %c0_114 = arith.constant 0 : index
    %106 = vector.load %arg14[%c1_112, %c2_113, %c0_114] : memref<10x10x128xbf16, #tpu.memory_space<vmem>>, vector<8x8x128xbf16>
    %107 = vector.shape_cast %106 : vector<8x8x128xbf16> to vector<64x128xbf16>
    %c5 = arith.constant 5 : index
    %c0_115 = arith.constant 0 : index
    %c0_116 = arith.constant 0 : index
    %108 = vector.load %arg8[%c5, %c0_115, %c0_116] : memref<9x128x128xbf16, #tpu.memory_space<vmem>>, vector<1x128x128xbf16>
    %109 = vector.shape_cast %108 : vector<1x128x128xbf16> to vector<128x128xbf16>
    %cst_117 = arith.constant dense<0.000000e+00> : vector<64x128xf32>
    %110 = tpu.matmul %107, %109, %cst_117 {dimension_numbers = #tpu.dot_dimension_numbers<[1], [0], [0], [1], [0, 0, 1, 1], [], []>} : vector<64x128xbf16>, vector<128x128xbf16>, vector<64x128xf32> -> vector<64x128xf32>
    %111 = arith.addf %105, %110 : vector<64x128xf32>
    %c2_118 = arith.constant 2 : index
    %c0_119 = arith.constant 0 : index
    %c0_120 = arith.constant 0 : index
    %112 = vector.load %arg14[%c2_118, %c0_119, %c0_120] : memref<10x10x128xbf16, #tpu.memory_space<vmem>>, vector<8x8x128xbf16>
    %113 = vector.shape_cast %112 : vector<8x8x128xbf16> to vector<64x128xbf16>
    %c6 = arith.constant 6 : index
    %c0_121 = arith.constant 0 : index
    %c0_122 = arith.constant 0 : index
    %114 = vector.load %arg8[%c6, %c0_121, %c0_122] : memref<9x128x128xbf16, #tpu.memory_space<vmem>>, vector<1x128x128xbf16>
    %115 = vector.shape_cast %114 : vector<1x128x128xbf16> to vector<128x128xbf16>
    %cst_123 = arith.constant dense<0.000000e+00> : vector<64x128xf32>
    %116 = tpu.matmul %113, %115, %cst_123 {dimension_numbers = #tpu.dot_dimension_numbers<[1], [0], [0], [1], [0, 0, 1, 1], [], []>} : vector<64x128xbf16>, vector<128x128xbf16>, vector<64x128xf32> -> vector<64x128xf32>
    %117 = arith.addf %111, %116 : vector<64x128xf32>
    %c2_124 = arith.constant 2 : index
    %c1_125 = arith.constant 1 : index
    %c0_126 = arith.constant 0 : index
    %118 = vector.load %arg14[%c2_124, %c1_125, %c0_126] : memref<10x10x128xbf16, #tpu.memory_space<vmem>>, vector<8x8x128xbf16>
    %119 = vector.shape_cast %118 : vector<8x8x128xbf16> to vector<64x128xbf16>
    %c7 = arith.constant 7 : index
    %c0_127 = arith.constant 0 : index
    %c0_128 = arith.constant 0 : index
    %120 = vector.load %arg8[%c7, %c0_127, %c0_128] : memref<9x128x128xbf16, #tpu.memory_space<vmem>>, vector<1x128x128xbf16>
    %121 = vector.shape_cast %120 : vector<1x128x128xbf16> to vector<128x128xbf16>
    %cst_129 = arith.constant dense<0.000000e+00> : vector<64x128xf32>
    %122 = tpu.matmul %119, %121, %cst_129 {dimension_numbers = #tpu.dot_dimension_numbers<[1], [0], [0], [1], [0, 0, 1, 1], [], []>} : vector<64x128xbf16>, vector<128x128xbf16>, vector<64x128xf32> -> vector<64x128xf32>
    %123 = arith.addf %117, %122 : vector<64x128xf32>
    %c2_130 = arith.constant 2 : index
    %c2_131 = arith.constant 2 : index
    %c0_132 = arith.constant 0 : index
    %124 = vector.load %arg14[%c2_130, %c2_131, %c0_132] : memref<10x10x128xbf16, #tpu.memory_space<vmem>>, vector<8x8x128xbf16>
    %125 = vector.shape_cast %124 : vector<8x8x128xbf16> to vector<64x128xbf16>
    %c8 = arith.constant 8 : index
    %c0_133 = arith.constant 0 : index
    %c0_134 = arith.constant 0 : index
    %126 = vector.load %arg8[%c8, %c0_133, %c0_134] : memref<9x128x128xbf16, #tpu.memory_space<vmem>>, vector<1x128x128xbf16>
    %127 = vector.shape_cast %126 : vector<1x128x128xbf16> to vector<128x128xbf16>
    %cst_135 = arith.constant dense<0.000000e+00> : vector<64x128xf32>
    %128 = tpu.matmul %125, %127, %cst_135 {dimension_numbers = #tpu.dot_dimension_numbers<[1], [0], [0], [1], [0, 0, 1, 1], [], []>} : vector<64x128xbf16>, vector<128x128xbf16>, vector<64x128xf32> -> vector<64x128xf32>
    %129 = arith.addf %123, %128 : vector<64x128xf32>
    %c0_136 = arith.constant 0 : index
    %c0_137 = arith.constant 0 : index
    %130 = vector.load %arg9[%c0_136, %c0_137] : memref<1x128xf32, #tpu.memory_space<vmem>>, vector<1x128xf32>
    %131 = vector.broadcast %130 : vector<1x128xf32> to vector<64x128xf32>
    %132 = arith.addf %129, %131 : vector<64x128xf32>
    %cst_138 = arith.constant 0.000000e+00 : f32
    %133 = vector.broadcast %cst_138 : f32 to vector<64x128xf32>
    %134 = arith.maximumf %132, %133 : vector<64x128xf32>
    %135 = arith.truncf %134 : vector<64x128xf32> to vector<64x128xbf16>
    %c0_139 = arith.constant 0 : index
    %c0_140 = arith.constant 0 : index
    %136 = vector.load %arg10[%c0_139, %c0_140] : memref<128x128xbf16, #tpu.memory_space<vmem>>, vector<128x128xbf16>
    %cst_141 = arith.constant dense<0.000000e+00> : vector<64x128xf32>
    %137 = tpu.matmul %135, %136, %cst_141 {dimension_numbers = #tpu.dot_dimension_numbers<[1], [0], [0], [1], [0, 0, 1, 1], [], []>} : vector<64x128xbf16>, vector<128x128xbf16>, vector<64x128xf32> -> vector<64x128xf32>
    %c0_142 = arith.constant 0 : index
    %c0_143 = arith.constant 0 : index
    %138 = vector.load %arg11[%c0_142, %c0_143] : memref<1x128xf32, #tpu.memory_space<vmem>>, vector<1x128xf32>
    %139 = vector.broadcast %138 : vector<1x128xf32> to vector<64x128xf32>
    %140 = arith.addf %137, %139 : vector<64x128xf32>
    %141 = vector.shape_cast %140 : vector<64x128xf32> to vector<8x8x128xf32>
    %c0_144 = arith.constant 0 : index
    %c0_145 = arith.constant 0 : index
    %c0_146 = arith.constant 0 : index
    %c0_147 = arith.constant 0 : index
    %142 = vector.load %arg12[%c0_144, %c0_145, %c0_146, %c0_147] : memref<1x8x8x128xf32, #tpu.memory_space<vmem>>, vector<1x8x8x128xf32>
    %143 = vector.shape_cast %142 : vector<1x8x8x128xf32> to vector<8x8x128xf32>
    %144 = vector.shape_cast %141 : vector<8x8x128xf32> to vector<1x8x8x128xf32>
    tpu.vector_store %arg12[%c0_144, %c0_145, %c0_146, %c0_147], %144 {strides = array<i32>} : memref<1x8x8x128xf32, #tpu.memory_space<vmem>>, vector<1x8x8x128xf32>,
    return
  }
  func.func @transform_0(%arg0: i32) -> (i32, i32, i32) {
    %c0_i32 = arith.constant 0 : i32
    %c0_i32_0 = arith.constant 0 : i32
    %c0_i32_1 = arith.constant 0 : i32
    return %arg0, %c0_i32, %c0_i32_0 : i32, i32, i32
  }
  func.func @transform_1(%arg0: i32) -> (i32, i32) {
    %c0_i32 = arith.constant 0 : i32
    %c0_i32_0 = arith.constant 0 : i32
    %c0_i32_1 = arith.constant 0 : i32
    return %c0_i32, %c0_i32_0 : i32, i32
  }
  func.func @transform_2(%arg0: i32) -> (i32, i32) {
    %c0_i32 = arith.constant 0 : i32
    %c0_i32_0 = arith.constant 0 : i32
    %c0_i32_1 = arith.constant 0 : i32
    return %c0_i32, %c0_i32_0 : i32, i32
  }
  func.func @transform_3(%arg0: i32) -> (i32, i32, i32) {
    %c0_i32 = arith.constant 0 : i32
    %c0_i32_0 = arith.constant 0 : i32
    %c0_i32_1 = arith.constant 0 : i32
    %c0_i32_2 = arith.constant 0 : i32
    return %c0_i32, %c0_i32_0, %c0_i32_1 : i32, i32, i32
  }
  func.func @transform_4(%arg0: i32) -> (i32, i32) {
    %c0_i32 = arith.constant 0 : i32
    %c0_i32_0 = arith.constant 0 : i32
    %c0_i32_1 = arith.constant 0 : i32
    return %c0_i32, %c0_i32_0 : i32, i32
  }
  func.func @transform_5(%arg0: i32) -> (i32, i32) {
    %c0_i32 = arith.constant 0 : i32
    %c0_i32_0 = arith.constant 0 : i32
    %c0_i32_1 = arith.constant 0 : i32
    return %c0_i32, %c0_i32_0 : i32, i32
  }
  func.func @transform_6(%arg0: i32) -> (i32, i32) {
    %c0_i32 = arith.constant 0 : i32
    %c0_i32_0 = arith.constant 0 : i32
    %c0_i32_1 = arith.constant 0 : i32
    return %c0_i32, %c0_i32_0 : i32, i32
  }
  func.func @transform_7(%arg0: i32) -> (i32, i32, i32) {
    %c0_i32 = arith.constant 0 : i32
    %c0_i32_0 = arith.constant 0 : i32
    %c0_i32_1 = arith.constant 0 : i32
    %c0_i32_2 = arith.constant 0 : i32
    return %c0_i32, %c0_i32_0, %c0_i32_1 : i32, i32, i32
  }
  func.func @transform_8(%arg0: i32) -> (i32, i32) {
    %c0_i32 = arith.constant 0 : i32
    %c0_i32_0 = arith.constant 0 : i32
    %c0_i32_1 = arith.constant 0 : i32
    return %c0_i32, %c0_i32_0 : i32, i32
  }
  func.func @transform_9(%arg0: i32) -> (i32, i32) {
    %c0_i32 = arith.constant 0 : i32
    %c0_i32_0 = arith.constant 0 : i32
    %c0_i32_1 = arith.constant 0 : i32
    return %c0_i32, %c0_i32_0 : i32, i32
  }
  func.func @transform_10(%arg0: i32) -> (i32, i32) {
    %c0_i32 = arith.constant 0 : i32
    %c0_i32_0 = arith.constant 0 : i32
    %c0_i32_1 = arith.constant 0 : i32
    return %c0_i32, %c0_i32_0 : i32, i32
  }
  func.func @transform_11(%arg0: i32) -> (i32, i32, i32, i32) {
    %c0_i32 = arith.constant 0 : i32
    %c0_i32_0 = arith.constant 0 : i32
    %c0_i32_1 = arith.constant 0 : i32
    %c0_i32_2 = arith.constant 0 : i32
    return %arg0, %c0_i32, %c0_i32_0, %c0_i32_1 : i32, i32, i32, i32
  }
}

</mosaic_0001>

<bundles_post_ra>
// kernel: tile.6
= control target key start
LH: loop header
LB: loop body
LE: loop exit
PB: predicated region body
PF: predicated region fallthrough
CT: control target
= control target key end

     0   :  { %v12_v2 = vmov 0.0   ;;  %s29_s0 = inlined_call_operand.vmem [shape: bf16[3], index: 0, kind: input, shape index: {}]   ;;  %s30_s1 = inlined_call_operand.vmem [shape: bf16[4,3], index: 1, kind: output, shape index: {}]  }
   0x1   :  { %v4_v0 = vld [vmem:[%s29_s0] ss:$0 sm:$0xff] }
   0x2   :  { %v5_v1 = vunpack.i.l.bf16 %v4_v0 }
   0x4   :  { %v9_v3 = vpack.c.bf16 %v12_v2, %v5_v1 }
   0x6   :  { %10 = vst [vmem:[%s30_s1] sm:$0x3] %v9_v3 }

// kernel: tile.7
= control target key start
LH: loop header
LB: loop body
LE: loop exit
PB: predicated region body
PF: predicated region fallthrough
CT: control target
= control target key end

     0   :  { %vm19_vm0 = vcmask 23552   ;;  %s52_s8 = smov 3   ;;  %s53_s9 = smov 6   ;;  %vm25_vm1 = vcmask 97352   ;;  %vm31_vm2 = vcmask 72752   ;;  %vm37_vm3 = vcmask 48152   ;;  %s71_s0 = inlined_call_operand.vmem [shape: bf16[4,3], index: 0, kind: input, shape index: {}]   ;;  %s72_s1 = inlined_call_operand.vmem [shape: bf16[12], index: 1, kind: output, shape index: {}]  }
   0x1   :  { %v14_v0 = vld [vmem:[%s71_s0] sm:$0x3]  ;;  %s51_s0 = smov 9   ;;  %v54_v10 = vmov 0.0  }
   0x2   :  { %v15_v1 = vunpack.c.l.bf16 %v14_v0 }
   0x4   :  { %17 = vst [vmem:[#allocation1] sm:$0xf] %v15_v1 }
   0xb   :  { %v22_v2 = vld [vmem:[#allocation1 + $0x3] sm:$0x1]   ;;  %v34_v3 = vld [vmem:[#allocation1 + $0x1] sm:$0x1]   ;;  %v18_v4 = vld [vmem:[#allocation1] sm:$0x1]  }
   0xc   :  { %23 = vrot.lane.b32.xlu0 %v22_v2, %s51_s0  ;;  %35 = vrot.lane.b32.xlu1 %v34_v3, %s52_s8  ;;  %v28_v5 = vld [vmem:[#allocation1 + $0x2] sm:$0x1]   ;;  %20 = vst.msk [vmem:[#allocation0] sm:$0x1] %vm19_vm0, %v18_v4  }
  0x10   :  { %29 = vrot.lane.b32.xlu0 %v28_v5, %s53_s9 }
  0x7e   :  { %v24_v6 = vpop.permute.xlu0 %23   ;;  %v36_v7 = vpop.permute.xlu1 %35  }
  0x7f   :  { %26 = vst.msk [vmem:[#allocation0] sm:$0x1] %vm25_vm1, %v24_v6  }
  0x82   :  { %v30_v8 = vpop.permute.xlu0 %29  }
  0x83   :  { %32 = vst.msk [vmem:[#allocation0] sm:$0x1] %vm31_vm2, %v30_v8  }
  0x84   :  { %38 = vst.msk [vmem:[#allocation0] sm:$0x1] %vm37_vm3, %v36_v7  }
  0x8b   :  { %v43_v9 = vld [vmem:[#allocation0] sm:$0x3] }
  0x8c   :  { %v44_v11 = vpack.c.bf16 %v54_v10, %v43_v9 }
  0x8e   :  { %46 = vst [vmem:[%s72_s1] sm:$0x1] %v44_v11 }

// kernel: forward.1
= control target key start
LH: loop header
LB: loop body
LE: loop exit
PB: predicated region body
PF: predicated region fallthrough
CT: control target
= control target key end

     0   :  { %s8374_s17 = smov 0   ;;  %s10050_s0 = inlined_call_operand.vmem [shape: bf16[2,256,48], index: 0, kind: input, shape index: {}]   ;;  %s10051_s1 = inlined_call_operand.vmem [shape: bf16[48,128], index: 1, kind: input, shape index: {}]   ;;  %s10052_s2 = inlined_call_operand.vmem [shape: f32[1,128], index: 2, kind: input, shape index: {}]   ;;  %s10053_s3 = inlined_call_operand.vmem [shape: bf16[4,512,128], index: 3, kind: input, shape index: {}]   ;;  %s10054_s4 = inlined_call_operand.vmem [shape: f32[1,128], index: 4, kind: input, shape index: {}]   ;;  %s10055_s5 = inlined_call_operand.vmem [shape: bf16[128,128], index: 5, kind: input, shape index: {}]   ;;  %s10056_s6 = inlined_call_operand.vmem [shape: f32[1,128], index: 6, kind: input, shape index: {}]   ;;  %s10057_s7 = inlined_call_operand.vmem [shape: bf16[9,128,128], index: 7, kind: input, shape index: {}]   ;;  %s10058_s8 = inlined_call_operand.vmem [shape: f32[1,128], index: 8, kind: input, shape index: {}]   ;;  %s10059_s9 = inlined_call_operand.vmem [shape: bf16[128,128], index: 9, kind: input, shape index: {}]   ;;  %s10060_s10 = inlined_call_operand.vmem [shape: f32[1,128], index: 10, kind: input, shape index: {}]   ;;  %s10061_s11 = inlined_call_operand.vmem [shape: f32[2,8,8,128], index: 11, kind: output, shape index: {}]  }
   0x1 LB: > { %s6417_s18 = sadd.s32 4294967295, %s8311_s17   ;;  %p6421_p0 = scmp.ge.s32.totalorder %s8311_s17, 1  ;;  %s8311_s17 = sphi %s8374_s17, %s21_s17  }
   0x2   : > { %p337_p1 = scmp.lt.s32.totalorder %s8311_s17, 3 }
   0x4   : > { %p338_p2 = pnand %p6421_p0, %p337_p1 }
   0x5   : > { %v8056_v0 = vld [vmem:[%s10051_s1] sm:$0xff] (!%p338_p2)   ;;  %p377_p3 = scmp.lt.s32.totalorder (!%p338_p2), %s6417_s18, 1  ;;  %v8057_v1 = vld [vmem:[%s10051_s1 + $0x8] sm:$0xff] (!%p338_p2)   ;;  %v8058_v2 = vld [vmem:[%s10051_s1 + $0x10] sm:$0xff] (!%p338_p2)   ;;  %vm667_vm0 = vcmask (!%p338_p2), 392192   ;;  %vm390_vm1 = vcmask (!%p338_p2), 1040384  }
   0x6   : > { %341 = sbr.rel (%p338_p2) target bundleno = 1709 (0x6ad), region = 64  ;;  %7681 = vmatprep.subr.bf16.mxu0 (!%p338_p2), %v8056_v0  ;;  %v8075_v4 = vld [vmem:[%s10053_s3 + $0x140] sm:$0xff] (!%p338_p2)   ;;  %v8077_v8 = vld [vmem:[%s10053_s3 + $0x148] sm:$0xff] (!%p338_p2)   ;;  %vm393_vm2 = vcmask (!%p338_p2), 1044484   ;;  %vm391_vm3 = vsmask.f32 (!%p338_p2), 256 }
   0x7   : > { %7682 = vmatpush3.bf16.msra.mxu0 (!%p338_p2), %v8056_v0  ;;  %v8076_v5 = vld [vmem:[%s10053_s3 + $0x100] sm:$0xff] (!%p338_p2)   ;;  %v8078_v11 = vld [vmem:[%s10053_s3 + $0x108] sm:$0xff] (!%p338_p2)   ;;  %vm394_vm4 = vsmask.f32 (!%p338_p2), 4352  ;;  %vm8423_vm5 = vmand (!%p338_p2), %vm390_vm1, %vm391_vm3  ;;  %v8313_v45 = vmov (!%p338_p2), 0   ;;  %vm1026_vm12 = vcmask (!%p338_p2), 1043456  }
   0x8   : > { %7683 = vmatprep.subr.bf16.mxu0 (!%p338_p2), %v8057_v1  ;;  %v421_v12 = vld [vmem:[#allocation2 + $0x60] sm:$0x11] (!%p338_p2)  ;;  %vm395_vm6 = vmand (!%p338_p2), %vm393_vm2, %vm394_vm4  ;;  %v8079_v37 = vld [vmem:[%s10053_s3 + $0x150] sm:$0xff] (!%p338_p2)   ;;  %388 = vst [vmem:[#allocation2] sm:$0xff] (!%p338_p2), %v8313_v45  ;;  %vm1616_vm8 = vsmask.f32 (!%p338_p2), 3328 }
   0x9   : > { %vm8429_vm7 = vmor (!%p338_p2), %vm395_vm6, %vm8423_vm5  ;;  %v409_v27 = vld [vmem:[#allocation2 + $0x20] sm:$0x11] (!%p338_p2)  ;;  %v8080_v39 = vld [vmem:[%s10053_s3 + $0x110] sm:$0xff] (!%p338_p2)   ;;  %389 = vst [vmem:[#allocation2 + $0x8] sm:$0xff] (!%p338_p2), %v8313_v45  ;;  %vm1617_vm9 = vsmask.f32 (!%p338_p2), 7440 }
   0xa   : > { %v422_v17 = vsel (!%p338_p2), %vm8429_vm7, 0, %v421_v12  ;;  %v410_v28 = vsel (!%p338_p2), %vm8429_vm7, 0, %v409_v27  ;;  %v427_v29 = vld [vmem:[#allocation2 + $0x80] sm:$0x11] (!%p338_p2)  ;;  %v8081_v43 = vld [vmem:[%s10053_s3 + $0x158] sm:$0xff] (!%p338_p2)   ;;  %v8085_v53 = vld [vmem:[%s10053_s3 + $0x168] sm:$0xff] (!%p338_p2)  }
   0xb   : > { %7684 = vmatpush3.bf16.msra.mxu0 (!%p338_p2), %v8057_v1  ;;  %423 = vst [vmem:[#allocation2 + $0x60] sm:$0x11] (!%p338_p2), %v422_v17  ;;  %411 = vst [vmem:[#allocation2 + $0x20] sm:$0x11] (!%p338_p2), %v410_v28  ;;  %v428_v30 = vsel (!%p338_p2), %vm8429_vm7, 0, %v427_v29  ;;  %v8082_v44 = vld [vmem:[%s10053_s3 + $0x118] sm:$0xff] (!%p338_p2)  }
   0xc   : > { %7685 = vmatprep.subr.bf16.mxu0 (!%p338_p2), %v8058_v2  ;;  %v415_v31 = vld [vmem:[#allocation2 + $0x40] sm:$0x11] (!%p338_p2)  ;;  %429 = vst [vmem:[#allocation2 + $0x80] sm:$0x11] (!%p338_p2), %v428_v30  ;;  %457 = vst [vmem:[#allocation3] sm:$0xf] (!%p338_p2), %v8313_v45 }
   0xd   : > { %s10075_s18 = smov (!%p377_p3, %s6417_s18), 1  ;;  %v416_v32 = vsel %vm8429_vm7, 0, %v415_v31  ;;  %v445_v33 = vld [vmem:[#allocation2 + $0xe0] sm:$0x11]  ;;  %458 = vst [vmem:[#allocation3 + $0x4] sm:$0x1] %v8313_v45  ;;  %vm8589_vm10 = vmor %vm1616_vm8, %vm1617_vm9 }
   0xe   : > { %s7168_s25 = sshll.u32 %s10075_s18, 7  ;;  %417 = vst [vmem:[#allocation2 + $0x40] sm:$0x11] %v416_v32  ;;  %v446_v34 = vsel %vm8429_vm7, 0, %v445_v33  ;;  %v433_v35 = vld [vmem:[#allocation2 + $0xa0] sm:$0x11] }
   0xf   : > { %s8397_s28 = scalar_lea.vmem %s10050_s0, %s7168_s25  ;;  %7686 = vmatpush3.bf16.msra.mxu0 %v8058_v2  ;;  %447 = vst [vmem:[#allocation2 + $0xe0] sm:$0x11] %v446_v34  ;;  %v434_v36 = vsel %vm8429_vm7, 0, %v433_v35  ;;  %v451_v38 = vld [vmem:[#allocation2 + $0x100] sm:$0x11]  ;;  %v8086_v55 = vld [vmem:[%s10053_s3 + $0x128] sm:$0xff]  }
  0x10   : > { %v8059_v3 = vld [vmem:[%s8397_s28] sm:$0xff]   ;;  %v8060_v6 = vld [vmem:[%s8397_s28 + $0x8] sm:$0xff]   ;;  %v8061_v7 = vld [vmem:[%s8397_s28 + $0x10] sm:$0xff]   ;;  %7229 = vmatprep.subr.bf16.mxu0 %v8075_v4  ;;  %435 = vst [vmem:[#allocation2 + $0xa0] sm:$0x11] %v434_v36  ;;  %v452_v40 = vsel %vm8429_vm7, 0, %v451_v38 }
  0x11   : > { %7687 = vmatprep.mubr.msk.bf16.mxu0 %vm667_vm0, %v8059_v3  ;;  %v8062_v9 = vld [vmem:[%s8397_s28 + $0x18] sm:$0xff]   ;;  %v8063_v10 = vld [vmem:[%s8397_s28 + $0x20] sm:$0xff]   ;;  %v8064_v13 = vld [vmem:[%s8397_s28 + $0x28] sm:$0xff]   ;;  %453 = vst [vmem:[#allocation2 + $0x100] sm:$0x11] %v452_v40  ;;  %vm4677_vm15 = vcmask 1042432  }
  0x12   : > { %7688 = vmatmul.mubr.msk.bf16.vlgmr.msra.gmra.mrb[0].mxu0 %vm667_vm0, %v8060_v6  ;;  %v8065_v16 = vld [vmem:[%s8397_s28 + $0x30] sm:$0xff]   ;;  %v8066_v18 = vld [vmem:[%s8397_s28 + $0x38] sm:$0xff]   ;;  %v8067_v19 = vld [vmem:[%s8397_s28 + $0x40] sm:$0xff]   ;;  %460 = vst [vmem:[#allocation3 + $0x48] sm:$0xf] %v8313_v45  ;;  %s7169_s27 = sshll.u32 %s10075_s18, 6 }
  0x13   : > { %7691 = vmatprep.mubr.msk.bf16.mxu0 %vm667_vm0, %v8061_v7  ;;  %7230 = vmatpush3.bf16.msra.mxu0 %v8076_v5  ;;  %v8068_v20 = vld [vmem:[%s8397_s28 + $0x48] sm:$0xff]   ;;  %v8069_v21 = vld [vmem:[%s8397_s28 + $0x50] sm:$0xff]   ;;  %v8070_v22 = vld [vmem:[%s8397_s28 + $0x58] sm:$0xff]   ;;  %461 = vst [vmem:[#allocation3 + $0x4c] sm:$0x1] %v8313_v45  ;;  %s386_s13 = scalar_lea.vmem %s10061_s11, %s7169_s27 }
  0x14   : > { %7231 = vmatprep.subr.bf16.mxu0 %v8077_v8  ;;  %v8071_v23 = vld [vmem:[%s8397_s28 + $0x60] sm:$0xff]   ;;  %v8072_v24 = vld [vmem:[%s8397_s28 + $0x68] sm:$0xff]   ;;  %v8073_v25 = vld [vmem:[%s8397_s28 + $0x70] sm:$0xff]   ;;  %vm492_vm11 = vsmask.f32 7938 }
  0x15   : > { %v8074_v26 = vld [vmem:[%s8397_s28 + $0x78] sm:$0xff]   ;;  %v439_v41 = vld [vmem:[#allocation2 + $0xc0] sm:$0x11]  ;;  %v424_v48 = vld [vmem:[#allocation2 + $0x68] sm:$0x11] }
  0x16   : > { %v440_v42 = vsel %vm8429_vm7, 0, %v439_v41  ;;  %v8083_v46 = vld [vmem:[%s10053_s3 + $0x160] sm:$0xff]   ;;  %v425_v50 = vsel %vm8429_vm7, 0, %v424_v48  ;;  %v412_v51 = vld [vmem:[#allocation2 + $0x28] sm:$0x11]  ;;  %v8087_v62 = vld [vmem:[%s10053_s3 + $0x170] sm:$0xff]  }
  0x17   : > { %7232 = vmatpush3.bf16.msra.mxu0 %v8078_v11  ;;  %441 = vst [vmem:[#allocation2 + $0xc0] sm:$0x11] %v440_v42  ;;  %v8084_v47 = vld [vmem:[%s10053_s3 + $0x120] sm:$0xff]   ;;  %426 = vst [vmem:[#allocation2 + $0x68] sm:$0x11] %v425_v50  ;;  %v413_v54 = vsel %vm8429_vm7, 0, %v412_v51 }
  0x18   : > { %7233 = vmatprep.subr.bf16.mxu0 %v8079_v37  ;;  %v403_v49 = vld [vmem:[#allocation2] sm:$0x11]  ;;  %414 = vst [vmem:[#allocation2 + $0x28] sm:$0x11] %v413_v54  ;;  %v430_v56 = vld [vmem:[#allocation2 + $0x88] sm:$0x11]  ;;  %vm8608_vm13 = vmand %vm1026_vm12, %vm492_vm11 }
  0x19   : > { %v404_v52 = vsel %vm8429_vm7, 0, %v403_v49  ;;  %v431_v57 = vsel %vm8429_vm7, 0, %v430_v56  ;;  %v418_v58 = vld [vmem:[#allocation2 + $0x48] sm:$0x11]  ;;  %v397_v59 = vld [vmem:[#allocation2 + $0x10] sm:$0x11]  ;;  %vm9425_vm14 = vmand %vm390_vm1, %vm492_vm11 }
  0x1a   : > { %7692 = vmatmul.mubr.msk.bf16.gmra.mrb[4].mxu0 %vm667_vm0, %v8062_v9  ;;  %405 = vst [vmem:[#allocation2] sm:$0x11] %v404_v52  ;;  %432 = vst [vmem:[#allocation2 + $0x88] sm:$0x11] %v431_v57  ;;  %v419_v60 = vsel %vm8429_vm7, 0, %v418_v58  ;;  %v398_v61 = vsel %vm8429_vm7, 0, %v397_v59 }
  0x1b   : > { %7695 = vmatprep.mubr.msk.bf16.mxu0 %vm667_vm0, %v8063_v10  ;;  %7234 = vmatpush3.bf16.msra.mxu0 %v8080_v39  ;;  %420 = vst [vmem:[#allocation2 + $0x48] sm:$0x11] %v419_v60  ;;  %399 = vst [vmem:[#allocation2 + $0x10] sm:$0x11] %v398_v61  ;;  %v8088_v63 = vld [vmem:[%s10053_s3 + $0x130] sm:$0xff]   ;;  %v8089_v4 = vld [vmem:[%s10053_s3 + $0x178] sm:$0xff]  }
  0x1c   : > { %7235 = vmatprep.subr.bf16.mxu0 %v8081_v43  ;;  %v448_v0 = vld [vmem:[#allocation2 + $0xe8] sm:$0x11]  ;;  %v8090_v9 = vld [vmem:[%s10053_s3 + $0x138] sm:$0xff]   ;;  %v8091_v10 = vld [vmem:[%s10053_s3 + $0x1c0] sm:$0xff]  }
  0x1d   : > { %v449_v1 = vsel %vm8429_vm7, 0, %v448_v0  ;;  %v436_v2 = vld [vmem:[#allocation2 + $0xa8] sm:$0x11]  ;;  %v8093_v11 = vld [vmem:[%s10053_s3 + $0x3c0] sm:$0xff]   ;;  %v8101_v17 = vld [vmem:[%s10053_s3 + $0x3d0] sm:$0xff]  }
  0x1e   : > { %450 = vst [vmem:[#allocation2 + $0xe8] sm:$0x11] %v449_v1  ;;  %v454_v3 = vld [vmem:[#allocation2 + $0x108] sm:$0x11]  ;;  %v437_v5 = vsel %vm8429_vm7, 0, %v436_v2  ;;  %v8095_v12 = vld [vmem:[%s10053_s3 + $0x380] sm:$0xff]   ;;  %7509 = vmatprep.subr.bf16.mxu1 %v8093_v11 }
  0x1f   : > { %7236 = vmatpush3.bf16.msra.mxu0 %v8082_v44  ;;  %v455_v6 = vsel %vm8429_vm7, 0, %v454_v3  ;;  %v442_v7 = vld [vmem:[#allocation2 + $0xc8] sm:$0x11]  ;;  %438 = vst [vmem:[#allocation2 + $0xa8] sm:$0x11] %v437_v5  ;;  %7510 = vmatpush3.bf16.msra.mxu1 %v8095_v12  ;;  %v8117_v30 = vld [vmem:[%s10053_s3 + $0x3f0] sm:$0xff]  }
  0x20   : > { %7237 = vmatprep.subr.bf16.mxu0 %v8083_v46  ;;  %456 = vst [vmem:[#allocation2 + $0x108] sm:$0x11] %v455_v6  ;;  %v443_v8 = vsel %vm8429_vm7, 0, %v442_v7  ;;  %v400_v27 = vld [vmem:[#allocation2 + $0x18] sm:$0x11]  ;;  %v8119_v33 = vld [vmem:[%s10053_s3 + $0x3b0] sm:$0xff]  }
  0x21   : > { %444 = vst [vmem:[#allocation2 + $0xc8] sm:$0x11] %v443_v8  ;;  %v406_v28 = vld [vmem:[#allocation2 + $0x8] sm:$0x11]  ;;  %v401_v31 = vsel %vm8429_vm7, 0, %v400_v27  ;;  %v8121_v34 = vld [vmem:[%s10053_s3 + $0x3f8] sm:$0xff]  }
  0x22   : > { %7696 = vmatmul.mubr.msk.bf16.gmra.mrb[8].mxu0 %vm667_vm0, %v8064_v13  ;;  %v8097_v13 = vld [vmem:[%s10053_s3 + $0x3c8] sm:$0xff]   ;;  %v407_v32 = vsel %vm8429_vm7, 0, %v406_v28  ;;  %402 = vst [vmem:[#allocation2 + $0x18] sm:$0x11] %v401_v31  ;;  %v1600_v37 = vld [vmem:[#allocation2 + $0x10] sm:$0x11] }
  0x23   : > { %7699 = vmatprep.mubr.msk.bf16.mxu0 %vm667_vm0, %v8065_v16  ;;  %7238 = vmatpush3.bf16.msra.mxu0 %v8084_v47  ;;  %v8099_v16 = vld [vmem:[%s10053_s3 + $0x388] sm:$0xff]   ;;  %408 = vst [vmem:[#allocation2 + $0x8] sm:$0x11] %v407_v32  ;;  %v8123_v15 = vld [vmem:[%s10053_s3 + $0x3b8] sm:$0xff]   ;;  %v8584_v38 = vld [vmem:[%s10052_s2] ss:$0 sm:$0xff] }
  0x24   : > { %7239 = vmatprep.subr.bf16.mxu0 %v8085_v53  ;;  %7511 = vmatprep.subr.bf16.mxu1 %v8097_v13  ;;  %v1629_v40 = vshll.u32 %v1600_v37, 16  ;;  %v1040_v5 = vld [vmem:[#allocation2 + $0x60] sm:$0xf]  ;;  %v1043_v6 = vld [vmem:[#allocation2 + $0x70] sm:$0x1] }
  0x25   : > { %7512 = vmatpush3.bf16.msra.mxu1 %v8099_v16  ;;  %v1028_v12 = vld [vmem:[#allocation2 + $0x20] sm:$0xf] }
  0x26   : > { %7513 = vmatprep.subr.bf16.mxu1 %v8101_v17  ;;  %v1631_v48 = vrot.slane %v1629_v40, 5  ;;  %v8291_v52 = vld [vmem:[%s10057_s7 + $0x220] sm:$0xff]  }
  0x27   : > { %7240 = vmatpush3.bf16.msra.mxu0 %v8086_v55 }
  0x28   : > { %7241 = vmatprep.subr.bf16.mxu0 %v8087_v62 }
  0x29   : > { %v8593_v53 = vld [vmem:[#allocation2 + $0x18] sm:$0x11] }
  0x2a   : > { %7700 = vmatmul.mubr.msk.bf16.gmra.mrb[12].mxu0 %vm667_vm0, %v8066_v18  ;;  %v8103_v18 = vld [vmem:[%s10053_s3 + $0x390] sm:$0xff]   ;;  %v1521_v42 = vld [vmem:[#allocation2 + $0x8] sm:$0xff] }
  0x2b   : > { %7703 = vmatprep.mubr.msk.bf16.mxu0 %vm667_vm0, %v8067_v19  ;;  %7242 = vmatpush3.bf16.msra.mxu0 %v8088_v63  ;;  %v8105_v19 = vld [vmem:[%s10053_s3 + $0x3d8] sm:$0xff]   ;;  %v1634_v54 = vshrl.u32 %v1521_v42, 16  ;;  %v1637_v55 = vshll.u32 %v1521_v42, 16  ;;  %v1643_v63 = vshll.u32 %v8593_v53, 16  ;;  %v1037_v42 = vld [vmem:[#allocation2 + $0x50] sm:$0x1] }
  0x2c   : > { %7243 = vmatprep.subr.bf16.mxu0 %v8089_v4  ;;  %7514 = vmatpush3.bf16.msra.mxu1 %v8103_v18 }
  0x2d   : > { %7515 = vmatprep.subr.bf16.mxu1 %v8105_v19  ;;  %v8601_v2 = vrot.slane %v1634_v54, 4  ;;  %v8603_v3 = vrot.slane %v1637_v55, 5 }
  0x2f   : > { %7244 = vmatpush3.bf16.msra.mxu0 %v8090_v9 }
  0x30   : > { %7269 = vmatprep.subr.bf16.mxu0 %v8091_v10 }
  0x32   : > { %7704 = vmatmul.mubr.msk.bf16.gmra.mrb[16].mxu0 %vm667_vm0, %v8068_v20  ;;  %v8107_v20 = vld [vmem:[%s10053_s3 + $0x398] sm:$0xff]  }
  0x33   : > { %7707 = vmatprep.mubr.msk.bf16.mxu0 %vm667_vm0, %v8069_v21  ;;  %v8109_v21 = vld [vmem:[%s10053_s3 + $0x3e0] sm:$0xff]   ;;  %7516 = vmatpush3.bf16.msra.mxu1 %v8107_v20 }
  0x34   : > { %7517 = vmatprep.subr.bf16.mxu1 %v8109_v21  ;;  %v1031_v21 = vld [vmem:[#allocation2 + $0x30] sm:$0x1] }
  0x3a   : > { %7708 = vmatmul.mubr.msk.bf16.gmra.mrb[20].mxu0 %vm667_vm0, %v8070_v22  ;;  %v8111_v22 = vld [vmem:[%s10053_s3 + $0x3a0] sm:$0xff]  }
  0x3b   : > { %7711 = vmatprep.mubr.msk.bf16.mxu0 %vm667_vm0, %v8071_v23  ;;  %v1520_v23 = vld [vmem:[#allocation2] sm:$0xff]  ;;  %7518 = vmatpush3.bf16.msra.mxu1 %v8111_v22 }
  0x3c   : > { %v1623_v29 = vshll.u32 %v1520_v23, 16 }
  0x3e   : > { %v1625_v36 = vrot.slane %v1623_v29, 5  ;;  %v1046_v29 = vld [vmem:[#allocation2 + $0x80] sm:$0xf] }
  0x42   : > { %7712 = vmatmul.mubr.msk.bf16.gmra.mrb[24].mxu0 %vm667_vm0, %v8072_v24  ;;  %v8113_v24 = vld [vmem:[%s10053_s3 + $0x3e8] sm:$0xff]  }
  0x43   : > { %7715 = vmatprep.mubr.msk.bf16.mxu0 %vm667_vm0, %v8073_v25  ;;  %v1620_v25 = vshrl.u32 %v1520_v23, 16  ;;  %7519 = vmatprep.subr.bf16.mxu1 %v8113_v24 }
  0x45   : > { %v1622_v35 = vrot.slane %v1620_v25, 4 }
  0x47   : > { %v1626_v39 = vor.u32 %v1625_v36, %v1622_v35 }
  0x49   : > { %v1627_v47 = vrot.slane %v1626_v39, 4 }
  0x4a   : > { %7716 = vmatmul.mubr.msk.bf16.gmra.mrb[28].mxu0 %vm667_vm0, %v8074_v26  ;;  %v8115_v26 = vld [vmem:[%s10053_s3 + $0x3a8] sm:$0xff]   ;;  %vm4678_vm0 = vcmask 1046532  }
  0x4b   : > { %7520 = vmatpush3.bf16.msra.mxu1 %v8115_v26  ;;  %v8598_v62 = vsel %vm8589_vm10, %v1627_v47, %v1631_v48  ;;  %vm9654_vm1 = vmor %vm4677_vm15, %vm4678_vm0 }
  0x4c   : > { %7521 = vmatprep.subr.bf16.mxu1 %v8117_v30 }
  0x4f   : > { %7522 = vmatpush3.bf16.msra.mxu1 %v8119_v33 }
  0x50   : > { %7523 = vmatprep.subr.bf16.mxu1 %v8121_v34  ;;  %v1049_v34 = vld [vmem:[#allocation2 + $0x90] sm:$0x1] }
  0x53   : > { %7524 = vmatpush3.bf16.msra.mxu1 %v8123_v15 }
  0xe5   : > { %v7689_v41 = vpop.f32.mrb[0].mxu0 }
  0xe6   : > { %v759_v43 = vadd.f32 %v7689_v41, %v8584_v38  ;;  %v750_v44 = vpop.f32.mrb[1].mxu0  ;;  %v1034_v41 = vld [vmem:[#allocation2 + $0x40] sm:$0xf] }
  0xe7   : > { %v751_v45 = vadd.f32 %v8584_v38, %v750_v44  ;;  %v7690_v46 = vpop.f32.mrb[2].mxu0 }
  0xe8   : > { %v879_v49 = vmax.f32 %v759_v43, 0.0  ;;  %v762_v50 = vadd.f32 %v7690_v46, %v8584_v38  ;;  %v753_v51 = vpop.f32.mrb[3].mxu0 }
  0xe9   : > { %v877_v56 = vmax.f32 %v751_v45, 0.0  ;;  %v754_v57 = vadd.f32 %v8584_v38, %v753_v51 }
  0xea   : > { %v7172_v58 = vpack.c.bf16 %v879_v49, %v879_v49  ;;  %v880_v59 = vmax.f32 %v762_v50, 0.0 }
  0xeb   : > { %v7170_v60 = vpack.c.bf16 %v877_v56, %v877_v56  ;;  %v878_v61 = vmax.f32 %v754_v57, 0.0 }
  0xec   : > { %v962_v0 = vshrl.u32 %v7172_v58, 16  ;;  %v7173_v1 = vpack.c.bf16 %v880_v59, %v880_v59  ;;  %v965_v4 = vshll.u32 %v7172_v58, 16 }
  0xed   : > { %v946_v7 = vshrl.u32 %v7170_v60, 16  ;;  %v949_v8 = vshll.u32 %v7170_v60, 16  ;;  %v7171_v9 = vpack.c.bf16 %v878_v61, %v878_v61  ;;  %v7693_v10 = vpop.f32.mrb[4].mxu0 }
  0xee   : > { %v964_v11 = vrot.slane %v962_v0, 7  ;;  %v970_v13 = vshrl.u32 %v7173_v1, 16  ;;  %v973_v16 = vshll.u32 %v7173_v1, 16  ;;  %v775_v17 = vadd.f32 %v7693_v10, %v8584_v38  ;;  %v766_v18 = vpop.f32.mrb[5].mxu0  ;;  %v1064_v1 = vld [vmem:[#allocation2 + $0xe0] sm:$0xf] }
  0xef   : > { %v948_v20 = vrot.slane %v946_v7, 7  ;;  %v954_v22 = vshrl.u32 %v7171_v9, 16  ;;  %v957_v23 = vshll.u32 %v7171_v9, 16  ;;  %v767_v24 = vadd.f32 %v8584_v38, %v766_v18  ;;  %v7694_v25 = vpop.f32.mrb[6].mxu0  ;;  %v1067_v10 = vld [vmem:[#allocation2 + $0xf0] sm:$0x1] }
  0xf0   : > { %v967_v26 = vor.u32 %v965_v4, %v964_v11  ;;  %v968_v27 = vrot.slane %v964_v11, 4  ;;  %v972_v28 = vrot.slane %v970_v13, 7  ;;  %v883_v30 = vmax.f32 %v775_v17, 0.0  ;;  %v769_v31 = vpop.f32.mrb[7].mxu0  ;;  %v1052_v17 = vld [vmem:[#allocation2 + $0xa0] sm:$0xf] }
  0xf1   : > { %v951_v32 = vor.u32 %v949_v8, %v948_v20  ;;  %v952_v33 = vrot.slane %v948_v20, 4  ;;  %v956_v35 = vrot.slane %v954_v22, 7  ;;  %v881_v36 = vmax.f32 %v767_v24, 0.0  ;;  %v1055_v18 = vld [vmem:[#allocation2 + $0xb0] sm:$0x1] }
  0xf2   : > { %v1041_v37 = vsel %vm8608_vm13, %v967_v26, %v1040_v5  ;;  %v1044_v15 = vsel %vm8423_vm5, %v968_v27, %v1043_v6  ;;  %v975_v39 = vor.u32 %v973_v16, %v972_v28  ;;  %v976_v40 = vrot.slane %v972_v28, 4 }
  0xf3   : > { %1042 = vst [vmem:[#allocation2 + $0x60] sm:$0xf] %v1041_v37  ;;  %1045 = vst [vmem:[#allocation2 + $0x70] sm:$0x1] %v1044_v15  ;;  %v1029_v43 = vsel %vm8608_vm13, %v951_v32, %v1028_v12  ;;  %v1032_v44 = vsel %vm8423_vm5, %v952_v33, %v1031_v21  ;;  %v959_v45 = vor.u32 %v957_v23, %v956_v35  ;;  %v960_v46 = vrot.slane %v956_v35, 4 }
  0xf4   : > { %1030 = vst [vmem:[#allocation2 + $0x20] sm:$0xf] %v1029_v43  ;;  %1033 = vst [vmem:[#allocation2 + $0x30] sm:$0x1] %v1032_v44  ;;  %v1047_v47 = vsel %vm8608_vm13, %v975_v39, %v1046_v29  ;;  %v1050_v48 = vsel %vm8423_vm5, %v976_v40, %v1049_v34  ;;  %v7176_v49 = vpack.c.bf16 %v883_v30, %v883_v30  ;;  %v8633_v0 = vrot.slane %v1643_v63, 5 }
  0xf5   : > { %v7174_v50 = vpack.c.bf16 %v881_v36, %v881_v36  ;;  %1048 = vst [vmem:[#allocation2 + $0x80] sm:$0xf] %v1047_v47  ;;  %1051 = vst [vmem:[#allocation2 + $0x90] sm:$0x1] %v1050_v48  ;;  %v1035_v51 = vsel %vm8608_vm13, %v959_v45, %v1034_v41  ;;  %v1038_v54 = vsel %vm8423_vm5, %v960_v46, %v1037_v42  ;;  %v7697_v57 = vpop.f32.mrb[8].mxu0 }
  0xf6   : > { %v778_v55 = vadd.f32 %v7694_v25, %v8584_v38  ;;  %v770_v56 = vadd.f32 %v8584_v38, %v769_v31  ;;  %1036 = vst [vmem:[#allocation2 + $0x40] sm:$0xf] %v1035_v51  ;;  %1039 = vst [vmem:[#allocation2 + $0x50] sm:$0x1] %v1038_v54  ;;  %v994_v58 = vshrl.u32 %v7176_v49, 16  ;;  %v997_v59 = vshll.u32 %v7176_v49, 16 }
  0xf7   : > { %v978_v60 = vshrl.u32 %v7174_v50, 16  ;;  %v782_v61 = vpop.f32.mrb[9].mxu0  ;;  %v791_v6 = vadd.f32 %v7697_v57, %v8584_v38  ;;  %v981_v12 = vshll.u32 %v7174_v50, 16  ;;  %v1070_v34 = vld [vmem:[#allocation2 + $0x100] sm:$0xf]  ;;  %v1640_v47 = vor.u32 %v8603_v3, %v8601_v2 }
  0xf8   : > { %v884_v4 = vmax.f32 %v778_v55, 0.0  ;;  %v882_v5 = vmax.f32 %v770_v56, 0.0  ;;  %v783_v7 = vadd.f32 %v8584_v38, %v782_v61  ;;  %v7698_v8 = vpop.f32.mrb[10].mxu0  ;;  %v996_v9 = vrot.slane %v994_v58, 7  ;;  %v1073_v36 = vld [vmem:[#allocation2 + $0x110] sm:$0x1] }
  0xf9   : > { %v980_v11 = vrot.slane %v978_v60, 7  ;;  %v794_v13 = vadd.f32 %v7698_v8, %v8584_v38  ;;  %v785_v16 = vpop.f32.mrb[11].mxu0  ;;  %v887_v20 = vmax.f32 %v791_v6, 0.0  ;;  %v1058_v41 = vld [vmem:[#allocation2 + $0xc0] sm:$0xf] }
  0xfa   : > { %v7177_v53 = vpack.c.bf16 %v884_v4, %v884_v4  ;;  %v7175_v63 = vpack.c.bf16 %v882_v5, %v882_v5  ;;  %v885_v21 = vmax.f32 %v783_v7, 0.0  ;;  %v999_v22 = vor.u32 %v997_v59, %v996_v9  ;;  %v1061_v42 = vld [vmem:[#allocation2 + $0xd0] sm:$0x1]  ;;  %v1188_v5 = vld [vmem:[#allocation2 + $0x64] sm:$0xf] }
  0xfb   : > { %v1000_v23 = vrot.slane %v996_v9, 4  ;;  %v983_v24 = vor.u32 %v981_v12, %v980_v11  ;;  %v984_v25 = vrot.slane %v980_v11, 4  ;;  %v7180_v15 = vpack.c.bf16 %v887_v20, %v887_v20  ;;  %v1191_v7 = vld [vmem:[#allocation2 + $0x74] sm:$0x1]  ;;  %v1176_v11 = vld [vmem:[#allocation2 + $0x24] sm:$0xf] }
  0xfc   : > { %v1002_v26 = vshrl.u32 %v7177_v53, 16  ;;  %v1005_v27 = vshll.u32 %v7177_v53, 16  ;;  %v986_v28 = vshrl.u32 %v7175_v63, 16  ;;  %v989_v29 = vshll.u32 %v7175_v63, 16  ;;  %v1179_v12 = vld [vmem:[#allocation2 + $0x34] sm:$0x1] }
  0xfd   : > { %v1065_v30 = vsel %vm8608_vm13, %v999_v22, %v1064_v1  ;;  %v1068_v31 = vsel %vm8423_vm5, %v1000_v23, %v1067_v10  ;;  %v1053_v32 = vsel %vm8608_vm13, %v983_v24, %v1052_v17  ;;  %v1056_v33 = vsel %vm8423_vm5, %v984_v25, %v1055_v18  ;;  %v7701_v40 = vpop.f32.mrb[12].mxu0 }
  0xfe   : > { %1066 = vst [vmem:[#allocation2 + $0xe0] sm:$0xf] %v1065_v30  ;;  %1069 = vst [vmem:[#allocation2 + $0xf0] sm:$0x1] %v1068_v31  ;;  %v1004_v35 = vrot.slane %v1002_v26, 7  ;;  %v988_v37 = vrot.slane %v986_v28, 7  ;;  %v7178_v39 = vpack.c.bf16 %v885_v21, %v885_v21  ;;  %v786_v44 = vadd.f32 %v8584_v38, %v785_v16 }
  0xff   : > { %1054 = vst [vmem:[#allocation2 + $0xa0] sm:$0xf] %v1053_v32  ;;  %1057 = vst [vmem:[#allocation2 + $0xb0] sm:$0x1] %v1056_v33  ;;  %v888_v43 = vmax.f32 %v794_v13, 0.0  ;;  %v807_v45 = vadd.f32 %v7701_v40, %v8584_v38  ;;  %v798_v46 = vpop.f32.mrb[13].mxu0 }
 0x100   : > { %v1007_v48 = vor.u32 %v1005_v27, %v1004_v35  ;;  %v1008_v49 = vrot.slane %v1004_v35, 4  ;;  %v991_v50 = vor.u32 %v989_v29, %v988_v37  ;;  %v992_v51 = vrot.slane %v988_v37, 4  ;;  %v7702_v54 = vpop.f32.mrb[14].mxu0  ;;  %v1194_v31 = vld [vmem:[#allocation2 + $0x84] sm:$0xf] }
 0x101   : > { %v1113_v55 = vshrl.u32 %v7180_v15, 16  ;;  %v1116_v56 = vshll.u32 %v7180_v15, 16  ;;  %v1097_v57 = vshrl.u32 %v7178_v39, 16  ;;  %v1100_v58 = vshll.u32 %v7178_v39, 16  ;;  %v801_v59 = vpop.f32.mrb[15].mxu0 }
 0x102   : > { %v1071_v60 = vsel %vm8608_vm13, %v1007_v48, %v1070_v34  ;;  %v1074_v61 = vsel %vm8423_vm5, %v1008_v49, %v1073_v36  ;;  %v1059_v1 = vsel %vm8608_vm13, %v991_v50, %v1058_v41  ;;  %v1062_v4 = vsel %vm8423_vm5, %v992_v51, %v1061_v42  ;;  %v1197_v32 = vld [vmem:[#allocation2 + $0x94] sm:$0x1]  ;;  %v1182_v49 = vld [vmem:[#allocation2 + $0x44] sm:$0xf] }
 0x103   : > { %1072 = vst [vmem:[#allocation2 + $0x100] sm:$0xf] %v1071_v60  ;;  %1075 = vst [vmem:[#allocation2 + $0x110] sm:$0x1] %v1074_v61  ;;  %v1115_v6 = vrot.slane %v1113_v55, 7  ;;  %v1099_v8 = vrot.slane %v1097_v57, 7  ;;  %v7181_v9 = vpack.c.bf16 %v888_v43, %v888_v43  ;;  %v799_v16 = vadd.f32 %v8584_v38, %v798_v46 }
 0x104   : > { %1060 = vst [vmem:[#allocation2 + $0xc0] sm:$0xf] %v1059_v1  ;;  %1063 = vst [vmem:[#allocation2 + $0xd0] sm:$0x1] %v1062_v4  ;;  %v886_v10 = vmax.f32 %v786_v44, 0.0  ;;  %v891_v13 = vmax.f32 %v807_v45, 0.0  ;;  %v810_v17 = vadd.f32 %v7702_v54, %v8584_v38  ;;  %v802_v18 = vadd.f32 %v8584_v38, %v801_v59 }
 0x105   : > { %v1118_v53 = vor.u32 %v1116_v56, %v1115_v6  ;;  %v1119_v63 = vrot.slane %v1115_v6, 4  ;;  %v1102_v20 = vor.u32 %v1100_v58, %v1099_v8  ;;  %v1103_v21 = vrot.slane %v1099_v8, 4  ;;  %v7705_v26 = vpop.f32.mrb[16].mxu0  ;;  %v1185_v50 = vld [vmem:[#allocation2 + $0x54] sm:$0x1] }
 0x106   : > { %v1121_v22 = vshrl.u32 %v7181_v9, 16  ;;  %v1124_v23 = vshll.u32 %v7181_v9, 16  ;;  %v7179_v24 = vpack.c.bf16 %v886_v10, %v886_v10  ;;  %v7184_v25 = vpack.c.bf16 %v891_v13, %v891_v13  ;;  %v814_v33 = vpop.f32.mrb[17].mxu0  ;;  %v1212_v61 = vld [vmem:[#allocation2 + $0xe4] sm:$0xf] }
 0x107   : > { %v1189_v27 = vsel %vm8608_vm13, %v1118_v53, %v1188_v5  ;;  %v1192_v28 = vsel %vm8423_vm5, %v1119_v63, %v1191_v7  ;;  %v1177_v29 = vsel %vm8608_vm13, %v1102_v20, %v1176_v11  ;;  %v1180_v30 = vsel %vm8423_vm5, %v1103_v21, %v1179_v12  ;;  %v7706_v15 = vpop.f32.mrb[18].mxu0  ;;  %v1215_v1 = vld [vmem:[#allocation2 + $0xf4] sm:$0x1]  ;;  %v1200_v10 = vld [vmem:[#allocation2 + $0xa4] sm:$0xf] }
 0x108   : > { %1190 = vst [vmem:[#allocation2 + $0x64] sm:$0xf] %v1189_v27  ;;  %1193 = vst [vmem:[#allocation2 + $0x74] sm:$0x1] %v1192_v28  ;;  %v1123_v34 = vrot.slane %v1121_v22, 7  ;;  %v1105_v35 = vshrl.u32 %v7179_v24, 16  ;;  %v823_v56 = vadd.f32 %v7705_v26, %v8584_v38 }
 0x109   : > { %1178 = vst [vmem:[#allocation2 + $0x24] sm:$0xf] %v1177_v29  ;;  %1181 = vst [vmem:[#allocation2 + $0x34] sm:$0x1] %v1180_v30  ;;  %v1108_v36 = vshll.u32 %v7179_v24, 16  ;;  %v1145_v37 = vshrl.u32 %v7184_v25, 16 }
 0x10a   : > { %v1148_v39 = vshll.u32 %v7184_v25, 16  ;;  %v889_v40 = vmax.f32 %v799_v16, 0.0  ;;  %v892_v41 = vmax.f32 %v810_v17, 0.0  ;;  %v890_v42 = vmax.f32 %v802_v18, 0.0  ;;  %v8669_v43 = vpop.f32.mrb[19].mxu0 }
 0x10b   : > { %v1126_v44 = vor.u32 %v1124_v23, %v1123_v34  ;;  %v1127_v45 = vrot.slane %v1123_v34, 4  ;;  %v1107_v46 = vrot.slane %v1105_v35, 7  ;;  %v1147_v48 = vrot.slane %v1145_v37, 7  ;;  %v1203_v53 = vld [vmem:[#allocation2 + $0xb4] sm:$0x1] }
 0x10c   : > { %v7182_v51 = vpack.c.bf16 %v889_v40, %v889_v40  ;;  %v7185_v54 = vpack.c.bf16 %v892_v41, %v892_v41  ;;  %v7183_v55 = vpack.c.bf16 %v890_v42, %v890_v42  ;;  %v1218_v22 = vld [vmem:[#allocation2 + $0x104] sm:$0xf]  ;;  %v895_v24 = vmax.f32 %v823_v56, 0.0  ;;  %v1221_v29 = vld [vmem:[#allocation2 + $0x114] sm:$0x1] }
 0x10d   : > { %v1195_v57 = vsel %vm8608_vm13, %v1126_v44, %v1194_v31  ;;  %v1198_v58 = vsel %vm8423_vm5, %v1127_v45, %v1197_v32  ;;  %v1110_v59 = vor.u32 %v1108_v36, %v1107_v46  ;;  %v1111_v60 = vrot.slane %v1107_v46, 4  ;;  %v7709_v13 = vpop.f32.mrb[20].mxu0  ;;  %v1206_v36 = vld [vmem:[#allocation2 + $0xc4] sm:$0xf]  ;;  %v1209_v37 = vld [vmem:[#allocation2 + $0xd4] sm:$0x1] }
 0x10e   : > { %1196 = vst [vmem:[#allocation2 + $0x84] sm:$0xf] %v1195_v57  ;;  %1199 = vst [vmem:[#allocation2 + $0x94] sm:$0x1] %v1198_v58  ;;  %v1150_v4 = vor.u32 %v1148_v39, %v1147_v48  ;;  %v1151_v5 = vrot.slane %v1147_v48, 4  ;;  %v1129_v6 = vshrl.u32 %v7182_v51, 16  ;;  %v815_v25 = vadd.f32 %v8584_v38, %v814_v33 }
 0x10f   : > { %v1132_v7 = vshll.u32 %v7182_v51, 16  ;;  %v1183_v8 = vsel %vm8608_vm13, %v1110_v59, %v1182_v49  ;;  %v1186_v9 = vsel %vm8423_vm5, %v1111_v60, %v1185_v50  ;;  %v1153_v11 = vshrl.u32 %v7185_v54, 16  ;;  %v830_v20 = vpop.f32.mrb[21].mxu0  ;;  %v1336_v56 = vld [vmem:[#allocation2 + $0x68] sm:$0xf] }
 0x110   : > { %v1156_v12 = vshll.u32 %v7185_v54, 16  ;;  %1184 = vst [vmem:[#allocation2 + $0x44] sm:$0xf] %v1183_v8  ;;  %1187 = vst [vmem:[#allocation2 + $0x54] sm:$0x1] %v1186_v9  ;;  %v1213_v16 = vsel %vm8608_vm13, %v1150_v4, %v1212_v61  ;;  %v1216_v17 = vsel %vm8423_vm5, %v1151_v5, %v1215_v1  ;;  %v1131_v18 = vrot.slane %v1129_v6, 7 }
 0x111   : > { %v1137_v63 = vshrl.u32 %v7183_v55, 16  ;;  %1214 = vst [vmem:[#allocation2 + $0xe4] sm:$0xf] %v1213_v16  ;;  %1217 = vst [vmem:[#allocation2 + $0xf4] sm:$0x1] %v1216_v17  ;;  %v1155_v21 = vrot.slane %v1153_v11, 7  ;;  %v826_v31 = vadd.f32 %v7706_v15, %v8584_v38  ;;  %v7188_v39 = vpack.c.bf16 %v895_v24, %v895_v24 }
 0x112   : > { %v1140_v23 = vshll.u32 %v7183_v55, 16  ;;  %v7710_v26 = vpop.f32.mrb[22].mxu0  ;;  %v1134_v27 = vor.u32 %v1132_v7, %v1131_v18  ;;  %v1135_v28 = vrot.slane %v1131_v18, 4  ;;  %v893_v40 = vmax.f32 %v815_v25, 0.0  ;;  %v1339_v61 = vld [vmem:[#allocation2 + $0x78] sm:$0x1] }
 0x113   : > { %v1139_v30 = vrot.slane %v1137_v63, 7  ;;  %v8686_v32 = vpop.f32.mrb[23].mxu0  ;;  %v1158_v34 = vor.u32 %v1156_v12, %v1155_v21  ;;  %v1159_v35 = vrot.slane %v1155_v21, 4  ;;  %v1261_v46 = vshrl.u32 %v7188_v39, 16  ;;  %v1327_v21 = vld [vmem:[#allocation2 + $0x38] sm:$0x1] }
 0x114   : > { %v1201_v41 = vsel %vm8608_vm13, %v1134_v27, %v1200_v10  ;;  %v1204_v33 = vsel %vm8423_vm5, %v1135_v28, %v1203_v53  ;;  %v1264_v48 = vshll.u32 %v7188_v39, 16  ;;  %v7186_v51 = vpack.c.bf16 %v893_v40, %v893_v40  ;;  %v1342_v27 = vld [vmem:[#allocation2 + $0x88] sm:$0xf] }
 0x115   : > { %v1142_v42 = vor.u32 %v1140_v23, %v1139_v30  ;;  %v1143_v44 = vrot.slane %v1139_v30, 4  ;;  %1202 = vst [vmem:[#allocation2 + $0xa4] sm:$0xf] %v1201_v41  ;;  %1205 = vst [vmem:[#allocation2 + $0xb4] sm:$0x1] %v1204_v33  ;;  %v1219_v15 = vsel %vm8608_vm13, %v1158_v34, %v1218_v22  ;;  %v1222_v45 = vsel %vm8423_vm5, %v1159_v35, %v1221_v29  ;;  %v8704_v60 = vpop.f32.mrb[24].mxu0 }
 0x116   : > { %1220 = vst [vmem:[#allocation2 + $0x104] sm:$0xf] %v1219_v15  ;;  %1223 = vst [vmem:[#allocation2 + $0x114] sm:$0x1] %v1222_v45  ;;  %v896_v54 = vmax.f32 %v826_v31, 0.0  ;;  %v1263_v55 = vrot.slane %v1261_v46, 7  ;;  %v818_v57 = vadd.f32 %v8584_v38, %v8669_v43  ;;  %v839_v58 = vadd.f32 %v7709_v13, %v8584_v38 }
 0x117   : > { %v1207_v49 = vsel %vm8608_vm13, %v1142_v42, %v1206_v36  ;;  %v1210_v50 = vsel %vm8423_vm5, %v1143_v44, %v1209_v37  ;;  %v831_v59 = vadd.f32 %v8584_v38, %v830_v20  ;;  %v1245_v1 = vshrl.u32 %v7186_v51, 16  ;;  %v8707_v7 = vpop.f32.mrb[25].mxu0  ;;  %v1324_v20 = vld [vmem:[#allocation2 + $0x28] sm:$0xf]  ;;  %v1345_v29 = vld [vmem:[#allocation2 + $0x98] sm:$0x1] }
 0x118   : > { %1208 = vst [vmem:[#allocation2 + $0xc4] sm:$0xf] %v1207_v49  ;;  %1211 = vst [vmem:[#allocation2 + $0xd4] sm:$0x1] %v1210_v50  ;;  %v1248_v4 = vshll.u32 %v7186_v51, 16  ;;  %v7189_v5 = vpack.c.bf16 %v896_v54, %v896_v54  ;;  %v842_v6 = vadd.f32 %v7710_v26, %v8584_v38  ;;  %v1266_v8 = vor.u32 %v1264_v48, %v1263_v55  ;;  %v8709_v12 = vpop.f32.mrb[26].mxu0 }
 0x119   : > { %v1267_v9 = vrot.slane %v1263_v55, 4  ;;  %v894_v10 = vmax.f32 %v818_v57, 0.0  ;;  %v899_v11 = vmax.f32 %v839_v58, 0.0  ;;  %v1247_v43 = vrot.slane %v1245_v1, 7  ;;  %v8711_v18 = vpop.f32.mrb[27].mxu0 }
 0x11a   : > { %v1269_v13 = vshrl.u32 %v7189_v5, 16  ;;  %v1272_v16 = vshll.u32 %v7189_v5, 16  ;;  %v897_v17 = vmax.f32 %v831_v59, 0.0  ;;  %v1337_v53 = vsel %vm8608_vm13, %v1266_v8, %v1336_v56  ;;  %v1330_v41 = vld [vmem:[#allocation2 + $0x48] sm:$0xf] }
 0x11b   : > { %v1340_v63 = vsel %vm8423_vm5, %v1267_v9, %v1339_v61  ;;  %v7187_v22 = vpack.c.bf16 %v894_v10, %v894_v10  ;;  %v7192_v23 = vpack.c.bf16 %v899_v11, %v899_v11  ;;  %1338 = vst [vmem:[#allocation2 + $0x68] sm:$0xf] %v1337_v53  ;;  %v1250_v24 = vor.u32 %v1248_v4, %v1247_v43  ;;  %v1333_v33 = vld [vmem:[#allocation2 + $0x58] sm:$0x1]  ;;  %v1360_v50 = vld [vmem:[#allocation2 + $0xe8] sm:$0xf] }
 0x11c   : > { %1341 = vst [vmem:[#allocation2 + $0x78] sm:$0x1] %v1340_v63  ;;  %v1251_v25 = vrot.slane %v1247_v43, 4  ;;  %v1271_v26 = vrot.slane %v1269_v13, 7  ;;  %v7190_v28 = vpack.c.bf16 %v897_v17, %v897_v17  ;;  %v1363_v51 = vld [vmem:[#allocation2 + $0xf8] sm:$0x1]  ;;  %v834_v55 = vadd.f32 %v8584_v38, %v8686_v32 }
 0x11d   : > { %v1253_v30 = vshrl.u32 %v7187_v22, 16  ;;  %v1256_v31 = vshll.u32 %v7187_v22, 16  ;;  %v1293_v34 = vshrl.u32 %v7192_v23, 16  ;;  %v1296_v35 = vshll.u32 %v7192_v23, 16  ;;  %v8721_v46 = vpop.f32.mrb[28].mxu0  ;;  %v8745_v17 = vld [vmem:[#allocation2 + $0x20] sm:$0xff] }
 0x11e   : > { %v1325_v36 = vsel %vm8608_vm13, %v1250_v24, %v1324_v20  ;;  %v1328_v37 = vsel %vm8423_vm5, %v1251_v25, %v1327_v21  ;;  %v1274_v39 = vor.u32 %v1272_v16, %v1271_v26  ;;  %v1275_v40 = vrot.slane %v1271_v26, 4  ;;  %v8729_v56 = vpop.f32.mrb[29].mxu0  ;;  %v1348_v13 = vld [vmem:[#allocation2 + $0xa8] sm:$0xf]  ;;  %v1351_v16 = vld [vmem:[#allocation2 + $0xb8] sm:$0x1] }
 0x11f   : > { %1326 = vst [vmem:[#allocation2 + $0x28] sm:$0xf] %v1325_v36  ;;  %1329 = vst [vmem:[#allocation2 + $0x38] sm:$0x1] %v1328_v37  ;;  %v1255_v42 = vrot.slane %v1253_v30, 7  ;;  %v1295_v44 = vrot.slane %v1293_v34, 7  ;;  %v855_v9 = vadd.f32 %v8704_v60, %v8584_v38  ;;  %v847_v23 = vadd.f32 %v8584_v38, %v8707_v7 }
 0x120   : > { %v1277_v15 = vshrl.u32 %v7190_v28, 16  ;;  %v1280_v45 = vshll.u32 %v7190_v28, 16  ;;  %v1343_v48 = vsel %vm8608_vm13, %v1274_v39, %v1342_v27  ;;  %v1346_v49 = vsel %vm8423_vm5, %v1275_v40, %v1345_v29  ;;  %v8731_v1 = vpop.f32.mrb[30].mxu0  ;;  %v1366_v28 = vld [vmem:[#allocation2 + $0x108] sm:$0xf] }
 0x121   : > { %v900_v54 = vmax.f32 %v842_v6, 0.0  ;;  %1344 = vst [vmem:[#allocation2 + $0x88] sm:$0xf] %v1343_v48  ;;  %1347 = vst [vmem:[#allocation2 + $0x98] sm:$0x1] %v1346_v49  ;;  %v1258_v57 = vor.u32 %v1256_v31, %v1255_v42  ;;  %v1259_v58 = vrot.slane %v1255_v42, 4  ;;  %v1298_v59 = vor.u32 %v1296_v35, %v1295_v44 }
 0x122   : > { %v1299_v61 = vrot.slane %v1295_v44, 4  ;;  %v1279_v4 = vrot.slane %v1277_v15, 7  ;;  %v898_v8 = vmax.f32 %v834_v55, 0.0  ;;  %v8735_v6 = vpop.f32.mrb[31].mxu0  ;;  %v903_v22 = vmax.f32 %v855_v9, 0.0 }
 0x123   : > { %v7193_v5 = vpack.c.bf16 %v900_v54, %v900_v54  ;;  %v1331_v32 = vsel %vm8608_vm13, %v1258_v57, %v1330_v41  ;;  %v1334_v10 = vsel %vm8423_vm5, %v1259_v58, %v1333_v33  ;;  %v1361_v11 = vsel %vm8608_vm13, %v1298_v59, %v1360_v50  ;;  %v1369_v30 = vld [vmem:[#allocation2 + $0x118] sm:$0x1]  ;;  %v1484_v49 = vld [vmem:[#allocation2 + $0x6c] sm:$0xf]  ;;  %v1487_v50 = vld [vmem:[#allocation2 + $0x7c] sm:$0x1] }
 0x124   : > { %v1364_v43 = vsel %vm8423_vm5, %v1299_v61, %v1363_v51  ;;  %1332 = vst [vmem:[#allocation2 + $0x48] sm:$0xf] %v1331_v32  ;;  %1335 = vst [vmem:[#allocation2 + $0x58] sm:$0x1] %v1334_v10  ;;  %v1282_v60 = vor.u32 %v1280_v45, %v1279_v4  ;;  %v1283_v53 = vrot.slane %v1279_v4, 4  ;;  %v7191_v21 = vpack.c.bf16 %v898_v8, %v898_v8  ;;  %v8761_v32 = vld [vmem:[#allocation2 + $0x40] sm:$0xff] }
 0x125   : > { %1362 = vst [vmem:[#allocation2 + $0xe8] sm:$0xf] %v1361_v11  ;;  %1365 = vst [vmem:[#allocation2 + $0xf8] sm:$0x1] %v1364_v43  ;;  %v1301_v63 = vshrl.u32 %v7193_v5, 16  ;;  %v1304_v20 = vshll.u32 %v7193_v5, 16  ;;  %v858_v24 = vadd.f32 %v8709_v12, %v8584_v38  ;;  %v7196_v35 = vpack.c.bf16 %v903_v22, %v903_v22 }
 0x126   : > { %v1349_v25 = vsel %vm8608_vm13, %v1282_v60, %v1348_v13  ;;  %v1352_v26 = vsel %vm8423_vm5, %v1283_v53, %v1351_v16  ;;  %v1648_v29 = vshrl.u32 %v8745_v17, 16  ;;  %v1285_v31 = vshrl.u32 %v7191_v21, 16  ;;  %v1354_v12 = vld [vmem:[#allocation2 + $0xc8] sm:$0xf]  ;;  %v1357_v33 = vld [vmem:[#allocation2 + $0xd8] sm:$0x1] }
 0x127   : > { %v1303_v27 = vrot.slane %v1301_v63, 7  ;;  %1350 = vst [vmem:[#allocation2 + $0xa8] sm:$0xf] %v1349_v25  ;;  %1353 = vst [vmem:[#allocation2 + $0xb8] sm:$0x1] %v1352_v26  ;;  %v1288_v34 = vshll.u32 %v7191_v21, 16  ;;  %v850_v26 = vadd.f32 %v8584_v38, %v8711_v18 }
 0x128   : > { %v901_v7 = vmax.f32 %v847_v23, 0.0  ;;  %v904_v39 = vmax.f32 %v858_v24, 0.0  ;;  %v1650_v40 = vrot.slane %v1648_v29, 4  ;;  %v1287_v41 = vrot.slane %v1285_v31, 7  ;;  %v1602_v61 = vld [vmem:[#allocation2 + $0x30] sm:$0x11] }
 0x129   : > { %v1306_v36 = vor.u32 %v1304_v20, %v1303_v27  ;;  %v1307_v37 = vrot.slane %v1303_v27, 4  ;;  %v1409_v42 = vshrl.u32 %v7196_v35, 16  ;;  %v1412_v44 = vshll.u32 %v7196_v35, 16  ;;  %v1472_v16 = vld [vmem:[#allocation2 + $0x2c] sm:$0xf] }
 0x12a   : > { %v7194_v15 = vpack.c.bf16 %v901_v7, %v901_v7  ;;  %v7197_v51 = vpack.c.bf16 %v904_v39, %v904_v39  ;;  %v1651_v54 = vshll.u32 %v8745_v17, 16  ;;  %v1290_v55 = vor.u32 %v1288_v34, %v1287_v41  ;;  %v1475_v53 = vld [vmem:[#allocation2 + $0x3c] sm:$0x1]  ;;  %v1490_v24 = vld [vmem:[#allocation2 + $0x8c] sm:$0xf] }
 0x12b   : > { %v1367_v45 = vsel %vm8608_vm13, %v1306_v36, %v1366_v28  ;;  %v1370_v48 = vsel %vm8423_vm5, %v1307_v37, %v1369_v30  ;;  %v1291_v57 = vrot.slane %v1287_v41, 4  ;;  %v1411_v58 = vrot.slane %v1409_v42, 7  ;;  %v1493_v25 = vld [vmem:[#allocation2 + $0x9c] sm:$0x1]  ;;  %v1604_v34 = vld [vmem:[#allocation2 + $0x50] sm:$0x11] }
 0x12c   : > { %1368 = vst [vmem:[#allocation2 + $0x108] sm:$0xf] %v1367_v45  ;;  %1371 = vst [vmem:[#allocation2 + $0x118] sm:$0x1] %v1370_v48  ;;  %v1393_v59 = vshrl.u32 %v7194_v15, 16  ;;  %v1396_v4 = vshll.u32 %v7194_v15, 16  ;;  %v1355_v10 = vsel %vm8608_vm13, %v1290_v55, %v1354_v12 }
 0x12d   : > { %v1417_v5 = vshrl.u32 %v7197_v51, 16  ;;  %v1420_v8 = vshll.u32 %v7197_v51, 16  ;;  %v1653_v9 = vrot.slane %v1651_v54, 5  ;;  %v1358_v11 = vsel %vm8423_vm5, %v1291_v57, %v1357_v33  ;;  %1356 = vst [vmem:[#allocation2 + $0xc8] sm:$0xf] %v1355_v10  ;;  %v8774_v37 = vld [vmem:[#allocation2 + $0x60] sm:$0xff] }
 0x12e   : > { %v1414_v43 = vor.u32 %v1412_v44, %v1411_v58  ;;  %v1415_v13 = vrot.slane %v1411_v58, 4  ;;  %1359 = vst [vmem:[#allocation2 + $0xd8] sm:$0x1] %v1358_v11  ;;  %v1395_v60 = vrot.slane %v1393_v59, 7  ;;  %v1657_v21 = vshll.u32 %v1602_v61, 16  ;;  %v8094_v61 = vld [vmem:[%s10053_s3 + $0x1c8] sm:$0xff]  }
 0x12f   : > { %v1419_v63 = vrot.slane %v1417_v5, 7  ;;  %v1654_v20 = vor.u32 %v1653_v9, %v1650_v40  ;;  %v1676_v27 = vshrl.u32 %v8761_v32, 16  ;;  %v902_v36 = vmax.f32 %v850_v26, 0.0  ;;  %v1606_v44 = vld [vmem:[#allocation2 + $0x70] sm:$0x11] }
 0x130   : > { %v1485_v22 = vsel %vm8608_vm13, %v1414_v43, %v1484_v49  ;;  %v1488_v23 = vsel %vm8423_vm5, %v1415_v13, %v1487_v50  ;;  %v1398_v28 = vor.u32 %v1396_v4, %v1395_v60  ;;  %v1399_v29 = vrot.slane %v1395_v60, 4  ;;  %v8092_v50 = vld [vmem:[%s10053_s3 + $0x180] sm:$0xff]   ;;  %v1478_v10 = vld [vmem:[#allocation2 + $0x4c] sm:$0xf] }
 0x131   : > { %1486 = vst [vmem:[#allocation2 + $0x6c] sm:$0xf] %v1485_v22  ;;  %1489 = vst [vmem:[#allocation2 + $0x7c] sm:$0x1] %v1488_v23  ;;  %v1422_v30 = vor.u32 %v1420_v8, %v1419_v63  ;;  %v1423_v31 = vrot.slane %v1419_v63, 4  ;;  %v1655_v35 = vrot.slane %v1654_v20, 4  ;;  %v7195_v42 = vpack.c.bf16 %v902_v36, %v902_v36 }
 0x132   : > { %v1659_v7 = vrot.slane %v1657_v21, 5  ;;  %v1678_v12 = vrot.slane %v1676_v27, 4  ;;  %v1473_v39 = vsel %vm8608_vm13, %v1398_v28, %v1472_v16  ;;  %v1476_v18 = vsel %vm8423_vm5, %v1399_v29, %v1475_v53  ;;  %v1481_v16 = vld [vmem:[#allocation2 + $0x5c] sm:$0x1]  ;;  %v8096_v63 = vld [vmem:[%s10053_s3 + $0x188] sm:$0xff]  }
 0x133   : > { %v1491_v40 = vsel %vm8608_vm13, %v1422_v30, %v1490_v24  ;;  %v1494_v41 = vsel %vm8423_vm5, %v1423_v31, %v1493_v25  ;;  %1474 = vst [vmem:[#allocation2 + $0x2c] sm:$0xf] %v1473_v39  ;;  %1477 = vst [vmem:[#allocation2 + $0x3c] sm:$0x1] %v1476_v18  ;;  %v1679_v15 = vshll.u32 %v8761_v32, 16  ;;  %v1685_v45 = vshll.u32 %v1604_v34, 16 }
 0x134   : > { %1492 = vst [vmem:[#allocation2 + $0x8c] sm:$0xf] %v1491_v40  ;;  %1495 = vst [vmem:[#allocation2 + $0x9c] sm:$0x1] %v1494_v41  ;;  %v1660_v33 = vsel %vm8589_vm10, %v1655_v35, %v1659_v7  ;;  %v1704_v51 = vshrl.u32 %v8774_v37, 16  ;;  %v1707_v54 = vshll.u32 %v8774_v37, 16  ;;  %v871_v8 = vadd.f32 %v8721_v46, %v8584_v38 }
 0x135   : > { %v6558_v48 = vcombine.low %v8598_v62, %v1660_v33  ;;  %v6559_v49 = vcombine.high %v8598_v62, %v1660_v33  ;;  %v1401_v55 = vshrl.u32 %v7195_v42, 16  ;;  %v1404_v57 = vshll.u32 %v7195_v42, 16  ;;  %v8819_v7 = vld [vmem:[#allocation2 + $0x80] sm:$0xff]  ;;  %v1511_v39 = vld [vmem:[#allocation2 + $0xfc] sm:$0x1]  ;;  %v8100_v33 = vld [vmem:[%s10053_s3 + $0x190] sm:$0xff]  }
 0x136   : > { %v1681_v58 = vrot.slane %v1679_v15, 5  ;;  %v1687_v59 = vrot.slane %v1685_v45, 5  ;;  %v1706_v4 = vrot.slane %v1704_v51, 4  ;;  %v1709_v5 = vrot.slane %v1707_v54, 5  ;;  %v1499_v15 = vld [vmem:[#allocation2 + $0xbc] sm:$0x1] }
 0x137   : > { %2196 = vmatprep.mubr.bf16.mxu0 %v6559_v49  ;;  %v1713_v62 = vshll.u32 %v1606_v44, 16  ;;  %v1403_v9 = vrot.slane %v1401_v55, 7  ;;  %v863_v43 = vadd.f32 %v8584_v38, %v8729_v56  ;;  %v874_v13 = vadd.f32 %v8731_v1, %v8584_v38  ;;  %v8098_v1 = vld [vmem:[%s10053_s3 + $0x1d0] sm:$0xff]   ;;  %v1496_v44 = vld [vmem:[#allocation2 + $0xac] sm:$0xf] }
 0x138   : > { %2197 = vmatmul.mubr.bf16.vlgmr.msra.gmra.mrb[32].mxu0 %v6558_v48  ;;  %v1682_v11 = vor.u32 %v1681_v58, %v1678_v12  ;;  %v1710_v60 = vor.u32 %v1709_v5, %v1706_v4  ;;  %v907_v20 = vmax.f32 %v871_v8, 0.0  ;;  %v866_v46 = vadd.f32 %v8584_v38, %v8735_v6  ;;  %v1508_v12 = vld [vmem:[#allocation2 + $0xec] sm:$0xf]  ;;  %v1517_v55 = vld [vmem:[#allocation2 + $0x11c] sm:$0x1] }
 0x139   : > { %7270 = vmatpush3.bf16.msra.mxu0 %v8092_v50  ;;  %v1715_v53 = vrot.slane %v1713_v62, 5  ;;  %v1406_v21 = vor.u32 %v1404_v57, %v1403_v9  ;;  %v1407_v22 = vrot.slane %v1403_v9, 4  ;;  %v905_v56 = vmax.f32 %v863_v43, 0.0  ;;  %v8102_v50 = vld [vmem:[%s10053_s3 + $0x1d8] sm:$0xff]   ;;  %v1514_v54 = vld [vmem:[#allocation2 + $0x10c] sm:$0xf] }
 0x13a   : > { %v1683_v23 = vrot.slane %v1682_v11, 4  ;;  %7271 = vmatprep.subr.bf16.mxu0 %v8094_v61  ;;  %v1711_v24 = vrot.slane %v1710_v60, 4  ;;  %v7200_v25 = vpack.c.bf16 %v907_v20, %v907_v20  ;;  %v908_v26 = vmax.f32 %v874_v13, 0.0  ;;  %v1502_v62 = vld [vmem:[#allocation2 + $0xcc] sm:$0xf] }
 0x13b   : > { %v906_v27 = vmax.f32 %v866_v46, 0.0  ;;  %v1479_v28 = vsel %vm8608_vm13, %v1406_v21, %v1478_v10  ;;  %v1482_v29 = vsel %vm8423_vm5, %v1407_v22, %v1481_v16  ;;  %v7198_v6 = vpack.c.bf16 %v905_v56, %v905_v56  ;;  %v1608_v43 = vld [vmem:[#allocation2 + $0x90] sm:$0x11]  ;;  %v8104_v16 = vld [vmem:[%s10053_s3 + $0x198] sm:$0xff]   ;;  %v8836_v21 = vld [vmem:[#allocation2 + $0xa0] sm:$0xff] }
 0x13c   : > { %v1688_v38 = vsel %vm8589_vm10, %v1683_v23, %v1687_v59  ;;  %1480 = vst [vmem:[#allocation2 + $0x4c] sm:$0xf] %v1479_v28  ;;  %1483 = vst [vmem:[#allocation2 + $0x5c] sm:$0x1] %v1482_v29  ;;  %v1716_v30 = vsel %vm8589_vm10, %v1711_v24, %v1715_v53  ;;  %v1441_v31 = vshrl.u32 %v7200_v25, 16  ;;  %v1444_v34 = vshll.u32 %v7200_v25, 16 }
 0x13d   : > { %7272 = vmatpush3.bf16.msra.mxu0 %v8096_v63  ;;  %v7201_v35 = vpack.c.bf16 %v908_v26, %v908_v26  ;;  %v6563_v36 = vcombine.high %v1688_v38, %v1716_v30  ;;  %v1425_v18 = vshrl.u32 %v7198_v6, 16  ;;  %v1428_v40 = vshll.u32 %v7198_v6, 16  ;;  %v1505_v46 = vld [vmem:[#allocation2 + $0xdc] sm:$0x1]  ;;  %v8106_v22 = vld [vmem:[%s10053_s3 + $0x1e0] sm:$0xff]  }
 0x13e   : > { %7273 = vmatprep.subr.bf16.mxu0 %v8098_v1  ;;  %v7199_v41 = vpack.c.bf16 %v906_v27, %v906_v27  ;;  %v1443_v42 = vrot.slane %v1441_v31, 7  ;;  %v6562_v49 = vcombine.low %v1688_v38, %v1716_v30  ;;  %v1732_v59 = vshrl.u32 %v8819_v7, 16  ;;  %v1610_v25 = vld [vmem:[#allocation2 + $0xb0] sm:$0x11]  ;;  %v8845_v26 = vld [vmem:[#allocation2 + $0xc0] sm:$0xff] }
 0x13f   : > { %v1449_v45 = vshrl.u32 %v7201_v35, 16  ;;  %v1452_v48 = vshll.u32 %v7201_v35, 16  ;;  %2204 = vmatprep.mubr.bf16.mxu0 %v6563_v36  ;;  %v1427_v51 = vrot.slane %v1425_v18, 7  ;;  %v1735_v8 = vshll.u32 %v8819_v7, 16  ;;  %v1612_v6 = vld [vmem:[#allocation2 + $0xd0] sm:$0x11] }
 0x140   : > { %v1433_v57 = vshrl.u32 %v7199_v41, 16  ;;  %v1436_v58 = vshll.u32 %v7199_v41, 16  ;;  %v1446_v61 = vor.u32 %v1444_v34, %v1443_v42  ;;  %v1447_v4 = vrot.slane %v1443_v42, 4  ;;  %2205 = vmatmul.mubr.bf16.gmra.mrb[36].mxu0 %v6562_v49  ;;  %v8108_v36 = vld [vmem:[%s10053_s3 + $0x1a0] sm:$0xff]   ;;  %v8872_v49 = vld [vmem:[#allocation2 + $0x28] sm:$0xff] }
 0x141   : > { %v1451_v5 = vrot.slane %v1449_v45, 7  ;;  %v1430_v9 = vor.u32 %v1428_v40, %v1427_v51  ;;  %v1431_v10 = vrot.slane %v1427_v51, 4  ;;  %7274 = vmatpush3.bf16.msra.mxu0 %v8100_v33  ;;  %v1734_v13 = vrot.slane %v1732_v59, 4  ;;  %v1614_v40 = vld [vmem:[#allocation2 + $0xf0] sm:$0x11]  ;;  %v8110_v33 = vld [vmem:[%s10053_s3 + $0x1e8] sm:$0xff]  }
 0x142   : > { %v1435_v11 = vrot.slane %v1433_v57, 7  ;;  %v1509_v60 = vsel %vm8608_vm13, %v1446_v61, %v1508_v12  ;;  %v1512_v53 = vsel %vm8423_vm5, %v1447_v4, %v1511_v39  ;;  %7275 = vmatprep.subr.bf16.mxu0 %v8102_v50  ;;  %v1737_v29 = vrot.slane %v1735_v8, 5  ;;  %v8860_v12 = vld [vmem:[#allocation2 + $0xe0] sm:$0xff]  ;;  %v8112_v57 = vld [vmem:[%s10053_s3 + $0x1a8] sm:$0xff]   ;;  %v1603_v59 = vld [vmem:[#allocation2 + $0x38] sm:$0x11] }
 0x143   : > { %v1454_v63 = vor.u32 %v1452_v48, %v1451_v5  ;;  %v1455_v20 = vrot.slane %v1451_v5, 4  ;;  %1510 = vst [vmem:[#allocation2 + $0xec] sm:$0xf] %v1509_v60  ;;  %1513 = vst [vmem:[#allocation2 + $0xfc] sm:$0x1] %v1512_v53  ;;  %v1497_v23 = vsel %vm8608_vm13, %v1430_v9, %v1496_v44  ;;  %v1500_v56 = vsel %vm8423_vm5, %v1431_v10, %v1499_v15  ;;  %v8879_v61 = vld [vmem:[#allocation2 + $0x48] sm:$0xff] }
 0x144   : > { %v1438_v1 = vor.u32 %v1436_v58, %v1435_v11  ;;  %v1439_v24 = vrot.slane %v1435_v11, 4  ;;  %1498 = vst [vmem:[#allocation2 + $0xac] sm:$0xf] %v1497_v23  ;;  %1501 = vst [vmem:[#allocation2 + $0xbc] sm:$0x1] %v1500_v56  ;;  %v1741_v38 = vshll.u32 %v1608_v43, 16  ;;  %v1738_v39 = vor.u32 %v1737_v29, %v1734_v13 }
 0x145   : > { %v1515_v27 = vsel %vm8608_vm13, %v1454_v63, %v1514_v54  ;;  %v1518_v28 = vsel %vm8423_vm5, %v1455_v20, %v1517_v55  ;;  %v1760_v34 = vshrl.u32 %v8836_v21, 16  ;;  %v1763_v35 = vshll.u32 %v8836_v21, 16  ;;  %7276 = vmatpush3.bf16.msra.mxu0 %v8104_v16  ;;  %v8114_v8 = vld [vmem:[%s10053_s3 + $0x1f0] sm:$0xff]   ;;  %v8891_v56 = vld [vmem:[#allocation2 + $0x68] sm:$0xff] }
 0x146   : > { %1516 = vst [vmem:[#allocation2 + $0x10c] sm:$0xf] %v1515_v27  ;;  %1519 = vst [vmem:[#allocation2 + $0x11c] sm:$0x1] %v1518_v28  ;;  %v1503_v30 = vsel %vm8608_vm13, %v1438_v1, %v1502_v62  ;;  %v1506_v31 = vsel %vm8423_vm5, %v1439_v24, %v1505_v46  ;;  %v1769_v18 = vshll.u32 %v1610_v25, 16  ;;  %7277 = vmatprep.subr.bf16.mxu0 %v8106_v22  ;;  %v1788_v41 = vshrl.u32 %v8845_v26, 16 }
 0x147   : > { %1504 = vst [vmem:[#allocation2 + $0xcc] sm:$0xf] %v1503_v30  ;;  %1507 = vst [vmem:[#allocation2 + $0xdc] sm:$0x1] %v1506_v31  ;;  %v8869_v42 = vrot.slane %v1640_v47, 4  ;;  %v1762_v44 = vrot.slane %v1760_v34, 4 }
 0x148   : > { %v1765_v15 = vrot.slane %v1763_v35, 5  ;;  %v1791_v45 = vshll.u32 %v8845_v26, 16  ;;  %v1797_v48 = vshll.u32 %v1612_v6, 16  ;;  %v1739_v50 = vrot.slane %v1738_v39, 4  ;;  %v8116_v27 = vld [vmem:[%s10053_s3 + $0x1b0] sm:$0xff]   ;;  %v8118_v6 = vld [vmem:[%s10053_s3 + $0x1f8] sm:$0xff]  }
 0x149   : > { %v1743_v51 = vrot.slane %v1741_v38, 5  ;;  %v1790_v54 = vrot.slane %v1788_v41, 4  ;;  %v1816_v55 = vshrl.u32 %v8860_v12, 16  ;;  %v1771_v2 = vrot.slane %v1769_v18, 5  ;;  %7278 = vmatpush3.bf16.msra.mxu0 %v8108_v36  ;;  %v3190_v34 = vld [vmem:[#allocation2 + $0x38] sm:$0x11] }
 0x14a   : > { %v1766_v58 = vor.u32 %v1765_v15, %v1762_v44  ;;  %v1793_v3 = vrot.slane %v1791_v45, 5  ;;  %v1819_v47 = vshll.u32 %v8860_v12, 16  ;;  %v1799_v4 = vrot.slane %v1797_v48, 5  ;;  %7279 = vmatprep.subr.bf16.mxu0 %v8110_v33  ;;  %v1605_v35 = vld [vmem:[#allocation2 + $0x58] sm:$0x11] }
 0x14b   : > { %v1818_v5 = vrot.slane %v1816_v55, 4  ;;  %v1825_v62 = vshll.u32 %v1614_v40, 16  ;;  %v1662_v9 = vshrl.u32 %v8872_v49, 16  ;;  %v1665_v13 = vshll.u32 %v8872_v49, 16  ;;  %v1607_v36 = vld [vmem:[#allocation2 + $0x78] sm:$0x11] }
 0x14c   : > { %v1767_v10 = vrot.slane %v1766_v58, 4  ;;  %v1794_v11 = vor.u32 %v1793_v3, %v1790_v54  ;;  %v1821_v43 = vrot.slane %v1819_v47, 5  ;;  %v1744_v16 = vsel %vm8589_vm10, %v1739_v50, %v1743_v51  ;;  %v3194_v15 = vld [vmem:[#allocation2 + $0x58] sm:$0x11]  ;;  %v8915_v55 = vld [vmem:[#allocation2 + $0x88] sm:$0xff]  ;;  %v8122_v58 = vld [vmem:[%s10053_s3 + $0x40] sm:$0xff]  }
 0x14d   : > { %v1664_v60 = vrot.slane %v1662_v9, 4  ;;  %v1671_v53 = vshll.u32 %v1603_v59, 16  ;;  %v1690_v63 = vshrl.u32 %v8879_v61, 16  ;;  %7280 = vmatpush3.bf16.msra.mxu0 %v8112_v57  ;;  %v1667_v23 = vrot.slane %v1665_v13, 5  ;;  %v8120_v48 = vld [vmem:[%s10053_s3 + $0x1b8] sm:$0xff]  }
 0x14e   : > { %v1772_v20 = vsel %vm8589_vm10, %v1767_v10, %v1771_v2  ;;  %v1795_v46 = vrot.slane %v1794_v11, 4  ;;  %v1822_v22 = vor.u32 %v1821_v43, %v1818_v5  ;;  %v1827_v25 = vrot.slane %v1825_v62, 5  ;;  %7281 = vmatprep.subr.bf16.mxu0 %v8114_v8  ;;  %v3198_v47 = vld [vmem:[#allocation2 + $0x78] sm:$0x11] }
 0x14f   : > { %v6567_v1 = vcombine.high %v1744_v16, %v1772_v20  ;;  %v6566_v24 = vcombine.low %v1744_v16, %v1772_v20  ;;  %v1692_v28 = vrot.slane %v1690_v63, 4  ;;  %v1668_v30 = vor.u32 %v1667_v23, %v1664_v60 }
 0x150   : > { %v1800_v29 = vsel %vm8589_vm10, %v1795_v46, %v1799_v4  ;;  %v1823_v38 = vrot.slane %v1822_v22, 4  ;;  %v1693_v31 = vshll.u32 %v8879_v61, 16  ;;  %v1718_v39 = vshrl.u32 %v8891_v56, 16  ;;  %v3202_v4 = vld [vmem:[#allocation2 + $0x98] sm:$0x11] }
 0x151   : > { %2212 = vmatprep.mubr.bf16.mxu0 %v6567_v1  ;;  %v1721_v18 = vshll.u32 %v8891_v56, 16  ;;  %v1669_v41 = vrot.slane %v1668_v30, 4  ;;  %v1673_v33 = vrot.slane %v1671_v53, 5  ;;  %7282 = vmatpush3.bf16.msra.mxu0 %v8116_v27  ;;  %v8913_v50 = vsel %vm8589_vm10, %v8869_v42, %v8633_v0  ;;  %v8932_v1 = vld [vmem:[#allocation2 + $0xa8] sm:$0xff] }
 0x152   : > { %2213 = vmatmul.mubr.bf16.gmra.mrb[40].mxu0 %v6566_v24  ;;  %v1828_v40 = vsel %vm8589_vm10, %v1823_v38, %v1827_v25  ;;  %v1695_v44 = vrot.slane %v1693_v31, 5  ;;  %v1720_v51 = vrot.slane %v1718_v39, 4  ;;  %v3243_v54 = vshll.u32 %v3190_v34, 16  ;;  %7283 = vmatprep.subr.bf16.mxu0 %v8118_v6  ;;  %v3206_v31 = vld [vmem:[#allocation2 + $0xb8] sm:$0x11] }
 0x153   : > { %v6571_v45 = vcombine.high %v1800_v29, %v1828_v40  ;;  %v8919_v57 = vsel %vm8589_vm10, %v1669_v41, %v1673_v33  ;;  %v1723_v3 = vrot.slane %v1721_v18, 5  ;;  %v1699_v59 = vshll.u32 %v1605_v35, 16  ;;  %v3210_v34 = vld [vmem:[#allocation2 + $0xd8] sm:$0x11] }
 0x154   : > { %v1696_v2 = vor.u32 %v1695_v44, %v1692_v28  ;;  %v1727_v0 = vshll.u32 %v1607_v36, 16  ;;  %v3271_v42 = vshll.u32 %v3194_v15, 16  ;;  %v6561_v5 = vcombine.high %v8913_v50, %v8919_v57  ;;  %v8934_v28 = vld [vmem:[#allocation2 + $0xc8] sm:$0xff]  ;;  %v1609_v39 = vld [vmem:[#allocation2 + $0x98] sm:$0x11] }
 0x155   : > { %2220 = vmatprep.mubr.bf16.mxu0 %v6571_v45  ;;  %v1724_v8 = vor.u32 %v1723_v3, %v1720_v51  ;;  %v3318_v9 = vshrl.u32 %v8915_v55, 16  ;;  %7284 = vmatpush3.bf16.msra.mxu0 %v8120_v48  ;;  %v3245_v10 = vrot.slane %v3243_v54, 5  ;;  %v3299_v43 = vshll.u32 %v3198_v47, 16  ;;  %v1611_v44 = vld [vmem:[#allocation2 + $0xb8] sm:$0x11] }
 0x156   : > { %v1697_v62 = vrot.slane %v1696_v2, 4  ;;  %v3273_v11 = vrot.slane %v3271_v42, 5  ;;  %v3321_v13 = vshll.u32 %v8915_v55, 16  ;;  %v6570_v16 = vcombine.low %v1800_v29, %v1828_v40  ;;  %7309 = vmatprep.subr.bf16.mxu0 %v8122_v58  ;;  %v8124_v58 = vld [vmem:[%s10053_s3] sm:$0xff]  }
 0x157   : > { %v1725_v60 = vrot.slane %v1724_v8, 4  ;;  %v3320_v53 = vrot.slane %v3318_v9, 4  ;;  %v3327_v63 = vshll.u32 %v3202_v4, 16  ;;  %v1701_v20 = vrot.slane %v1699_v59, 5  ;;  %v8964_v8 = vld [vmem:[#allocation2 + $0x108] sm:$0xff] }
 0x158   : > { %v3246_v46 = vsel %vm8589_vm10, %v1669_v41, %v3245_v10  ;;  %v3274_v22 = vsel %vm8589_vm10, %v1697_v62, %v3273_v11  ;;  %v3323_v23 = vrot.slane %v3321_v13, 5  ;;  %v1729_v24 = vrot.slane %v1727_v0, 5  ;;  %v8125_v0 = vld [vmem:[%s10053_s3 + $0x48] sm:$0xff]  }
 0x159   : > { %v6832_v25 = vcombine.low %v3246_v46, %v3274_v22  ;;  %v6833_v27 = vcombine.high %v3246_v46, %v3274_v22  ;;  %v6560_v29 = vcombine.low %v8913_v50, %v8919_v57  ;;  %v8940_v38 = vsel %vm8589_vm10, %v1697_v62, %v1701_v20  ;;  %v8952_v57 = vld [vmem:[#allocation2 + $0xe8] sm:$0xff]  ;;  %v1613_v20 = vld [vmem:[#allocation2 + $0xd8] sm:$0x11] }
 0x15a   : > { %2221 = vmatmul.mubr.bf16.gmra.mrb[44].mxu0 %v6570_v16  ;;  %v3301_v6 = vrot.slane %v3299_v43, 5  ;;  %v3324_v30 = vor.u32 %v3323_v23, %v3320_v53  ;;  %v8944_v35 = vsel %vm8589_vm10, %v1725_v60, %v1729_v24  ;;  %v3329_v36 = vrot.slane %v3327_v63, 5  ;;  %v8126_v43 = vld [vmem:[%s10053_s3 + $0x8] sm:$0xff]   ;;  %v8127_v24 = vld [vmem:[%s10053_s3 + $0x50] sm:$0xff]  }
 0x15b   : > { %2261 = vmatprep.mubr.bf16.mxu0 %v6561_v5  ;;  %3861 = vmatprep.mubr.bf16.mxu1 %v6833_v27  ;;  %v1774_v18 = vshrl.u32 %v8932_v1, 16  ;;  %v1777_v40 = vshll.u32 %v8932_v1, 16  ;;  %v3374_v15 = vshrl.u32 %v8934_v28, 16  ;;  %v3377_v45 = vshll.u32 %v8934_v28, 16 }
 0x15c   : > { %3862 = vmatmul.mubr.bf16.vlgmr.msra.gmra.mrb[0].mxu1 %v6832_v25  ;;  %v3302_v41 = vsel %vm8589_vm10, %v1725_v60, %v3301_v6  ;;  %v3325_v33 = vrot.slane %v3324_v30, 4  ;;  %v3355_v51 = vshll.u32 %v3206_v31, 16  ;;  %v3383_v54 = vshll.u32 %v3210_v34, 16  ;;  %v3218_v34 = vld [vmem:[#allocation2 + $0x118] sm:$0x11] }
 0x15d   : > { %v1776_v48 = vrot.slane %v1774_v18, 4  ;;  %v1779_v50 = vrot.slane %v1777_v40, 5  ;;  %v6565_v2 = vcombine.high %v8940_v38, %v8944_v35  ;;  %v3376_v47 = vrot.slane %v3374_v15, 4 }
 0x15e   : > { %v3330_v3 = vsel %vm8589_vm10, %v3325_v33, %v3329_v36  ;;  %v3379_v59 = vrot.slane %v3377_v45, 5  ;;  %v1755_v4 = vshll.u32 %v1609_v39, 16  ;;  %v1783_v62 = vshll.u32 %v1611_v44, 16 }
 0x15f   : > { %v6837_v42 = vcombine.high %v3302_v41, %v3330_v3  ;;  %v1780_v5 = vor.u32 %v1779_v50, %v1776_v48  ;;  %v1830_v10 = vshrl.u32 %v8952_v57, 16  ;;  %v1833_v11 = vshll.u32 %v8952_v57, 16 }
 0x160   : > { %v3380_v9 = vor.u32 %v3379_v59, %v3376_v47  ;;  %v6836_v16 = vcombine.low %v3302_v41, %v3330_v3  ;;  %v3357_v60 = vrot.slane %v3355_v51, 5  ;;  %v3385_v53 = vrot.slane %v3383_v54, 5 }
 0x161   : > { %3869 = vmatprep.mubr.bf16.mxu1 %v6837_v42  ;;  %v1781_v13 = vrot.slane %v1780_v5, 4  ;;  %v1832_v46 = vrot.slane %v1830_v10, 4  ;;  %v1835_v22 = vrot.slane %v1833_v11, 5  ;;  %v3430_v23 = vshrl.u32 %v8964_v8, 16  ;;  %v8131_v11 = vld [vmem:[%s10053_s3 + $0x60] sm:$0xff]  }
 0x162   : > { %2262 = vmatmul.mubr.bf16.vlgmr.msra.gmra.mrb[48].mxu0 %v6560_v29  ;;  %v3381_v63 = vrot.slane %v3380_v9, 4  ;;  %v1757_v25 = vrot.slane %v1755_v4, 5  ;;  %v1785_v27 = vrot.slane %v1783_v62, 5  ;;  %v3214_v29 = vld [vmem:[#allocation2 + $0xf8] sm:$0x11]  ;;  %v6564_v6 = vcombine.low %v8940_v38, %v8944_v35  ;;  %v8128_v38 = vld [vmem:[%s10053_s3 + $0x10] sm:$0xff]  }
 0x163   : > { %7310 = vmatpush3.bf16.msra.mxu0 %v8124_v58  ;;  %2269 = vmatprep.mubr.bf16.mxu0 %v6565_v2  ;;  %v3358_v30 = vsel %vm8589_vm10, %v1781_v13, %v3357_v60  ;;  %v1811_v40 = vshll.u32 %v1613_v20, 16  ;;  %v1615_v35 = vld [vmem:[#allocation2 + $0xf8] sm:$0x11]  ;;  %v1836_v41 = vor.u32 %v1835_v22, %v1832_v46  ;;  %v3411_v44 = vshll.u32 %v3214_v29, 16 }
 0x164   : > { %7311 = vmatprep.subr.bf16.mxu0 %v8125_v0  ;;  %3870 = vmatmul.mubr.bf16.gmra.mrb[4].mxu1 %v6836_v16  ;;  %v3386_v31 = vsel %vm8589_vm10, %v3381_v63, %v3385_v53  ;;  %v1758_v36 = vsel %vm8589_vm10, %v3325_v33, %v1757_v25  ;;  %v1786_v39 = vsel %vm8589_vm10, %v1781_v13, %v1785_v27  ;;  %v3432_v15 = vrot.slane %v3430_v23, 4  ;;  %v8129_v33 = vld [vmem:[%s10053_s3 + $0x58] sm:$0xff]   ;;  %v8132_v25 = vld [vmem:[%s10053_s3 + $0x20] sm:$0xff]  }
 0x165   : > { %v6841_v18 = vcombine.high %v3358_v30, %v3386_v31  ;;  %v3433_v45 = vshll.u32 %v8964_v8, 16  ;;  %v3439_v48 = vshll.u32 %v3218_v34, 16  ;;  %v6611_v50 = vcombine.high %v8761_v32, %v8774_v37  ;;  %v8130_v4 = vld [vmem:[%s10053_s3 + $0x18] sm:$0xff]  }
 0x166   : > { %v6610_v51 = vcombine.low %v8761_v32, %v8774_v37  ;;  %v6615_v54 = vcombine.high %v8819_v7, %v8836_v21  ;;  %v6569_v58 = vcombine.high %v1758_v36, %v1786_v39  ;;  %v6614_v3 = vcombine.low %v8819_v7, %v8836_v21  ;;  %v8148_v32 = vld [vmem:[%s10053_s3 + $0xa0] sm:$0xff]   ;;  %v8149_v37 = vld [vmem:[%s10053_s3 + $0xe8] sm:$0xff]   ;;  %v8152_v7 = vld [vmem:[%s10053_s3 + $0xb0] sm:$0xff]  }
 0x167   : > { %7312 = vmatpush3.bf16.msra.mxu0 %v8126_v43  ;;  %3877 = vmatprep.mubr.bf16.mxu1 %v6841_v18  ;;  %v3435_v2 = vrot.slane %v3433_v45, 5  ;;  %v6619_v47 = vcombine.high %v8845_v26, %v8860_v12  ;;  %v1813_v59 = vrot.slane %v1811_v40, 5  ;;  %v1839_v0 = vshll.u32 %v1615_v35, 16  ;;  %v8136_v45 = vld [vmem:[%s10053_s3 + $0x30] sm:$0xff]   ;;  %v8153_v21 = vld [vmem:[%s10053_s3 + $0xf8] sm:$0xff]  }
 0x168   : > { %7313 = vmatprep.subr.bf16.mxu0 %v8127_v24  ;;  %v6618_v42 = vcombine.low %v8845_v26, %v8860_v12  ;;  %v1837_v5 = vrot.slane %v1836_v41, 4  ;;  %v6840_v62 = vcombine.low %v3358_v30, %v3386_v31  ;;  %v3413_v9 = vrot.slane %v3411_v44, 5  ;;  %v8134_v41 = vld [vmem:[%s10053_s3 + $0x28] sm:$0xff]  }
 0x169   : > { %v3436_v10 = vor.u32 %v3435_v2, %v3432_v15  ;;  %v3441_v43 = vrot.slane %v3439_v48, 5  ;;  %v6613_v13 = vcombine.high %v8879_v61, %v8891_v56  ;;  %v6612_v16 = vcombine.low %v8879_v61, %v8891_v56  ;;  %v8135_v15 = vld [vmem:[%s10053_s3 + $0x70] sm:$0xff]   ;;  %v8137_v48 = vld [vmem:[%s10053_s3 + $0x78] sm:$0xff]   ;;  %v8157_v12 = vld [vmem:[%s10053_s3 + $0x248] sm:$0xff]  }
 0x16a   : > { %2270 = vmatmul.mubr.bf16.gmra.mrb[52].mxu0 %v6564_v6  ;;  %v6617_v60 = vcombine.high %v8915_v55, %v8932_v1  ;;  %v6616_v20 = vcombine.low %v8915_v55, %v8932_v1  ;;  %v6621_v46 = vcombine.high %v8934_v28, %v8952_v57  ;;  %v6620_v22 = vcombine.low %v8934_v28, %v8952_v57 }
 0x16b   : > { %7314 = vmatpush3.bf16.msra.mxu0 %v8128_v38  ;;  %2277 = vmatprep.mubr.bf16.mxu0 %v6569_v58  ;;  %v3437_v53 = vrot.slane %v3436_v10, 4  ;;  %v1814_v23 = vsel %vm8589_vm10, %v3381_v63, %v1813_v59  ;;  %v1841_v24 = vrot.slane %v1839_v0, 5  ;;  %v3414_v27 = vsel %vm8589_vm10, %v1837_v5, %v3413_v9  ;;  %v8133_v63 = vld [vmem:[%s10053_s3 + $0x68] sm:$0xff]   ;;  %v8303_v58 = vld [vmem:[#allocation2] sm:$0xff]  ;;  %v8138_v59 = vld [vmem:[%s10053_s3 + $0x38] sm:$0xff]  }
 0x16c   : > { %7315 = vmatprep.subr.bf16.mxu0 %v8129_v33  ;;  %3878 = vmatmul.mubr.bf16.gmra.mrb[8].mxu1 %v6840_v62  ;;  %v6568_v6 = vcombine.low %v1758_v36, %v1786_v39  ;;  %v6725_v18 = vcombine.high %v8891_v56, %v8915_v55  ;;  %v6724_v40 = vcombine.low %v8891_v56, %v8915_v55  ;;  %v8139_v0 = vld [vmem:[%s10053_s3 + $0xc0] sm:$0xff]   ;;  %v8141_v62 = vld [vmem:[%s10053_s3 + $0xc8] sm:$0xff]   ;;  %v8143_v10 = vld [vmem:[%s10053_s3 + $0xd0] sm:$0xff]  }
 0x16d   : > { %v3442_v29 = vsel %vm8589_vm10, %v3437_v53, %v3441_v43  ;;  %v1842_v30 = vsel %vm8589_vm10, %v1837_v5, %v1841_v24  ;;  %v6729_v38 = vcombine.high %v8932_v1, %v8934_v28  ;;  %v6728_v36 = vcombine.low %v8932_v1, %v8934_v28  ;;  %v8142_v9 = vld [vmem:[%s10053_s3 + $0x88] sm:$0xff]   ;;  %v8147_v43 = vld [vmem:[%s10053_s3 + $0xe0] sm:$0xff]   ;;  %v8154_v53 = vld [vmem:[%s10053_s3 + $0xb8] sm:$0xff]  }
 0x16e   : > { %v6845_v31 = vcombine.high %v3414_v27, %v3442_v29  ;;  %v6573_v34 = vcombine.high %v1814_v23, %v1842_v30  ;;  %v6733_v39 = vcombine.high %v8952_v57, %v8964_v8  ;;  %v6732_v35 = vcombine.low %v8952_v57, %v8964_v8  ;;  %v8156_v24 = vld [vmem:[%s10053_s3 + $0x200] sm:$0xff]   ;;  %v3193_v56 = vld [vmem:[#allocation2 + $0x50] sm:$0x11] }
 0x16f   : > { %7316 = vmatpush3.bf16.msra.mxu0 %v8130_v4  ;;  %v6844_v44 = vcombine.low %v3414_v27, %v3442_v29  ;;  %v6572_v33 = vcombine.low %v1814_v23, %v1842_v30  ;;  %v6607_v2 = vcombine.high %v8303_v58, %v8745_v17  ;;  %v8140_v4 = vld [vmem:[%s10053_s3 + $0x80] sm:$0xff]   ;;  %v6606_v5 = vcombine.low %v8303_v58, %v8745_v17  ;;  %v8144_v17 = vld [vmem:[%s10053_s3 + $0x90] sm:$0xff]   ;;  %v8161_v27 = vld [vmem:[%s10053_s3 + $0x258] sm:$0xff]  }
 0x170   : > { %7317 = vmatprep.subr.bf16.mxu0 %v8131_v11  ;;  %3885 = vmatprep.mubr.bf16.mxu1 %v6845_v31  ;;  %v8145_v11 = vld [vmem:[%s10053_s3 + $0xd8] sm:$0xff]   ;;  %v8155_v23 = vld [vmem:[%s10053_s3 + $0x240] sm:$0xff]   ;;  %v8167_v30 = vld [vmem:[%s10053_s3 + $0x270] sm:$0xff]  }
 0x171   : > { %v8163_v29 = vld [vmem:[%s10053_s3 + $0x260] sm:$0xff]   ;;  %v3189_v55 = vld [vmem:[#allocation2 + $0x30] sm:$0x11] }
 0x172   : > { %2278 = vmatmul.mubr.bf16.gmra.mrb[56].mxu0 %v6568_v6  ;;  %v8164_v6 = vld [vmem:[%s10053_s3 + $0x220] sm:$0xff]   ;;  %v8199_v1 = vld [vmem:[%s10053_s3 + $0x370] sm:$0xff]  }
 0x173   : > { %7318 = vmatpush3.bf16.msra.mxu0 %v8132_v25  ;;  %2285 = vmatprep.mubr.bf16.mxu0 %v6573_v34  ;;  %v8159_v25 = vld [vmem:[%s10053_s3 + $0x250] sm:$0xff]   ;;  %v9192_v31 = vld [vmem:[#allocation2 + $0x20] sm:$0xff] }
 0x174   : > { %7319 = vmatprep.subr.bf16.mxu0 %v8133_v63  ;;  %3886 = vmatmul.mubr.bf16.gmra.mrb[12].mxu1 %v6844_v44  ;;  %v9187_v63 = vld [vmem:[#allocation2 + $0x40] sm:$0xff] }
 0x175   : > { %v6719_v34 = vcombine.high %v9192_v31, %v9187_v63  ;;  %v8171_v44 = vld [vmem:[%s10053_s3 + $0x2c0] sm:$0xff]  }
 0x177   : > { %7320 = vmatpush3.bf16.msra.mxu0 %v8134_v41  ;;  %v8170_v41 = vld [vmem:[%s10053_s3 + $0x238] sm:$0xff]  }
 0x178   : > { %7321 = vmatprep.subr.bf16.mxu0 %v8135_v15  ;;  %v9208_v15 = vld [vmem:[#allocation2 + $0x80] sm:$0xff] }
 0x17a   : > { %2286 = vmatmul.mubr.bf16.gmra.mrb[60].mxu0 %v6572_v33  ;;  %v9215_v33 = vld [vmem:[#allocation2 + $0x60] sm:$0xff] }
 0x17b   : > { %7322 = vmatpush3.bf16.msra.mxu0 %v8136_v45  ;;  %2598 = vmatprep.mubr.bf16.mxu0 %v6607_v2  ;;  %v8172_v45 = vld [vmem:[%s10053_s3 + $0x280] sm:$0xff]   ;;  %v6723_v58 = vcombine.high %v9215_v33, %v9208_v15  ;;  %v8174_v2 = vld [vmem:[%s10053_s3 + $0x288] sm:$0xff]  }
 0x17c   : > { %7323 = vmatprep.subr.bf16.mxu0 %v8137_v48  ;;  %v8173_v48 = vld [vmem:[%s10053_s3 + $0x2c8] sm:$0xff]  }
 0x17f   : > { %7324 = vmatpush3.bf16.msra.mxu0 %v8138_v59  ;;  %v8175_v59 = vld [vmem:[%s10053_s3 + $0x2d0] sm:$0xff]  }
 0x180   : > { %7349 = vmatprep.subr.bf16.mxu0 %v8139_v0  ;;  %v9228_v0 = vld [vmem:[#allocation2 + $0xc0] sm:$0xff] }
 0x182   : > { %2599 = vmatmul.mubr.bf16.vlgmr.msra.gmra.mrb[64].mxu0 %v6606_v5  ;;  %v6722_v5 = vcombine.low %v9215_v33, %v9208_v15 }
 0x183   : > { %7350 = vmatpush3.bf16.msra.mxu0 %v8140_v4  ;;  %2606 = vmatprep.mubr.bf16.mxu0 %v6611_v50  ;;  %v8146_v50 = vld [vmem:[%s10053_s3 + $0x98] sm:$0xff]   ;;  %v8176_v4 = vld [vmem:[%s10053_s3 + $0x290] sm:$0xff]  }
 0x184   : > { %7351 = vmatprep.subr.bf16.mxu0 %v8141_v62  ;;  %v9235_v62 = vld [vmem:[#allocation2 + $0xa0] sm:$0xff] }
 0x187   : > { %7352 = vmatpush3.bf16.msra.mxu0 %v8142_v9  ;;  %v8177_v9 = vld [vmem:[%s10053_s3 + $0x2d8] sm:$0xff]  }
 0x188   : > { %7353 = vmatprep.subr.bf16.mxu0 %v8143_v10  ;;  %v6727_v10 = vcombine.high %v9235_v62, %v9228_v0 }
 0x18a   : > { %2607 = vmatmul.mubr.bf16.gmra.mrb[68].mxu0 %v6610_v51  ;;  %v8150_v51 = vld [vmem:[%s10053_s3 + $0xa8] sm:$0xff]  }
 0x18b   : > { %7354 = vmatpush3.bf16.msra.mxu0 %v8144_v17  ;;  %2614 = vmatprep.mubr.bf16.mxu0 %v6615_v54  ;;  %v8151_v54 = vld [vmem:[%s10053_s3 + $0xf0] sm:$0xff]   ;;  %v8178_v17 = vld [vmem:[%s10053_s3 + $0x298] sm:$0xff]  }
 0x18c   : > { %7355 = vmatprep.subr.bf16.mxu0 %v8145_v11  ;;  %v8179_v11 = vld [vmem:[%s10053_s3 + $0x2e0] sm:$0xff]  }
 0x18f   : > { %7356 = vmatpush3.bf16.msra.mxu0 %v8146_v50  ;;  %v9248_v50 = vld [vmem:[#allocation2 + $0x100] sm:$0xff] }
 0x190   : > { %7357 = vmatprep.subr.bf16.mxu0 %v8147_v43  ;;  %v8180_v43 = vld [vmem:[%s10053_s3 + $0x2a0] sm:$0xff]  }
 0x192   : > { %2615 = vmatmul.mubr.bf16.gmra.mrb[72].mxu0 %v6614_v3  ;;  %v8304_v3 = vld [vmem:[#allocation2 + $0x8] sm:$0xff] }
 0x193   : > { %7358 = vmatpush3.bf16.msra.mxu0 %v8148_v32  ;;  %2622 = vmatprep.mubr.bf16.mxu0 %v6619_v47  ;;  %v6609_v47 = vcombine.high %v8304_v3, %v8872_v49  ;;  %v6608_v26 = vcombine.low %v8304_v3, %v8872_v49  ;;  %v8160_v49 = vld [vmem:[%s10053_s3 + $0x210] sm:$0xff]   ;;  %v6726_v32 = vcombine.low %v9235_v62, %v9228_v0 }
 0x194   : > { %7359 = vmatprep.subr.bf16.mxu0 %v8149_v37  ;;  %v9255_v37 = vld [vmem:[#allocation2 + $0xe0] sm:$0xff]  ;;  %v8184_v3 = vld [vmem:[%s10053_s3 + $0x2b0] sm:$0xff]  }
 0x197   : > { %7360 = vmatpush3.bf16.msra.mxu0 %v8150_v51  ;;  %v8181_v51 = vld [vmem:[%s10053_s3 + $0x2e8] sm:$0xff]  }
 0x198   : > { %7361 = vmatprep.subr.bf16.mxu0 %v8151_v54  ;;  %v6731_v54 = vcombine.high %v9255_v37, %v9248_v50 }
 0x19a   : > { %2623 = vmatmul.mubr.bf16.gmra.mrb[76].mxu0 %v6618_v42  ;;  %v8158_v42 = vld [vmem:[%s10053_s3 + $0x208] sm:$0xff]  }
 0x19b   : > { %7362 = vmatpush3.bf16.msra.mxu0 %v8152_v7  ;;  %2663 = vmatprep.mubr.bf16.mxu0 %v6609_v47  ;;  %v8182_v7 = vld [vmem:[%s10053_s3 + $0x2a8] sm:$0xff]   ;;  %v6730_v47 = vcombine.low %v9255_v37, %v9248_v50 }
 0x19c   : > { %7363 = vmatprep.subr.bf16.mxu0 %v8153_v21  ;;  %v8183_v21 = vld [vmem:[%s10053_s3 + $0x2f0] sm:$0xff]  }
 0x19f   : > { %7364 = vmatpush3.bf16.msra.mxu0 %v8154_v53  ;;  %v2697_v53 = vld [vmem:[#allocation2 + $0x28] sm:$0xff] }
 0x1a0   : > { %7389 = vmatprep.subr.bf16.mxu0 %v8155_v23  ;;  %v8185_v23 = vld [vmem:[%s10053_s3 + $0x2f8] sm:$0xff]  }
 0x1a2   : > { %2664 = vmatmul.mubr.bf16.vlgmr.msra.gmra.mrb[80].mxu0 %v6608_v26  ;;  %v8186_v26 = vld [vmem:[%s10053_s3 + $0x2b8] sm:$0xff]  }
 0x1a3   : > { %7390 = vmatpush3.bf16.msra.mxu0 %v8156_v24  ;;  %2671 = vmatprep.mubr.bf16.mxu0 %v6613_v13  ;;  %v8162_v13 = vld [vmem:[%s10053_s3 + $0x218] sm:$0xff]   ;;  %v6721_v24 = vcombine.high %v2697_v53, %v8879_v61 }
 0x1a4   : > { %7391 = vmatprep.subr.bf16.mxu0 %v8157_v12  ;;  %v8187_v12 = vld [vmem:[%s10053_s3 + $0x340] sm:$0xff]  }
 0x1a7   : > { %7392 = vmatpush3.bf16.msra.mxu0 %v8158_v42  ;;  %v8188_v42 = vld [vmem:[%s10053_s3 + $0x300] sm:$0xff]  }
 0x1a8   : > { %7393 = vmatprep.subr.bf16.mxu0 %v8159_v25  ;;  %v6720_v25 = vcombine.low %v2697_v53, %v8879_v61  ;;  %v8191_v61 = vld [vmem:[%s10053_s3 + $0x350] sm:$0xff]  }
 0x1aa   : > { %2672 = vmatmul.mubr.bf16.gmra.mrb[84].mxu0 %v6612_v16  ;;  %v8165_v16 = vld [vmem:[%s10053_s3 + $0x268] sm:$0xff]  }
 0x1ab   : > { %7394 = vmatpush3.bf16.msra.mxu0 %v8160_v49  ;;  %2679 = vmatprep.mubr.bf16.mxu0 %v6617_v60  ;;  %v8166_v60 = vld [vmem:[%s10053_s3 + $0x228] sm:$0xff]  }
 0x1ac   : > { %7395 = vmatprep.subr.bf16.mxu0 %v8161_v27  ;;  %v8189_v49 = vld [vmem:[%s10053_s3 + $0x348] sm:$0xff]  }
 0x1ad   : > { %v8190_v27 = vld [vmem:[%s10053_s3 + $0x308] sm:$0xff]  }
 0x1af   : > { %7396 = vmatpush3.bf16.msra.mxu0 %v8162_v13  ;;  %v3248_v13 = vshrl.u32 %v9187_v63, 16 }
 0x1b0   : > { %7397 = vmatprep.subr.bf16.mxu0 %v8163_v29  ;;  %v3251_v29 = vshll.u32 %v9187_v63, 16 }
 0x1b2   : > { %2680 = vmatmul.mubr.bf16.gmra.mrb[88].mxu0 %v6616_v20  ;;  %v8168_v20 = vld [vmem:[%s10053_s3 + $0x230] sm:$0xff]  }
 0x1b3   : > { %7398 = vmatpush3.bf16.msra.mxu0 %v8164_v6  ;;  %2687 = vmatprep.mubr.bf16.mxu0 %v6621_v46  ;;  %v8169_v46 = vld [vmem:[%s10053_s3 + $0x278] sm:$0xff]   ;;  %v8192_v6 = vld [vmem:[%s10053_s3 + $0x310] sm:$0xff]  }
 0x1b4   : > { %7399 = vmatprep.subr.bf16.mxu0 %v8165_v16  ;;  %v3220_v16 = vshrl.u32 %v9192_v31, 16 }
 0x1b7   : > { %7400 = vmatpush3.bf16.msra.mxu0 %v8166_v60  ;;  %v3223_v60 = vshll.u32 %v9192_v31, 16 }
 0x1b8   : > { %7401 = vmatprep.subr.bf16.mxu0 %v8167_v30  ;;  %v3250_v30 = vrot.slane %v3248_v13, 4 }
 0x1ba   : > { %2688 = vmatmul.mubr.bf16.gmra.mrb[92].mxu0 %v6620_v22  ;;  %v6718_v22 = vcombine.low %v9192_v31, %v9187_v63  ;;  %v3253_v63 = vrot.slane %v3251_v29, 5  ;;  %v8195_v31 = vld [vmem:[%s10053_s3 + $0x360] sm:$0xff]  }
 0x1bb   : > { %7402 = vmatpush3.bf16.msra.mxu0 %v8168_v20  ;;  %3081 = vmatprep.mubr.bf16.mxu0 %v6719_v34  ;;  %v8194_v20 = vld [vmem:[%s10053_s3 + $0x318] sm:$0xff]   ;;  %v3225_v34 = vrot.slane %v3223_v60, 5 }
 0x1bc   : > { %7403 = vmatprep.subr.bf16.mxu0 %v8169_v46  ;;  %v3222_v46 = vrot.slane %v3220_v16, 4 }
 0x1bf   : > { %7404 = vmatpush3.bf16.msra.mxu0 %v8170_v41  ;;  %v3304_v41 = vshrl.u32 %v9208_v15, 16 }
 0x1c0   : > { %7429 = vmatprep.subr.bf16.mxu0 %v8171_v44  ;;  %v3307_v44 = vshll.u32 %v9208_v15, 16 }
 0x1c2   : > { %3082 = vmatmul.mubr.bf16.vlgmr.msra.gmra.mrb[96].mxu0 %v6718_v22  ;;  %v3279_v22 = vshll.u32 %v9215_v33, 16 }
 0x1c3   : > { %7430 = vmatpush3.bf16.msra.mxu0 %v8172_v45  ;;  %3089 = vmatprep.mubr.bf16.mxu0 %v6723_v58  ;;  %v3276_v45 = vshrl.u32 %v9215_v33, 16  ;;  %v3226_v58 = vor.u32 %v3225_v34, %v3222_v46  ;;  %v8198_v33 = vld [vmem:[%s10053_s3 + $0x328] sm:$0xff]   ;;  %v3391_v46 = vshll.u32 %v9255_v37, 16 }
 0x1c4   : > { %7431 = vmatprep.subr.bf16.mxu0 %v8173_v48  ;;  %v8197_v48 = vld [vmem:[%s10053_s3 + $0x368] sm:$0xff]  }
 0x1c5   : > { %v3227_v28 = vrot.slane %v3226_v58, 4 }
 0x1c7   : > { %7432 = vmatpush3.bf16.msra.mxu0 %v8174_v2  ;;  %v3257_v2 = vshll.u32 %v3193_v56, 16 }
 0x1c8   : > { %7433 = vmatprep.subr.bf16.mxu0 %v8175_v59  ;;  %v3229_v59 = vshll.u32 %v3189_v55, 16 }
 0x1ca   : > { %3090 = vmatmul.mubr.bf16.gmra.mrb[100].mxu0 %v6722_v5  ;;  %v3309_v5 = vrot.slane %v3307_v44, 5 }
 0x1cb   : > { %7434 = vmatpush3.bf16.msra.mxu0 %v8176_v4  ;;  %3097 = vmatprep.mubr.bf16.mxu0 %v6727_v10  ;;  %v3306_v4 = vrot.slane %v3304_v41, 4  ;;  %v3281_v10 = vrot.slane %v3279_v22, 5  ;;  %v3217_v22 = vld [vmem:[#allocation2 + $0x110] sm:$0x11] }
 0x1cc   : > { %7435 = vmatprep.subr.bf16.mxu0 %v8177_v9  ;;  %v3278_v9 = vrot.slane %v3276_v45, 4  ;;  %v3393_v45 = vrot.slane %v3391_v46, 5 }
 0x1cf   : > { %7436 = vmatpush3.bf16.msra.mxu0 %v8178_v17  ;;  %v3231_v17 = vrot.slane %v3229_v59, 5  ;;  %v3213_v59 = vld [vmem:[#allocation2 + $0xf0] sm:$0x11] }
 0x1d0   : > { %7437 = vmatprep.subr.bf16.mxu0 %v8179_v11  ;;  %v3201_v11 = vld [vmem:[#allocation2 + $0x90] sm:$0x11] }
 0x1d1   : > { %v3313_v53 = vshll.u32 %v3201_v11, 16 }
 0x1d2   : > { %3098 = vmatmul.mubr.bf16.gmra.mrb[104].mxu0 %v6726_v32  ;;  %v3197_v32 = vld [vmem:[#allocation2 + $0x70] sm:$0x11] }
 0x1d3   : > { %7438 = vmatpush3.bf16.msra.mxu0 %v8180_v43  ;;  %3105 = vmatprep.mubr.bf16.mxu0 %v6731_v54  ;;  %v3363_v54 = vshll.u32 %v9228_v0, 16 }
 0x1d4   : > { %7439 = vmatprep.subr.bf16.mxu0 %v8181_v51  ;;  %v3360_v51 = vshrl.u32 %v9228_v0, 16 }
 0x1d7   : > { %7440 = vmatpush3.bf16.msra.mxu0 %v8182_v7  ;;  %v8200_v7 = vld [vmem:[%s10053_s3 + $0x330] sm:$0xff]  }
 0x1d8   : > { %7441 = vmatprep.subr.bf16.mxu0 %v8183_v21  ;;  %v3282_v21 = vor.u32 %v3281_v10, %v3278_v9  ;;  %v3397_v9 = vshll.u32 %v3213_v59, 16 }
 0x1da   : > { %3106 = vmatmul.mubr.bf16.gmra.mrb[108].mxu0 %v6730_v47  ;;  %v8201_v47 = vld [vmem:[%s10053_s3 + $0x378] sm:$0xff]  }
 0x1db   : > { %7442 = vmatpush3.bf16.msra.mxu0 %v8184_v3  ;;  %3146 = vmatprep.mubr.bf16.mxu0 %v6721_v24  ;;  %v3232_v3 = vsel %vm8589_vm10, %v3227_v28, %v3231_v17  ;;  %v3335_v24 = vshll.u32 %v9235_v62, 16 }
 0x1dc   : > { %7443 = vmatprep.subr.bf16.mxu0 %v8185_v23  ;;  %v3332_v23 = vshrl.u32 %v9235_v62, 16 }
 0x1dd   : > { %v3337_v62 = vrot.slane %v3335_v24, 5 }
 0x1de   : > { %v3334_v13 = vrot.slane %v3332_v23, 4 }
 0x1df   : > { %7444 = vmatpush3.bf16.msra.mxu0 %v8186_v26  ;;  %v3285_v26 = vshll.u32 %v3197_v32, 16  ;;  %v3399_v32 = vrot.slane %v3397_v9, 5 }
 0x1e0   : > { %7469 = vmatprep.subr.bf16.mxu0 %v8187_v12 }
 0x1e1   : > { %v3287_v29 = vrot.slane %v3285_v26, 5 }
 0x1e2   : > { %3147 = vmatmul.mubr.bf16.vlgmr.msra.gmra.mrb[112].mxu0 %v6720_v25  ;;  %v3365_v25 = vrot.slane %v3363_v54, 5 }
 0x1e3   : > { %7470 = vmatpush3.bf16.msra.mxu0 %v8188_v42  ;;  %3154 = vmatprep.mubr.bf16.mxu0 %v6725_v18  ;;  %v8193_v18 = vld [vmem:[%s10053_s3 + $0x358] sm:$0xff]   ;;  %v3362_v42 = vrot.slane %v3360_v51, 4 }
 0x1e4   : > { %7471 = vmatprep.subr.bf16.mxu0 %v8189_v49  ;;  %v8202_v49 = vld [vmem:[%s10053_s3 + $0x338] sm:$0xff]  }
 0x1e5   : > { %v3366_v8 = vor.u32 %v3365_v25, %v3362_v42 }
 0x1e7   : > { %7472 = vmatpush3.bf16.msra.mxu0 %v8190_v27  ;;  %v3283_v27 = vrot.slane %v3282_v21, 4  ;;  %v3367_v55 = vrot.slane %v3366_v8, 4 }
 0x1e8   : > { %7473 = vmatprep.subr.bf16.mxu0 %v8191_v61  ;;  %v3315_v61 = vrot.slane %v3313_v53, 5 }
 0x1e9   : > { %v3288_v60 = vsel %vm8589_vm10, %v3283_v27, %v3287_v29 }
 0x1ea   : > { %3155 = vmatmul.mubr.bf16.gmra.mrb[116].mxu0 %v6724_v40  ;;  %v3254_v40 = vor.u32 %v3253_v63, %v3250_v30  ;;  %v3205_v30 = vld [vmem:[#allocation2 + $0xb0] sm:$0x11]  ;;  %v3338_v63 = vor.u32 %v3337_v62, %v3334_v13 }
 0x1eb   : > { %7474 = vmatpush3.bf16.msra.mxu0 %v8192_v6  ;;  %3162 = vmatprep.mubr.bf16.mxu0 %v6729_v38  ;;  %v8196_v38 = vld [vmem:[%s10053_s3 + $0x320] sm:$0xff]   ;;  %v3209_v6 = vld [vmem:[#allocation2 + $0xd0] sm:$0x11]  ;;  %v3341_v56 = vshll.u32 %v3205_v30, 16 }
 0x1ec   : > { %7475 = vmatprep.subr.bf16.mxu0 %v8193_v18  ;;  %v3255_v15 = vrot.slane %v3254_v40, 4  ;;  %v3419_v18 = vshll.u32 %v9248_v50, 16 }
 0x1ee   : > { %v3421_v41 = vrot.slane %v3419_v18, 5 }
 0x1ef   : > { %7476 = vmatpush3.bf16.msra.mxu0 %v8194_v20  ;;  %v3369_v20 = vshll.u32 %v3209_v6, 16 }
 0x1f0   : > { %7477 = vmatprep.subr.bf16.mxu0 %v8195_v31  ;;  %v3388_v31 = vshrl.u32 %v9255_v37, 16 }
 0x1f1   : > { %v3371_v44 = vrot.slane %v3369_v20, 5 }
 0x1f2   : > { %3163 = vmatmul.mubr.bf16.gmra.mrb[120].mxu0 %v6728_v36  ;;  %v3259_v36 = vrot.slane %v3257_v2, 5 }
 0x1f3   : > { %7478 = vmatpush3.bf16.msra.mxu0 %v8196_v38  ;;  %3170 = vmatprep.mubr.bf16.mxu0 %v6733_v39  ;;  %v3310_v39 = vor.u32 %v3309_v5, %v3306_v4  ;;  %v3390_v38 = vrot.slane %v3388_v31, 4  ;;  %v3372_v58 = vsel %vm8589_vm10, %v3367_v55, %v3371_v44  ;;  %v3425_v5 = vshll.u32 %v3217_v22, 16 }
 0x1f4   : > { %7479 = vmatprep.subr.bf16.mxu0 %v8197_v48  ;;  %v3260_v43 = vsel %vm8589_vm10, %v3255_v15, %v3259_v36  ;;  %v3343_v48 = vrot.slane %v3341_v56, 5 }
 0x1f5   : > { %v6831_v0 = vcombine.high %v3232_v3, %v3260_v43  ;;  %v3311_v12 = vrot.slane %v3310_v39, 4  ;;  %v6830_v16 = vcombine.low %v3232_v3, %v3260_v43  ;;  %v3394_v4 = vor.u32 %v3393_v45, %v3390_v38 }
 0x1f6   : > { %v3427_v36 = vrot.slane %v3425_v5, 5 }
 0x1f7   : > { %7480 = vmatpush3.bf16.msra.mxu0 %v8198_v33  ;;  %v3316_v57 = vsel %vm8589_vm10, %v3311_v12, %v3315_v61  ;;  %v3395_v28 = vrot.slane %v3394_v4, 4 }
 0x1f8   : > { %7481 = vmatprep.subr.bf16.mxu0 %v8199_v1  ;;  %v6835_v34 = vcombine.high %v3288_v60, %v3316_v57  ;;  %v6834_v15 = vcombine.low %v3288_v60, %v3316_v57 }
 0x1f9   : > { %v3400_v21 = vsel %vm8589_vm10, %v3395_v28, %v3399_v32 }
 0x1fa   : > { %3171 = vmatmul.mubr.bf16.gmra.mrb[124].mxu0 %v6732_v35  ;;  %v3416_v35 = vshrl.u32 %v9248_v50, 16  ;;  %v3339_v50 = vrot.slane %v3338_v63, 4 }
 0x1fb   : > { %7482 = vmatpush3.bf16.msra.mxu0 %v8200_v7  ;;  %3796 = vmatprep.mubr.bf16.mxu0 %v6831_v0 }
 0x1fc   : > { %7483 = vmatprep.subr.bf16.mxu0 %v8201_v47  ;;  %v3418_v40 = vrot.slane %v3416_v35, 4  ;;  %v3344_v37 = vsel %vm8589_vm10, %v3339_v50, %v3343_v48 }
 0x1fd   : > { %v6839_v33 = vcombine.high %v3344_v37, %v3372_v58  ;;  %v6838_v7 = vcombine.low %v3344_v37, %v3372_v58 }
 0x1fe   : > { %v3422_v2 = vor.u32 %v3421_v41, %v3418_v40 }
 0x1ff   : > { %7484 = vmatpush3.bf16.msra.mxu0 %v8202_v49 }
 0x200   : > { %v3423_v10 = vrot.slane %v3422_v2, 4 }
 0x202   : > { %3797 = vmatmul.mubr.bf16.vlgmr.msra.gmra.mrb[128].mxu0 %v6830_v16  ;;  %v3428_v39 = vsel %vm8589_vm10, %v3423_v10, %v3427_v36 }
 0x203   : > { %3804 = vmatprep.mubr.bf16.mxu0 %v6835_v34  ;;  %v6843_v3 = vcombine.high %v3400_v21, %v3428_v39  ;;  %v6842_v26 = vcombine.low %v3400_v21, %v3428_v39 }
 0x20a   : > { %3805 = vmatmul.mubr.bf16.gmra.mrb[132].mxu0 %v6834_v15 }
 0x20b   : > { %3812 = vmatprep.mubr.bf16.mxu0 %v6839_v33  ;;  %v7245_v1 = vpop.f32.mrb[32].mxu0 }
 0x20c   : > { %v7246_v17 = vpop.f32.mrb[33].mxu0 }
 0x20d   : > { %v7247_v11 = vadd.f32 %v7246_v17, %v7245_v1  ;;  %v7248_v43 = vpop.f32.mrb[34].mxu0 }
 0x20e   : > { %v7249_v51 = vpop.f32.mrb[35].mxu0 }
 0x20f   : > { %v7250_v54 = vadd.f32 %v7249_v51, %v7248_v43 }
 0x212   : > { %3813 = vmatmul.mubr.bf16.gmra.mrb[136].mxu0 %v6838_v7 }
 0x213   : > { %3820 = vmatprep.mubr.bf16.mxu0 %v6843_v3  ;;  %v7251_v47 = vpop.f32.mrb[36].mxu0 }
 0x214   : > { %v7252_v53 = vpop.f32.mrb[37].mxu0 }
 0x215   : > { %v7253_v23 = vadd.f32 %v7252_v53, %v7251_v47  ;;  %v7254_v24 = vpop.f32.mrb[38].mxu0 }
 0x216   : > { %v7255_v0 = vpop.f32.mrb[39].mxu0 }
 0x217   : > { %v7256_v12 = vadd.f32 %v7255_v0, %v7254_v24 }
 0x21a   : > { %3821 = vmatmul.mubr.bf16.gmra.mrb[140].mxu0 %v6842_v26 }
 0x225   : > { %v7257_v42 = vpop.f32.mrb[40].mxu0 }
 0x226   : > { %v7258_v25 = vpop.f32.mrb[41].mxu0 }
 0x227   : > { %v7259_v49 = vadd.f32 %v7258_v25, %v7257_v42  ;;  %v7260_v27 = vpop.f32.mrb[42].mxu0  ;;  %v8203_v42 = vld [vmem:[%s10055_s5] sm:$0xff]  }
 0x228   : > { %v7261_v61 = vpop.f32.mrb[43].mxu0  ;;  %7719 = vmatprep.subr.bf16.mxu0 %v8203_v42 }
 0x229   : > { %v7262_v13 = vadd.f32 %v7261_v61, %v7260_v27  ;;  %7720 = vmatpush3.bf16.msra.mxu0 %v8203_v42 }
 0x22d   : > { %v7263_v62 = vpop.f32.mrb[44].mxu0 }
 0x22e   : > { %v7264_v29 = vpop.f32.mrb[45].mxu0 }
 0x22f   : > { %v7265_v6 = vadd.f32 %v7264_v29, %v7263_v62  ;;  %v7266_v57 = vpop.f32.mrb[46].mxu0  ;;  %v7525_v35 = vpop.f32.mrb[0].mxu1 }
 0x230   : > { %v7267_v8 = vpop.f32.mrb[47].mxu0  ;;  %v7526_v16 = vpop.f32.mrb[1].mxu1 }
 0x231   : > { %v7268_v18 = vadd.f32 %v7267_v8, %v7266_v57  ;;  %v9379_v60 = vadd.f32 %v7526_v16, %v7525_v35  ;;  %v7528_v30 = vpop.f32.mrb[2].mxu1  ;;  %v8205_v35 = vld [vmem:[%s10055_s5 + $0x10] sm:$0xff]  }
 0x232   : > { %v7529_v63 = vpop.f32.mrb[3].mxu1 }
 0x233   : > { %v9381_v20 = vadd.f32 %v7529_v63, %v7528_v30 }
 0x235   : > { %v7285_v31 = vpop.f32.mrb[48].mxu0 }
 0x236   : > { %v7286_v46 = vpop.f32.mrb[49].mxu0 }
 0x237   : > { %v7287_v34 = vadd.f32 %v7286_v46, %v7285_v31  ;;  %v7288_v56 = vpop.f32.mrb[50].mxu0  ;;  %v7531_v40 = vpop.f32.mrb[4].mxu1 }
 0x238   : > { %v7289_v55 = vpop.f32.mrb[51].mxu0  ;;  %v7532_v44 = vpop.f32.mrb[5].mxu1 }
 0x239   : > { %v2264_v41 = vadd.f32 %v7287_v34, %v7247_v11  ;;  %v7290_v50 = vadd.f32 %v7289_v55, %v7288_v56  ;;  %v9383_v38 = vadd.f32 %v7532_v44, %v7531_v40  ;;  %v7534_v45 = vpop.f32.mrb[6].mxu1  ;;  %v8206_v56 = vld [vmem:[%s10055_s5 + $0x18] sm:$0xff]   ;;  %v8207_v55 = vld [vmem:[%s10055_s5 + $0x20] sm:$0xff]  }
 0x23a   : > { %v7535_v48 = vpop.f32.mrb[7].mxu1 }
 0x23b   : > { %v2267_v22 = vadd.f32 %v7290_v50, %v7250_v54  ;;  %v9385_v58 = vadd.f32 %v7535_v48, %v7534_v45 }
 0x23d   : > { %v7291_v2 = vpop.f32.mrb[52].mxu0 }
 0x23e   : > { %v7292_v59 = vpop.f32.mrb[53].mxu0 }
 0x23f   : > { %v7293_v15 = vadd.f32 %v7292_v59, %v7291_v2  ;;  %v7294_v37 = vpop.f32.mrb[54].mxu0  ;;  %v7537_v5 = vpop.f32.mrb[8].mxu1 }
 0x240   : > { %v7295_v4 = vpop.f32.mrb[55].mxu0  ;;  %v7538_v10 = vpop.f32.mrb[9].mxu1 }
 0x241   : > { %v2272_v33 = vadd.f32 %v7293_v15, %v7253_v23  ;;  %v7296_v9 = vadd.f32 %v7295_v4, %v7294_v37  ;;  %v9387_v1 = vadd.f32 %v7538_v10, %v7537_v5  ;;  %v7540_v28 = vpop.f32.mrb[10].mxu1 }
 0x242   : > { %v7541_v17 = vpop.f32.mrb[11].mxu1 }
 0x243   : > { %v2275_v36 = vadd.f32 %v7296_v9, %v7256_v12  ;;  %v9389_v11 = vadd.f32 %v7541_v17, %v7540_v28  ;;  %v8208_v28 = vld [vmem:[%s10055_s5 + $0x28] sm:$0xff]  }
 0x245   : > { %v7297_v43 = vpop.f32.mrb[56].mxu0 }
 0x246   : > { %v7298_v32 = vpop.f32.mrb[57].mxu0 }
 0x247   : > { %v7299_v39 = vadd.f32 %v7298_v32, %v7297_v43  ;;  %v7300_v51 = vpop.f32.mrb[58].mxu0  ;;  %v7543_v7 = vpop.f32.mrb[12].mxu1 }
 0x248   : > { %v7301_v54 = vpop.f32.mrb[59].mxu0  ;;  %v7544_v47 = vpop.f32.mrb[13].mxu1 }
 0x249   : > { %v2280_v21 = vadd.f32 %v7299_v39, %v7259_v49  ;;  %v7302_v3 = vadd.f32 %v7301_v54, %v7300_v51  ;;  %v9391_v53 = vadd.f32 %v7544_v47, %v7543_v7  ;;  %v7546_v23 = vpop.f32.mrb[14].mxu1  ;;  %v8210_v39 = vld [vmem:[%s10055_s5 + $0x38] sm:$0xff]  }
 0x24a   : > { %v7547_v0 = vpop.f32.mrb[15].mxu1 }
 0x24b   : > { %v2283_v24 = vadd.f32 %v7302_v3, %v7262_v13  ;;  %v9393_v26 = vadd.f32 %v7547_v0, %v7546_v23  ;;  %v8204_v13 = vld [vmem:[%s10055_s5 + $0x8] sm:$0xff]  }
 0x24c   : > { %7721 = vmatprep.subr.bf16.mxu0 %v8204_v13 }
 0x24d   : > { %v7303_v12 = vpop.f32.mrb[60].mxu0  ;;  %7722 = vmatpush3.bf16.msra.mxu0 %v8204_v13 }
 0x24e   : > { %v7304_v25 = vpop.f32.mrb[61].mxu0  ;;  %7723 = vmatprep.subr.bf16.mxu0 %v8205_v35 }
 0x24f   : > { %v7305_v27 = vadd.f32 %v7304_v25, %v7303_v12  ;;  %v7306_v61 = vpop.f32.mrb[62].mxu0 }
 0x250   : > { %v7307_v62 = vpop.f32.mrb[63].mxu0 }
 0x251   : > { %v2288_v49 = vadd.f32 %v7305_v27, %v7265_v6  ;;  %v7308_v29 = vadd.f32 %v7307_v62, %v7306_v61  ;;  %7724 = vmatpush3.bf16.msra.mxu0 %v8205_v35  ;;  %v471_v61 = vld [vmem:[#allocation3 + $0x18] sm:$0x1] }
 0x252   : > { %7725 = vmatprep.subr.bf16.mxu0 %v8206_v56 }
 0x253   : > { %v2291_v57 = vadd.f32 %v7308_v29, %v7268_v18 }
 0x255   : > { %v7325_v8 = vpop.f32.mrb[64].mxu0  ;;  %7726 = vmatpush3.bf16.msra.mxu0 %v8206_v56 }
 0x256   : > { %v7326_v16 = vpop.f32.mrb[65].mxu0  ;;  %7727 = vmatprep.subr.bf16.mxu0 %v8207_v55 }
 0x257   : > { %v7327_v30 = vadd.f32 %v7326_v16, %v7325_v8  ;;  %v7328_v63 = vpop.f32.mrb[66].mxu0 }
 0x258   : > { %v7329_v31 = vpop.f32.mrb[67].mxu0 }
 0x259   : > { %v2601_v46 = vadd.f32 %v7327_v30, %v2264_v41  ;;  %v7330_v34 = vadd.f32 %v7329_v31, %v7328_v63  ;;  %7728 = vmatpush3.bf16.msra.mxu0 %v8207_v55 }
 0x25a   : > { %7729 = vmatprep.subr.bf16.mxu0 %v8208_v28 }
 0x25b   : > { %v2604_v6 = vadd.f32 %v7330_v34, %v2267_v22 }
 0x25d   : > { %v7331_v18 = vpop.f32.mrb[68].mxu0  ;;  %7730 = vmatpush3.bf16.msra.mxu0 %v8208_v28 }
 0x25e   : > { %v7332_v40 = vpop.f32.mrb[69].mxu0 }
 0x25f   : > { %v7333_v50 = vadd.f32 %v7332_v40, %v7331_v18  ;;  %v7334_v44 = vpop.f32.mrb[70].mxu0 }
 0x260   : > { %v7335_v45 = vpop.f32.mrb[71].mxu0 }
 0x261   : > { %v2609_v41 = vadd.f32 %v7333_v50, %v2272_v33  ;;  %v7336_v48 = vadd.f32 %v7335_v45, %v7334_v44  ;;  %v8209_v33 = vld [vmem:[%s10055_s5 + $0x30] sm:$0xff]  }
 0x262   : > { %7731 = vmatprep.subr.bf16.mxu0 %v8209_v33 }
 0x263   : > { %v2612_v22 = vadd.f32 %v7336_v48, %v2275_v36  ;;  %7732 = vmatpush3.bf16.msra.mxu0 %v8209_v33 }
 0x264   : > { %7733 = vmatprep.subr.bf16.mxu0 %v8210_v39 }
 0x265   : > { %v7337_v2 = vpop.f32.mrb[72].mxu0 }
 0x266   : > { %v7338_v59 = vpop.f32.mrb[73].mxu0 }
 0x267   : > { %v7339_v15 = vadd.f32 %v7338_v59, %v7337_v2  ;;  %v7340_v37 = vpop.f32.mrb[74].mxu0  ;;  %7734 = vmatpush3.bf16.msra.mxu0 %v8210_v39 }
 0x268   : > { %v7341_v4 = vpop.f32.mrb[75].mxu0 }
 0x269   : > { %v2617_v5 = vadd.f32 %v7339_v15, %v2280_v21  ;;  %v7342_v9 = vadd.f32 %v7341_v4, %v7340_v37 }
 0x26b   : > { %v2620_v10 = vadd.f32 %v7342_v9, %v2283_v24 }
 0x26d   : > { %v7343_v17 = vpop.f32.mrb[76].mxu0 }
 0x26e   : > { %v7344_v36 = vpop.f32.mrb[77].mxu0 }
 0x26f   : > { %v7345_v43 = vadd.f32 %v7344_v36, %v7343_v17  ;;  %v7346_v32 = vpop.f32.mrb[78].mxu0 }
 0x270   : > { %v7347_v51 = vpop.f32.mrb[79].mxu0 }
 0x271   : > { %v2625_v54 = vadd.f32 %v7345_v43, %v2288_v49  ;;  %v7348_v7 = vadd.f32 %v7347_v51, %v7346_v32  ;;  %v503_v49 = vld [vmem:[#allocation3 + $0x1c] sm:$0x1] }
 0x272   : > { %v504_v8 = vsel %vm9425_vm14, 0, %v503_v49 }
 0x273   : > { %v2628_v21 = vadd.f32 %v7348_v7, %v2291_v57  ;;  %v472_v57 = vsel %vm8423_vm5, 0, %v471_v61  ;;  %505 = vst [vmem:[#allocation3 + $0x1c] sm:$0x1] %v504_v8 }
 0x274   : > { %473 = vst [vmem:[#allocation3 + $0x18] sm:$0x1] %v472_v57 }
 0x275   : > { %v7365_v3 = vpop.f32.mrb[80].mxu0 }
 0x276   : > { %v7366_v47 = vpop.f32.mrb[81].mxu0 }
 0x277   : > { %v7367_v23 = vadd.f32 %v7366_v47, %v7365_v3  ;;  %v7368_v24 = vpop.f32.mrb[82].mxu0 }
 0x278   : > { %v7369_v0 = vpop.f32.mrb[83].mxu0 }
 0x279   : > { %v9419_v12 = vadd.f32 %v7367_v23, %v2601_v46  ;;  %v7370_v42 = vadd.f32 %v7369_v0, %v7368_v24 }
 0x27b   : > { %v9421_v25 = vadd.f32 %v7370_v42, %v2604_v6 }
 0x27d   : > { %v7371_v27 = vpop.f32.mrb[84].mxu0 }
 0x27e   : > { %v7372_v29 = vpop.f32.mrb[85].mxu0 }
 0x27f   : > { %v7373_v13 = vadd.f32 %v7372_v29, %v7371_v27  ;;  %v7374_v35 = vpop.f32.mrb[86].mxu0 }
 0x280   : > { %v7375_v16 = vpop.f32.mrb[87].mxu0 }
 0x281   : > { %v2674_v30 = vadd.f32 %v7373_v13, %v2609_v41  ;;  %v7376_v63 = vadd.f32 %v7375_v16, %v7374_v35 }
 0x283   : > { %v2677_v31 = vadd.f32 %v7376_v63, %v2612_v22 }
 0x285   : > { %v7377_v46 = vpop.f32.mrb[88].mxu0 }
 0x286   : > { %v7378_v34 = vpop.f32.mrb[89].mxu0 }
 0x287   : > { %v7379_v6 = vadd.f32 %v7378_v34, %v7377_v46  ;;  %v7380_v18 = vpop.f32.mrb[90].mxu0 }
 0x288   : > { %v7381_v56 = vpop.f32.mrb[91].mxu0 }
 0x289   : > { %v2682_v55 = vadd.f32 %v7379_v6, %v2617_v5  ;;  %v7382_v40 = vadd.f32 %v7381_v56, %v7380_v18 }
 0x28b   : > { %v2685_v50 = vadd.f32 %v7382_v40, %v2620_v10 }
 0x28d   : > { %v7383_v44 = vpop.f32.mrb[92].mxu0 }
 0x28e   : > { %v7384_v45 = vpop.f32.mrb[93].mxu0 }
 0x28f   : > { %v7385_v48 = vadd.f32 %v7384_v45, %v7383_v44  ;;  %v7386_v2 = vpop.f32.mrb[94].mxu0 }
 0x290   : > { %v7387_v59 = vpop.f32.mrb[95].mxu0 }
 0x291   : > { %v9433_v15 = vadd.f32 %v7385_v48, %v2625_v54  ;;  %v7388_v37 = vadd.f32 %v7387_v59, %v7386_v2 }
 0x293   : > { %v9435_v4 = vadd.f32 %v7388_v37, %v2628_v21 }
 0x295   : > { %v7405_v41 = vpop.f32.mrb[96].mxu0 }
 0x296   : > { %v7406_v22 = vpop.f32.mrb[97].mxu0 }
 0x297   : > { %v7407_v9 = vadd.f32 %v7406_v22, %v7405_v41  ;;  %v7408_v28 = vpop.f32.mrb[98].mxu0 }
 0x298   : > { %v7409_v33 = vpop.f32.mrb[99].mxu0 }
 0x299   : > { %v7410_v17 = vadd.f32 %v7409_v33, %v7408_v28 }
 0x29d   : > { %v7411_v36 = vpop.f32.mrb[100].mxu0 }
 0x29e   : > { %v7412_v5 = vpop.f32.mrb[101].mxu0 }
 0x29f   : > { %v7413_v43 = vadd.f32 %v7412_v5, %v7411_v36  ;;  %v7414_v10 = vpop.f32.mrb[102].mxu0 }
 0x2a0   : > { %v7415_v32 = vpop.f32.mrb[103].mxu0 }
 0x2a1   : > { %v7416_v39 = vadd.f32 %v7415_v32, %v7414_v10 }
 0x2a5   : > { %v7417_v51 = vpop.f32.mrb[104].mxu0 }
 0x2a6   : > { %v7418_v7 = vpop.f32.mrb[105].mxu0 }
 0x2a7   : > { %v7419_v3 = vadd.f32 %v7418_v7, %v7417_v51  ;;  %v7420_v54 = vpop.f32.mrb[106].mxu0 }
 0x2a8   : > { %v7421_v47 = vpop.f32.mrb[107].mxu0 }
 0x2a9   : > { %v7422_v23 = vadd.f32 %v7421_v47, %v7420_v54 }
 0x2ad   : > { %v7423_v21 = vpop.f32.mrb[108].mxu0 }
 0x2ae   : > { %v7424_v24 = vpop.f32.mrb[109].mxu0 }
 0x2af   : > { %v7425_v0 = vadd.f32 %v7424_v24, %v7423_v21  ;;  %v7426_v42 = vpop.f32.mrb[110].mxu0 }
 0x2b0   : > { %v7427_v27 = vpop.f32.mrb[111].mxu0 }
 0x2b1   : > { %v7428_v61 = vadd.f32 %v7427_v27, %v7426_v42 }
 0x2b5   : > { %v7445_v49 = vpop.f32.mrb[112].mxu0 }
 0x2b6   : > { %v7446_v29 = vpop.f32.mrb[113].mxu0 }
 0x2b7   : > { %v7447_v57 = vadd.f32 %v7446_v29, %v7445_v49  ;;  %v7448_v8 = vpop.f32.mrb[114].mxu0 }
 0x2b8   : > { %v7449_v13 = vpop.f32.mrb[115].mxu0 }
 0x2b9   : > { %v3149_v35 = vadd.f32 %v7447_v57, %v7407_v9  ;;  %v7450_v16 = vadd.f32 %v7449_v13, %v7448_v8 }
 0x2bb   : > { %v3179_v63 = vadd.f32 %v3149_v35, %v9419_v12  ;;  %v3152_v46 = vadd.f32 %v7450_v16, %v7410_v17 }
 0x2bd   : > { %v3180_v34 = vadd.f32 %v3152_v46, %v9421_v25  ;;  %v7451_v6 = vpop.f32.mrb[116].mxu0 }
 0x2be   : > { %v7452_v18 = vpop.f32.mrb[117].mxu0 }
 0x2bf   : > { %v7453_v56 = vadd.f32 %v7452_v18, %v7451_v6  ;;  %v7454_v40 = vpop.f32.mrb[118].mxu0 }
 0x2c0   : > { %v7455_v44 = vpop.f32.mrb[119].mxu0 }
 0x2c1   : > { %v3157_v45 = vadd.f32 %v7453_v56, %v7413_v43  ;;  %v7456_v48 = vadd.f32 %v7455_v44, %v7454_v40 }
 0x2c3   : > { %v3181_v2 = vadd.f32 %v3157_v45, %v2674_v30  ;;  %v3160_v59 = vadd.f32 %v7456_v48, %v7416_v39 }
 0x2c5   : > { %v3182_v37 = vadd.f32 %v3160_v59, %v2677_v31  ;;  %v7457_v41 = vpop.f32.mrb[120].mxu0 }
 0x2c6   : > { %v7458_v22 = vpop.f32.mrb[121].mxu0 }
 0x2c7   : > { %v7459_v28 = vadd.f32 %v7458_v22, %v7457_v41  ;;  %v7460_v9 = vpop.f32.mrb[122].mxu0 }
 0x2c8   : > { %v7461_v33 = vpop.f32.mrb[123].mxu0 }
 0x2c9   : > { %v3165_v36 = vadd.f32 %v7459_v28, %v7419_v3  ;;  %v7462_v12 = vadd.f32 %v7461_v33, %v7460_v9 }
 0x2cb   : > { %v3183_v17 = vadd.f32 %v3165_v36, %v2682_v55  ;;  %v3168_v5 = vadd.f32 %v7462_v12, %v7422_v23  ;;  %v6878_v23 = vld [vmem:[%s10054_s4] ss:$0 sm:$0xff] }
 0x2cd   : > { %v3184_v25 = vadd.f32 %v3168_v5, %v2685_v50  ;;  %v7463_v10 = vpop.f32.mrb[124].mxu0 }
 0x2ce   : > { %v7464_v32 = vpop.f32.mrb[125].mxu0 }
 0x2cf   : > { %v7465_v51 = vadd.f32 %v7464_v32, %v7463_v10  ;;  %v7466_v7 = vpop.f32.mrb[126].mxu0 }
 0x2d0   : > { %v7467_v54 = vpop.f32.mrb[127].mxu0 }
 0x2d1   : > { %v3173_v43 = vadd.f32 %v7465_v51, %v7425_v0  ;;  %v7468_v47 = vadd.f32 %v7467_v54, %v7466_v7 }
 0x2d3   : > { %v3185_v30 = vadd.f32 %v3173_v43, %v9433_v15  ;;  %v3176_v31 = vadd.f32 %v7468_v47, %v7428_v61 }
 0x2d5   : > { %v3186_v39 = vadd.f32 %v3176_v31, %v9435_v4  ;;  %v7485_v21 = vpop.f32.mrb[128].mxu0 }
 0x2d6   : > { %v7486_v24 = vpop.f32.mrb[129].mxu0 }
 0x2d7   : > { %v7487_v42 = vadd.f32 %v7486_v24, %v7485_v21  ;;  %v7488_v3 = vpop.f32.mrb[130].mxu0 }
 0x2d8   : > { %v7489_v27 = vpop.f32.mrb[131].mxu0 }
 0x2d9   : > { %v3864_v55 = vadd.f32 %v9379_v60, %v7487_v42  ;;  %v7490_v50 = vadd.f32 %v7489_v27, %v7488_v3 }
 0x2db   : > { %v3894_v49 = vadd.f32 %v3864_v55, %v3179_v63  ;;  %v3867_v0 = vadd.f32 %v9381_v20, %v7490_v50  ;;  %v465_v55 = vld [vmem:[#allocation3 + $0x8] sm:$0x1]  ;;  %v497_v50 = vld [vmem:[#allocation3 + $0xc] sm:$0x1] }
 0x2dd   : > { %v3895_v29 = vadd.f32 %v3867_v0, %v3180_v34  ;;  %v7491_v15 = vpop.f32.mrb[132].mxu0  ;;  %v3909_v61 = vadd.f32 %v6878_v23, %v3894_v49  ;;  %v498_v49 = vsel %vm9425_vm14, 0, %v497_v50  ;;  %v506_v0 = vld [vmem:[#allocation3 + $0x24] sm:$0x1] }
 0x2de   : > { %v7492_v57 = vpop.f32.mrb[133].mxu0  ;;  %499 = vst [vmem:[#allocation3 + $0xc] sm:$0x1] %v498_v49 }
 0x2df   : > { %v7493_v4 = vadd.f32 %v7492_v57, %v7491_v15  ;;  %v7494_v8 = vpop.f32.mrb[134].mxu0  ;;  %v3910_v13 = vadd.f32 %v6878_v23, %v3895_v29  ;;  %v3917_v60 = vmax.f32 %v3909_v61, 0.0  ;;  %v500_v29 = vld [vmem:[#allocation3 + $0x14] sm:$0x1]  ;;  %v8211_v57 = vld [vmem:[%s10057_s7 + $0x40] sm:$0xff]  }
 0x2e0   : > { %v7495_v35 = vpop.f32.mrb[135].mxu0  ;;  %v501_v61 = vsel %vm9425_vm14, 0, %v500_v29  ;;  %7743 = vmatprep.subr.bf16.mxu1 %v8211_v57 }
 0x2e1   : > { %v3872_v16 = vadd.f32 %v9383_v38, %v7493_v4  ;;  %v7496_v46 = vadd.f32 %v7495_v35, %v7494_v8  ;;  %v3918_v6 = vmax.f32 %v3910_v13, 0.0  ;;  %v8212_v4 = vld [vmem:[%s10057_s7 + $0x48] sm:$0xff]   ;;  %502 = vst [vmem:[#allocation3 + $0x14] sm:$0x1] %v501_v61  ;;  %v483_v8 = vld [vmem:[#allocation3 + $0x38] sm:$0x1]  ;;  %7744 = vmatpush3.bf16.msra.mxu1 %v8211_v57 }
 0x2e2   : > { %v515_v13 = vld [vmem:[#allocation3 + $0x3c] sm:$0x1]  ;;  %v484_v35 = vsel %vm8423_vm5, 0, %v483_v8  ;;  %7745 = vmatprep.subr.bf16.mxu1 %v8212_v4 }
 0x2e3   : > { %v3896_v18 = vadd.f32 %v3872_v16, %v3181_v2  ;;  %v3875_v56 = vadd.f32 %v9385_v58, %v7496_v46  ;;  %v3925_v40 = vpack.c.bf16 %v3918_v6, %v3917_v60  ;;  %v516_v16 = vsel %vm9425_vm14, 0, %v515_v13  ;;  %485 = vst [vmem:[#allocation3 + $0x38] sm:$0x1] %v484_v35  ;;  %v8213_v46 = vld [vmem:[%s10057_s7 + $0x50] sm:$0xff]   ;;  %v8214_v60 = vld [vmem:[%s10057_s7 + $0x58] sm:$0xff]  }
 0x2e4   : > { %517 = vst [vmem:[#allocation3 + $0x3c] sm:$0x1] %v516_v16  ;;  %v477_v6 = vld [vmem:[#allocation3 + $0x28] sm:$0x1] }
 0x2e5   : > { %v3911_v63 = vadd.f32 %v6878_v23, %v3896_v18  ;;  %v3897_v44 = vadd.f32 %v3875_v56, %v3182_v37  ;;  %v7497_v20 = vpop.f32.mrb[136].mxu0  ;;  %7735 = vmatprep.mubr.bf16.mxu0 %v3925_v40  ;;  %7746 = vmatpush3.bf16.msra.mxu1 %v8212_v4  ;;  %v509_v18 = vld [vmem:[#allocation3 + $0x2c] sm:$0x1]  ;;  %v478_v56 = vsel %vm8423_vm5, 0, %v477_v6 }
 0x2e6   : > { %v7498_v34 = vpop.f32.mrb[137].mxu0  ;;  %7747 = vmatprep.subr.bf16.mxu1 %v8213_v46  ;;  %v510_v40 = vsel %vm9425_vm14, 0, %v509_v18  ;;  %479 = vst [vmem:[#allocation3 + $0x28] sm:$0x1] %v478_v56 }
 0x2e7   : > { %v3912_v45 = vadd.f32 %v6878_v23, %v3897_v44  ;;  %v7499_v48 = vadd.f32 %v7498_v34, %v7497_v20  ;;  %v7500_v59 = vpop.f32.mrb[138].mxu0  ;;  %v3919_v22 = vmax.f32 %v3911_v63, 0.0  ;;  %v486_v63 = vld [vmem:[#allocation3 + $0x40] sm:$0x1]  ;;  %v518_v44 = vld [vmem:[#allocation3 + $0x44] sm:$0x1] }
 0x2e8   : > { %v7501_v41 = vpop.f32.mrb[139].mxu0  ;;  %511 = vst [vmem:[#allocation3 + $0x2c] sm:$0x1] %v510_v40  ;;  %v487_v20 = vsel %vm8423_vm5, 0, %v486_v63  ;;  %v519_v34 = vsel %vm9425_vm14, 0, %v518_v44 }
 0x2e9   : > { %v3920_v28 = vmax.f32 %v3912_v45, 0.0  ;;  %v3880_v38 = vadd.f32 %v9387_v1, %v7499_v48  ;;  %v7502_v9 = vadd.f32 %v7501_v41, %v7500_v59  ;;  %7748 = vmatpush3.bf16.msra.mxu1 %v8213_v46  ;;  %v480_v45 = vld [vmem:[#allocation3 + $0x30] sm:$0x1]  ;;  %v512_v48 = vld [vmem:[#allocation3 + $0x34] sm:$0x1] }
 0x2ea   : > { %7749 = vmatprep.subr.bf16.mxu1 %v8214_v60  ;;  %488 = vst [vmem:[#allocation3 + $0x40] sm:$0x1] %v487_v20  ;;  %520 = vst [vmem:[#allocation3 + $0x44] sm:$0x1] %v519_v34  ;;  %v481_v59 = vsel %vm8423_vm5, 0, %v480_v45  ;;  %v513_v41 = vsel %vm9425_vm14, 0, %v512_v48 }
 0x2eb   : > { %v3926_v33 = vpack.c.bf16 %v3920_v28, %v3919_v22  ;;  %v3898_v36 = vadd.f32 %v3880_v38, %v3183_v17  ;;  %v3883_v2 = vadd.f32 %v9389_v11, %v7502_v9  ;;  %v8215_v22 = vld [vmem:[%s10057_s7 + $0x60] sm:$0xff]   ;;  %v8216_v28 = vld [vmem:[%s10057_s7 + $0x68] sm:$0xff]   ;;  %482 = vst [vmem:[#allocation3 + $0x30] sm:$0x1] %v481_v59  ;;  %514 = vst [vmem:[#allocation3 + $0x34] sm:$0x1] %v513_v41 }
 0x2ec   : > { %v462_v38 = vld [vmem:[#allocation3] sm:$0x1]  ;;  %v494_v9 = vld [vmem:[#allocation3 + $0x4] sm:$0x1]  ;;  %v4181_v46 = vld [vmem:[#allocation3 + $0xc] sm:$0x1] }
 0x2ed   : > { %v3899_v58 = vadd.f32 %v3883_v2, %v3184_v25  ;;  %v7503_v12 = vpop.f32.mrb[140].mxu0  ;;  %7736 = vmatmul.mubr.bf16.vlgmr.msra.gmra.mrb[144].mxu0 %v3926_v33  ;;  %v3913_v37 = vadd.f32 %v6878_v23, %v3898_v36  ;;  %7750 = vmatpush3.bf16.msra.mxu1 %v8214_v60  ;;  %v463_v33 = vsel %vm8423_vm5, 0, %v462_v38  ;;  %v495_v36 = vsel %vm9425_vm14, 0, %v494_v9  ;;  %v8217_v2 = vld [vmem:[%s10057_s7 + $0x70] sm:$0xff]  }
 0x2ee   : > { %v7504_v5 = vpop.f32.mrb[141].mxu0  ;;  %7751 = vmatprep.subr.bf16.mxu1 %v8215_v22  ;;  %464 = vst [vmem:[#allocation3] sm:$0x1] %v463_v33  ;;  %496 = vst [vmem:[#allocation3 + $0x4] sm:$0x1] %v495_v36 }
 0x2ef   : > { %v7505_v10 = vadd.f32 %v7504_v5, %v7503_v12  ;;  %v7506_v32 = vpop.f32.mrb[142].mxu0  ;;  %v3914_v51 = vadd.f32 %v6878_v23, %v3899_v58  ;;  %v3921_v47 = vmax.f32 %v3913_v37, 0.0  ;;  %v8218_v58 = vld [vmem:[%s10057_s7 + $0x78] sm:$0xff]   ;;  %v9511_v12 = vld [vmem:[%s10057_s7] sm:$0xff]   ;;  %v489_v37 = vld [vmem:[#allocation3 + $0x48] sm:$0x1] }
 0x2f0   : > { %v7507_v7 = vpop.f32.mrb[143].mxu0  ;;  %v521_v5 = vld [vmem:[#allocation3 + $0x4c] sm:$0x1]  ;;  %v4187_v33 = vld [vmem:[#allocation3 + $0x14] sm:$0x1] }
 0x2f1   : > { %v3888_v54 = vadd.f32 %v9391_v53, %v7505_v10  ;;  %v7508_v43 = vadd.f32 %v7507_v7, %v7506_v32  ;;  %v3922_v31 = vmax.f32 %v3914_v51, 0.0  ;;  %v466_v53 = vsel %vm8423_vm5, 0, %v465_v55  ;;  %7752 = vmatpush3.bf16.msra.mxu1 %v8215_v22  ;;  %v9521_v51 = vld [vmem:[%s10056_s6] ss:$0 sm:$0xff] }
 0x2f2   : > { %467 = vst [vmem:[#allocation3 + $0x8] sm:$0x1] %v466_v53  ;;  %7753 = vmatprep.subr.bf16.mxu1 %v8216_v28  ;;  %v490_v10 = vsel %vm8423_vm5, 0, %v489_v37  ;;  %v522_v32 = vsel %vm9425_vm14, 0, %v521_v5 }
 0x2f3   : > { %v3900_v1 = vadd.f32 %v3888_v54, %v3185_v30  ;;  %v3891_v21 = vadd.f32 %v9393_v26, %v7508_v43  ;;  %v3927_v17 = vpack.c.bf16 %v3922_v31, %v3921_v47  ;;  %v474_v30 = vld [vmem:[#allocation3 + $0x20] sm:$0x1]  ;;  %491 = vst [vmem:[#allocation3 + $0x48] sm:$0x1] %v490_v10  ;;  %523 = vst [vmem:[#allocation3 + $0x4c] sm:$0x1] %v522_v32 }
 0x2f4   : > { %v475_v26 = vsel %vm8423_vm5, 0, %v474_v30 }
 0x2f5   : > { %v3901_v24 = vadd.f32 %v3891_v21, %v3186_v39  ;;  %7739 = vmatprep.mubr.bf16.mxu0 %v3927_v17  ;;  %v3915_v11 = vadd.f32 %v6878_v23, %v3900_v1  ;;  %v507_v39 = vsel %vm9425_vm14, 0, %v506_v0  ;;  %476 = vst [vmem:[#allocation3 + $0x20] sm:$0x1] %v475_v26  ;;  %7754 = vmatpush3.bf16.msra.mxu1 %v8216_v28  ;;  %v9523_v7 = vld [vmem:[#allocation3] sm:$0xf] }
 0x2f6   : > { %508 = vst [vmem:[#allocation3 + $0x24] sm:$0x1] %v507_v39  ;;  %7755 = vmatprep.subr.bf16.mxu1 %v8217_v2  ;;  %v4259_v21 = vshrl.u32 %v9523_v7, 16  ;;  %v4262_v62 = vshll.u32 %v9523_v7, 16  ;;  %v4190_v26 = vld [vmem:[#allocation3 + $0x18] sm:$0xf] }
 0x2f7   : > { %v3916_v25 = vadd.f32 %v6878_v23, %v3901_v24  ;;  %v3923_v42 = vmax.f32 %v3915_v11, 0.0  ;;  %v468_v23 = vld [vmem:[#allocation3 + $0x10] sm:$0x1]  ;;  %v4193_v39 = vld [vmem:[#allocation3 + $0x1c] sm:$0x1] }
 0x2f8   : > { %v469_v15 = vsel %vm8423_vm5, 0, %v468_v23  ;;  %v4261_v53 = vrot.slane %v4259_v21, 4  ;;  %v4264_v49 = vrot.slane %v4262_v62, 5 }
 0x2f9   : > { %v3924_v3 = vmax.f32 %v3916_v25, 0.0  ;;  %470 = vst [vmem:[#allocation3 + $0x10] sm:$0x1] %v469_v15  ;;  %7756 = vmatpush3.bf16.msra.mxu1 %v8217_v2  ;;  %v9531_v15 = vld [vmem:[#allocation3 + $0x4] sm:$0x1] }
 0x2fa   : > { %7757 = vmatprep.subr.bf16.mxu1 %v8218_v58  ;;  %v4178_v4 = vld [vmem:[#allocation3 + $0x8] sm:$0xf]  ;;  %v4268_v13 = vshll.u32 %v9531_v15, 16  ;;  %v4265_v6 = vor.u32 %v4264_v49, %v4261_v53 }
 0x2fb   : > { %v3928_v27 = vpack.c.bf16 %v3924_v3, %v3923_v42 }
 0x2fc   : > { %v4196_v44 = vld [vmem:[#allocation3 + $0x20] sm:$0xf]  ;;  %v9552_v62 = vrot.slane %v4265_v6, 4  ;;  %v4205_v6 = vld [vmem:[#allocation3 + $0x2c] sm:$0x1] }
 0x2fd   : > { %7740 = vmatmul.mubr.bf16.gmra.mrb[148].mxu0 %v3928_v27  ;;  %7758 = vmatpush3.bf16.msra.mxu1 %v8218_v58  ;;  %v4199_v45 = vld [vmem:[#allocation3 + $0x24] sm:$0x1] }
 0x2fe   : > { %7767 = vmatprep.subr.bf16.mxu1 %v9511_v12 }
 0x300   : > { %v4184_v9 = vld [vmem:[#allocation3 + $0x10] sm:$0xf] }
 0x3c0   : > { %v7737_v54 = vpop.f32.mrb[144].mxu0 }
 0x3c1   : > { %v4043_v43 = vadd.f32 %v7737_v54, %v9521_v51  ;;  %v4034_v47 = vpop.f32.mrb[145].mxu0 }
 0x3c2   : > { %v4035_v31 = vadd.f32 %v9521_v51, %v4034_v47  ;;  %v7738_v1 = vpop.f32.mrb[146].mxu0 }
 0x3c3   : > { %v4067_v17 = vmax.f32 %v4043_v43, 0.0  ;;  %v4046_v24 = vadd.f32 %v7738_v1, %v9521_v51  ;;  %v4037_v11 = vpop.f32.mrb[147].mxu0 }
 0x3c4   : > { %v4065_v25 = vmax.f32 %v4035_v31, 0.0  ;;  %v4038_v42 = vadd.f32 %v9521_v51, %v4037_v11 }
 0x3c5   : > { %v7204_v3 = vpack.c.bf16 %v4067_v17, %v4067_v17  ;;  %v4068_v27 = vmax.f32 %v4046_v24, 0.0  ;;  %v9554_v17 = vrot.slane %v4268_v13, 5 }
 0x3c6   : > { %v7202_v55 = vpack.c.bf16 %v4065_v25, %v4065_v25  ;;  %v4066_v50 = vmax.f32 %v4038_v42, 0.0 }
 0x3c7   : > { %v4114_v30 = vshrl.u32 %v7204_v3, 16  ;;  %v7205_v0 = vpack.c.bf16 %v4068_v27, %v4068_v27  ;;  %v4117_v57 = vshll.u32 %v7204_v3, 16 }
 0x3c8   : > { %v4098_v23 = vshrl.u32 %v7202_v55, 16  ;;  %v7203_v29 = vpack.c.bf16 %v4066_v50, %v4066_v50  ;;  %v4101_v16 = vshll.u32 %v7202_v55, 16 }
 0x3c9   : > { %v4116_v61 = vrot.slane %v4114_v30, 7  ;;  %v4122_v8 = vshrl.u32 %v7205_v0, 16  ;;  %v4125_v63 = vshll.u32 %v7205_v0, 16  ;;  %v4271_v0 = vsel %vm8589_vm10, %v9552_v62, %v9554_v17 }
 0x3ca   : > { %v4100_v35 = vrot.slane %v4098_v23, 7  ;;  %v4106_v60 = vshrl.u32 %v7203_v29, 16  ;;  %v4109_v59 = vshll.u32 %v7203_v29, 16 }
 0x3cb   : > { %v4119_v18 = vor.u32 %v4117_v57, %v4116_v61  ;;  %v4120_v56 = vrot.slane %v4116_v61, 4  ;;  %v4124_v40 = vrot.slane %v4122_v8, 7  ;;  %v4214_v61 = vld [vmem:[#allocation3 + $0x38] sm:$0xf]  ;;  %v4217_v57 = vld [vmem:[#allocation3 + $0x3c] sm:$0x1] }
 0x3cc   : > { %v4103_v20 = vor.u32 %v4101_v16, %v4100_v35  ;;  %v4104_v34 = vrot.slane %v4100_v35, 4  ;;  %v4108_v48 = vrot.slane %v4106_v60, 7  ;;  %v4202_v60 = vld [vmem:[#allocation3 + $0x28] sm:$0xf] }
 0x3cd   : > { %v4191_v41 = vsel %vm8608_vm13, %v4119_v18, %v4190_v26  ;;  %v4194_v22 = vsel %vm8423_vm5, %v4120_v56, %v4193_v39  ;;  %v4127_v28 = vor.u32 %v4125_v63, %v4124_v40  ;;  %v4128_v38 = vrot.slane %v4124_v40, 4 }
 0x3ce   : > { %4192 = vst [vmem:[#allocation3 + $0x18] sm:$0xf] %v4191_v41  ;;  %4195 = vst [vmem:[#allocation3 + $0x1c] sm:$0x1] %v4194_v22  ;;  %v4179_v36 = vsel %vm8608_vm13, %v4103_v20, %v4178_v4  ;;  %v4182_v2 = vsel %vm8423_vm5, %v4104_v34, %v4181_v46  ;;  %v4111_v58 = vor.u32 %v4109_v59, %v4108_v48  ;;  %v4112_v37 = vrot.slane %v4108_v48, 4 }
 0x3cf   : > { %4180 = vst [vmem:[#allocation3 + $0x8] sm:$0xf] %v4179_v36  ;;  %4183 = vst [vmem:[#allocation3 + $0xc] sm:$0x1] %v4182_v2  ;;  %v4197_v5 = vsel %vm8608_vm13, %v4127_v28, %v4196_v44  ;;  %v4200_v10 = vsel %vm8423_vm5, %v4128_v38, %v4199_v45  ;;  %v4220_v44 = vld [vmem:[#allocation3 + $0x40] sm:$0xf] }
 0x3d0   : > { %4198 = vst [vmem:[#allocation3 + $0x20] sm:$0xf] %v4197_v5  ;;  %4201 = vst [vmem:[#allocation3 + $0x24] sm:$0x1] %v4200_v10  ;;  %v4185_v32 = vsel %vm8608_vm13, %v4111_v58, %v4184_v9  ;;  %v4188_v54 = vsel %vm8423_vm5, %v4112_v37, %v4187_v33  ;;  %v7741_v43 = vpop.f32.mrb[148].mxu0 }
 0x3d1   : > { %4186 = vst [vmem:[#allocation3 + $0x10] sm:$0xf] %v4185_v32  ;;  %4189 = vst [vmem:[#allocation3 + $0x14] sm:$0x1] %v4188_v54  ;;  %v4059_v47 = vadd.f32 %v7741_v43, %v9521_v51  ;;  %v4050_v31 = vpop.f32.mrb[149].mxu0 }
 0x3d2   : > { %v4051_v1 = vadd.f32 %v9521_v51, %v4050_v31  ;;  %v7742_v21 = vpop.f32.mrb[150].mxu0  ;;  %v4223_v22 = vld [vmem:[#allocation3 + $0x44] sm:$0x1]  ;;  %v4208_v36 = vld [vmem:[#allocation3 + $0x30] sm:$0xf] }
 0x3d3   : > { %v4071_v24 = vmax.f32 %v4059_v47, 0.0  ;;  %v4062_v11 = vadd.f32 %v7742_v21, %v9521_v51  ;;  %v4053_v25 = vpop.f32.mrb[151].mxu0  ;;  %v4211_v2 = vld [vmem:[#allocation3 + $0x34] sm:$0x1] }
 0x3d4   : > { %v4069_v42 = vmax.f32 %v4051_v1, 0.0  ;;  %v4054_v3 = vadd.f32 %v9521_v51, %v4053_v25 }
 0x3d5   : > { %v7208_v27 = vpack.c.bf16 %v4071_v24, %v4071_v24  ;;  %v4072_v55 = vmax.f32 %v4062_v11, 0.0  ;;  %v9558_v50 = vld [vmem:[#allocation3 + $0x18] sm:$0xf]  ;;  %v9578_v43 = vld [vmem:[#allocation3 + $0x1c] sm:$0x1] }
 0x3d6   : > { %v7206_v53 = vpack.c.bf16 %v4069_v42, %v4069_v42  ;;  %v4070_v49 = vmax.f32 %v4054_v3, 0.0  ;;  %v9560_v30 = vld [vmem:[#allocation3 + $0x8] sm:$0xf]  ;;  %v4301_v26 = vshrl.u32 %v9558_v50, 16  ;;  %v9568_v35 = vld [vmem:[#allocation3 + $0xc] sm:$0x1] }
 0x3d7   : > { %v4146_v39 = vshrl.u32 %v7208_v27, 16  ;;  %v4149_v23 = vshll.u32 %v7208_v27, 16  ;;  %v7209_v29 = vpack.c.bf16 %v4072_v55, %v4072_v55  ;;  %v4273_v51 = vshrl.u32 %v9560_v30, 16 }
 0x3d8   : > { %v4130_v4 = vshrl.u32 %v7206_v53, 16  ;;  %v4133_v8 = vshll.u32 %v7206_v53, 16  ;;  %v7207_v13 = vpack.c.bf16 %v4070_v49, %v4070_v49  ;;  %v4276_v16 = vshll.u32 %v9560_v30, 16  ;;  %v9576_v54 = vld [vmem:[#allocation3 + $0x10] sm:$0xf] }
 0x3d9   : > { %v4148_v46 = vrot.slane %v4146_v39, 7  ;;  %v4154_v18 = vshrl.u32 %v7209_v29, 16  ;;  %v4157_v56 = vshll.u32 %v7209_v29, 16  ;;  %v4275_v40 = vrot.slane %v4273_v51, 4  ;;  %v9584_v24 = vld [vmem:[#allocation3 + $0x14] sm:$0x1] }
 0x3da   : > { %v4132_v63 = vrot.slane %v4130_v4, 7  ;;  %v4138_v20 = vshrl.u32 %v7207_v13, 16  ;;  %v4141_v34 = vshll.u32 %v7207_v13, 16  ;;  %v4278_v45 = vrot.slane %v4276_v16, 5  ;;  %v9596_v39 = vld [vmem:[#allocation3 + $0x20] sm:$0xf] }
 0x3db   : > { %v4151_v48 = vor.u32 %v4149_v23, %v4148_v46  ;;  %v4152_v59 = vrot.slane %v4148_v46, 4  ;;  %v4156_v41 = vrot.slane %v4154_v18, 7  ;;  %v4282_v28 = vshll.u32 %v9568_v35, 16  ;;  %v9610_v13 = vld [vmem:[#allocation3 + $0x24] sm:$0x1] }
 0x3dc   : > { %v4135_v38 = vor.u32 %v4133_v8, %v4132_v63  ;;  %v4136_v9 = vrot.slane %v4132_v63, 4  ;;  %v4140_v33 = vrot.slane %v4138_v20, 7  ;;  %v4279_v58 = vor.u32 %v4278_v45, %v4275_v40 }
 0x3dd   : > { %v4215_v37 = vsel %vm8608_vm13, %v4151_v48, %v4214_v61  ;;  %v4218_v5 = vsel %vm8423_vm5, %v4152_v59, %v4217_v57  ;;  %v4159_v10 = vor.u32 %v4157_v56, %v4156_v41  ;;  %v4160_v32 = vrot.slane %v4156_v41, 4 }
 0x3de   : > { %4216 = vst [vmem:[#allocation3 + $0x38] sm:$0xf] %v4215_v37  ;;  %4219 = vst [vmem:[#allocation3 + $0x3c] sm:$0x1] %v4218_v5  ;;  %v4203_v47 = vsel %vm8608_vm13, %v4135_v38, %v4202_v60  ;;  %v4206_v31 = vsel %vm8423_vm5, %v4136_v9, %v4205_v6  ;;  %v4143_v1 = vor.u32 %v4141_v34, %v4140_v33  ;;  %v4144_v21 = vrot.slane %v4140_v33, 4 }
 0x3df   : > { %4204 = vst [vmem:[#allocation3 + $0x28] sm:$0xf] %v4203_v47  ;;  %4207 = vst [vmem:[#allocation3 + $0x2c] sm:$0x1] %v4206_v31  ;;  %v4221_v11 = vsel %vm8608_vm13, %v4159_v10, %v4220_v44  ;;  %v4224_v25 = vsel %vm8423_vm5, %v4160_v32, %v4223_v22  ;;  %v4280_v42 = vrot.slane %v4279_v58, 4  ;;  %v4284_v3 = vrot.slane %v4282_v28, 5 }
 0x3e0   : > { %4222 = vst [vmem:[#allocation3 + $0x40] sm:$0xf] %v4221_v11  ;;  %4225 = vst [vmem:[#allocation3 + $0x44] sm:$0x1] %v4224_v25  ;;  %v4209_v27 = vsel %vm8608_vm13, %v4143_v1, %v4208_v36  ;;  %v4212_v55 = vsel %vm8423_vm5, %v4144_v21, %v4211_v2  ;;  %v4287_v53 = vshrl.u32 %v9576_v54, 16  ;;  %v4290_v49 = vshll.u32 %v9576_v54, 16 }
 0x3e1   : > { %4210 = vst [vmem:[#allocation3 + $0x30] sm:$0xf] %v4209_v27  ;;  %4213 = vst [vmem:[#allocation3 + $0x34] sm:$0x1] %v4212_v55  ;;  %v4285_v23 = vsel %vm8589_vm10, %v4280_v42, %v4284_v3  ;;  %v4296_v29 = vshll.u32 %v9584_v24, 16  ;;  %v4303_v19 = vrot.slane %v4301_v26, 4 }
 0x3e2   : > { %v4304_v51 = vshll.u32 %v9558_v50, 16  ;;  %v6912_v14 = vcombine.low %v4271_v0, %v4285_v23  ;;  %v4289_v61 = vrot.slane %v4287_v53, 4  ;;  %v4292_v57 = vrot.slane %v4290_v49, 5  ;;  %v8220_v58 = vld [vmem:[%s10057_s7 + $0x8] sm:$0xff]   ;;  %v4655_v47 = vld [vmem:[#allocation3 + $0x10] sm:$0xe] }
 0x3e3   : > { %v4310_v4 = vshll.u32 %v9578_v43, 16  ;;  %v4315_v16 = vshrl.u32 %v9596_v39, 16  ;;  %v4318_v46 = vshll.u32 %v9596_v39, 16  ;;  %v4298_v60 = vrot.slane %v4296_v29, 5  ;;  %v4656_v27 = vld [vmem:[#allocation3 + $0x18] sm:$0xe] }
 0x3e4   : > { %v4306_v8 = vrot.slane %v4304_v51, 5  ;;  %7759 = vmatprep.mubr.bf16.mxu1 %v6912_v14  ;;  %v4293_v26 = vor.u32 %v4292_v57, %v4289_v61  ;;  %v4324_v44 = vshll.u32 %v9610_v13, 16  ;;  %v8221_v49 = vld [vmem:[%s10057_s7 + $0x10] sm:$0xff]   ;;  %v4690_v61 = vrot.slane %v9584_v24, 5  ;;  %v8222_v24 = vld [vmem:[%s10057_s7 + $0x18] sm:$0xff]  }
 0x3e5   : > { %v4312_v18 = vrot.slane %v4310_v4, 5  ;;  %v4317_v56 = vrot.slane %v4315_v16, 4  ;;  %v4320_v40 = vrot.slane %v4318_v46, 5  ;;  %v9614_v62 = vld [vmem:[#allocation3 + $0x38] sm:$0xf]  ;;  %v6939_v57 = vrot.slane %v4656_v27, 9 }
 0x3e6   : > { %v4307_v6 = vor.u32 %v4306_v8, %v4303_v19  ;;  %v4294_v17 = vrot.slane %v4293_v26, 4  ;;  %v9616_v0 = vld [vmem:[#allocation3 + $0x28] sm:$0xf]  ;;  %v9618_v63 = vld [vmem:[#allocation3 + $0x2c] sm:$0x1]  ;;  %v4357_v28 = vshrl.u32 %v9614_v62, 16 }
 0x3e7   : > { %v4321_v34 = vor.u32 %v4320_v40, %v4317_v56  ;;  %v4329_v45 = vshrl.u32 %v9616_v0, 16  ;;  %v4332_v48 = vshll.u32 %v9616_v0, 16  ;;  %v4338_v36 = vshll.u32 %v9618_v63, 16  ;;  %v9636_v5 = vld [vmem:[#allocation3 + $0x3c] sm:$0x1] }
 0x3e8   : > { %v4308_v20 = vrot.slane %v4307_v6, 4  ;;  %v4299_v59 = vsel %vm8589_vm10, %v4294_v17, %v4298_v60  ;;  %v9625_v41 = vld [vmem:[#allocation3 + $0x30] sm:$0xf]  ;;  %v9627_v22 = vld [vmem:[#allocation3 + $0x34] sm:$0x1]  ;;  %v4326_v31 = vrot.slane %v4324_v44, 5 }
 0x3e9   : > { %v4331_v9 = vrot.slane %v4329_v45, 4  ;;  %v4334_v33 = vrot.slane %v4332_v48, 5  ;;  %v4322_v37 = vrot.slane %v4321_v34, 4  ;;  %v4343_v10 = vshrl.u32 %v9625_v41, 16  ;;  %v8223_v34 = vld [vmem:[%s10057_s7 + $0x20] sm:$0xff]   ;;  %v8225_v48 = vld [vmem:[%s10057_s7 + $0x28] sm:$0xff]  }
 0x3ea   : > { %v4313_v38 = vsel %vm8589_vm10, %v4308_v20, %v4312_v18  ;;  %v4346_v32 = vshll.u32 %v9625_v41, 16  ;;  %v4352_v21 = vshll.u32 %v9627_v22, 16  ;;  %v4359_v42 = vrot.slane %v4357_v28, 4  ;;  %v4653_v28 = vld [vmem:[#allocation3] sm:$0xe] }
 0x3eb   : > { %v6913_v2 = vcombine.low %v4299_v59, %v4313_v38  ;;  %v4335_v1 = vor.u32 %v4334_v33, %v4331_v9  ;;  %v4345_v11 = vrot.slane %v4343_v10, 4  ;;  %v4360_v3 = vshll.u32 %v9614_v62, 16  ;;  %v8226_v59 = vld [vmem:[%s10057_s7 + $0x30] sm:$0xff]   ;;  %v4654_v38 = vld [vmem:[#allocation3 + $0x8] sm:$0xe] }
 0x3ec   : > { %v4348_v25 = vrot.slane %v4346_v32, 5  ;;  %v4340_v53 = vrot.slane %v4338_v36, 5  ;;  %v4327_v23 = vsel %vm8589_vm10, %v4322_v37, %v4326_v31  ;;  %v4366_v51 = vshll.u32 %v9636_v5, 16  ;;  %v8231_v33 = vld [vmem:[%s10057_s7 + $0x88] sm:$0xff]   ;;  %v8235_v32 = vld [vmem:[%s10057_s7 + $0xa0] sm:$0xff]   ;;  %v8238_v31 = vld [vmem:[%s10057_s7 + $0xb8] sm:$0xff]  }
 0x3ed   : > { %7760 = vmatmul.mubr.bf16.vlgmr.msra.gmra.mrb[16].mxu1 %v6913_v2  ;;  %v4336_v55 = vrot.slane %v4335_v1, 4  ;;  %v4362_v19 = vrot.slane %v4360_v3, 5  ;;  %v4354_v16 = vrot.slane %v4352_v21, 5  ;;  %v4694_v6 = vrot.slane %v9578_v43, 5  ;;  %v4657_v1 = vld [vmem:[#allocation3 + $0x20] sm:$0xe] }
 0x3ee   : > { %7768 = vmatpush3.bf16.msra.mxu1 %v9511_v12  ;;  %v4349_v29 = vor.u32 %v4348_v25, %v4345_v11  ;;  %v6938_v12 = vrot.slane %v4655_v47, 9  ;;  %v4368_v40 = vrot.slane %v4366_v51, 5  ;;  %v6924_v45 = vcombine.low %v9523_v7, %v9560_v30  ;;  %v8227_v7 = vld [vmem:[%s10057_s7 + $0x38] sm:$0xff]   ;;  %v8229_v30 = vld [vmem:[%s10057_s7 + $0x80] sm:$0xff]   ;;  %v4658_v47 = vld [vmem:[#allocation3 + $0x28] sm:$0xe] }
 0x3ef   : > { %7769 = vmatprep.subr.bf16.mxu1 %v8220_v58  ;;  %v4341_v14 = vsel %vm8589_vm10, %v4336_v55, %v4340_v53  ;;  %v4363_v46 = vor.u32 %v4362_v19, %v4359_v42  ;;  %v9670_v17 = vsel %vm9654_vm1, %v6939_v57, %v4694_v6  ;;  %v6925_v9 = vcombine.low %v9576_v54, %v9558_v50  ;;  %v8233_v50 = vld [vmem:[%s10057_s7 + $0x90] sm:$0xff]   ;;  %v8239_v25 = vld [vmem:[%s10057_s7 + $0xc0] sm:$0xff]   ;;  %v8243_v57 = vld [vmem:[%s10057_s7 + $0xd8] sm:$0xff]  }
 0x3f0   : > { %v6914_v4 = vcombine.low %v4327_v23, %v4341_v14  ;;  %v4350_v8 = vrot.slane %v4349_v29, 4  ;;  %v9660_v60 = vsel %vm9654_vm1, %v6938_v12, %v4690_v61  ;;  %v6926_v36 = vcombine.low %v9596_v39, %v9616_v0  ;;  %v4659_v55 = vld [vmem:[#allocation3 + $0x30] sm:$0xe] }
 0x3f1   : > { %v4364_v56 = vrot.slane %v4363_v46, 4  ;;  %v6961_v43 = vcombine.low %v9660_v60, %v9670_v17  ;;  %v6936_v2 = vrot.slane %v4653_v28, 9  ;;  %v6937_v37 = vrot.slane %v4654_v38, 9  ;;  %v8241_v14 = vld [vmem:[%s10057_s7 + $0xd0] sm:$0xff]   ;;  %v5036_v60 = vld [vmem:[#allocation3 + $0x8] sm:$0xf] }
 0x3f2   : > { %7770 = vmatpush3.bf16.msra.mxu1 %v8220_v58  ;;  %7763 = vmatprep.mubr.bf16.mxu1 %v6914_v4  ;;  %v4355_v18 = vsel %vm8589_vm10, %v4350_v8, %v4354_v16  ;;  %v4682_v58 = vrot.slane %v9531_v15, 5  ;;  %v4686_v10 = vrot.slane %v9568_v35, 5  ;;  %v6927_v15 = vcombine.low %v9625_v41, %v9614_v62  ;;  %v8234_v35 = vld [vmem:[%s10057_s7 + $0x98] sm:$0xff]   ;;  %v8236_v62 = vld [vmem:[%s10057_s7 + $0xa8] sm:$0xff]   ;;  %v8237_v41 = vld [vmem:[%s10057_s7 + $0xb0] sm:$0xff]  }
 0x3f3   : > { %7771 = vmatprep.subr.bf16.mxu1 %v8221_v49  ;;  %v4369_v44 = vsel %vm8589_vm10, %v4364_v56, %v4368_v40  ;;  %v6941_v21 = vrot.slane %v4658_v47, 9  ;;  %v4702_v11 = vrot.slane %v9618_v63, 5  ;;  %v6940_v42 = vrot.slane %v4657_v1, 9  ;;  %v8240_v63 = vld [vmem:[%s10057_s7 + $0xc8] sm:$0xff]   ;;  %v5038_v16 = vld [vmem:[#allocation3 + $0x10] sm:$0xf] }
 0x3f4   : > { %v6915_v20 = vcombine.low %v4355_v18, %v4369_v44  ;;  %v4683_v54 = vsel %vm9654_vm1, %v6936_v2, %v4682_v58  ;;  %v4687_v39 = vsel %vm9654_vm1, %v6937_v37, %v4686_v10  ;;  %v4698_v3 = vrot.slane %v9610_v13, 5  ;;  %v8242_v4 = vld [vmem:[#allocation3 + $0x8] ss:$8 sps:$4 sm:$0xff]   ;;  %v8247_v18 = vld [vmem:[%s10057_s7 + $0xf8] sm:$0xff]  }
 0x3f5   : > { %v6960_v0 = vcombine.low %v4683_v54, %v4687_v39  ;;  %v4703_v27 = vsel %vm9654_vm1, %v6941_v21, %v4702_v11  ;;  %v6942_v29 = vrot.slane %v4659_v55, 9  ;;  %v4706_v19 = vrot.slane %v9627_v22, 5  ;;  %v8245_v8 = vld [vmem:[%s10057_s7 + $0xe8] sm:$0xff]   ;;  %v8246_v46 = vld [vmem:[%s10057_s7 + $0xf0] sm:$0xff]   ;;  %v8252_v54 = vld [vmem:[#allocation3 + $0x38] ss:$8 sps:$4 sm:$0xff]  }
 0x3f6   : > { %7772 = vmatpush3.bf16.msra.mxu1 %v8221_v49  ;;  %v4699_v53 = vsel %vm9654_vm1, %v6940_v42, %v4698_v3  ;;  %v4660_v49 = vld [vmem:[#allocation3 + $0x38] sm:$0xe]  ;;  %v4710_v51 = vrot.slane %v9636_v5, 5  ;;  %v8244_v5 = vld [vmem:[%s10057_s7 + $0xe0] sm:$0xff]   ;;  %v5067_v6 = vshrl.u32 %v5038_v16, 16  ;;  %v5053_v56 = vshrl.u32 %v5036_v60, 16 }
 0x3f7   : > { %7773 = vmatprep.subr.bf16.mxu1 %v8222_v24  ;;  %7764 = vmatmul.mubr.bf16.gmra.mrb[20].mxu1 %v6915_v20  ;;  %v6962_v23 = vcombine.low %v4699_v53, %v4703_v27  ;;  %v6943_v13 = vrot.slane %v4660_v49, 9  ;;  %v4707_v12 = vsel %vm9654_vm1, %v6942_v29, %v4706_v19  ;;  %v5056_v40 = vshll.u32 %v5036_v60, 16  ;;  %v8253_v2 = vld [vmem:[%s10057_s7 + $0x110] sm:$0xff]   ;;  %v5044_v1 = vld [vmem:[#allocation3 + $0x28] sm:$0xf] }
 0x3f8   : > { %7783 = vmatprep.mubr.bf16.mxu1 %v6924_v45  ;;  %v5069_v17 = vrot.slane %v5067_v6, 4  ;;  %v5055_v20 = vrot.slane %v5053_v56, 4  ;;  %v9768_v45 = vld [vmem:[#allocation3 + $0x14] sm:$0x1]  ;;  %v8256_v3 = vld [vmem:[%s10057_s7 + $0x128] sm:$0xff]   ;;  %v5109_v27 = vshrl.u32 %v5044_v1, 16 }
 0x3f9   : > { %v4711_v22 = vsel %vm9654_vm1, %v6943_v13, %v4710_v51  ;;  %v5076_v38 = vshll.u32 %v9768_v45, 16  ;;  %v5112_v55 = vshll.u32 %v5044_v1, 16  ;;  %v5050_v29 = vld [vmem:[#allocation3 + $0x40] sm:$0xf]  ;;  %v8257_v19 = vld [vmem:[%s10057_s7 + $0x130] sm:$0xff]   ;;  %v8260_v1 = vld [vmem:[%s10057_s7 + $0x148] sm:$0xff]  }
 0x3fa   : > { %7774 = vmatpush3.bf16.msra.mxu1 %v8222_v24  ;;  %v6963_v61 = vcombine.low %v4707_v12, %v4711_v22  ;;  %v5070_v24 = vshll.u32 %v5038_v16, 16  ;;  %v5111_v12 = vrot.slane %v5109_v27, 4  ;;  %v9800_v16 = vld [vmem:[#allocation3 + $0x1c] sm:$0x1]  ;;  %v5348_v27 = vrot.slane %v9768_v45, 5 }
 0x3fb   : > { %7775 = vmatprep.subr.bf16.mxu1 %v8223_v34  ;;  %v5078_v37 = vrot.slane %v5076_v38, 5  ;;  %v5114_v22 = vrot.slane %v5112_v55, 5 }
 0x3fc   : > { %v5072_v44 = vrot.slane %v5070_v24, 5  ;;  %v9803_v24 = vld [vmem:[#allocation3 + $0x2c] sm:$0x1] }
 0x3fe   : > { %7776 = vmatpush3.bf16.msra.mxu1 %v8223_v34  ;;  %v5058_v34 = vrot.slane %v5056_v40, 5  ;;  %v8258_v40 = vld [vmem:[%s10057_s7 + $0x138] sm:$0xff]  }
 0x3ff   : > { %7777 = vmatprep.subr.bf16.mxu1 %v8225_v48 }
 0x400   : > { %v5059_v28 = vor.u32 %v5058_v34, %v5055_v20 }
 0x402   : > { %7778 = vmatpush3.bf16.msra.mxu1 %v8225_v48  ;;  %v5073_v48 = vor.u32 %v5072_v44, %v5069_v17  ;;  %v5060_v58 = vrot.slane %v5059_v28, 4  ;;  %v5115_v17 = vor.u32 %v5114_v22, %v5111_v12 }
 0x403   : > { %7779 = vmatprep.subr.bf16.mxu1 %v8226_v59 }
 0x406   : > { %7780 = vmatpush3.bf16.msra.mxu1 %v8226_v59  ;;  %v9770_v59 = vld [vmem:[#allocation3 + $0xc] sm:$0x1] }
 0x407   : > { %7781 = vmatprep.subr.bf16.mxu1 %v8227_v7 }
 0x40a   : > { %7782 = vmatpush3.bf16.msra.mxu1 %v8227_v7  ;;  %v8248_v7 = vld [vmem:[#allocation3 + $0x18] ss:$8 sps:$4 sm:$0xff]  }
 0x40b   : > { %7791 = vmatprep.subr.bf16.mxu1 %v8229_v30 }
 0x40d   : > { %7784 = vmatmul.mubr.bf16.vlgmr.msra.gmra.mrb[16].mxu1 %v6925_v9  ;;  %v8250_v9 = vld [vmem:[#allocation3 + $0x28] ss:$8 sps:$4 sm:$0xff]  }
 0x40e   : > { %7787 = vmatprep.mubr.bf16.mxu1 %v6926_v36  ;;  %7792 = vmatpush3.bf16.msra.mxu1 %v8229_v30  ;;  %v8251_v30 = vld [vmem:[%s10057_s7 + $0x108] sm:$0xff]   ;;  %v5074_v36 = vrot.slane %v5073_v48, 4 }
 0x40f   : > { %7793 = vmatprep.subr.bf16.mxu1 %v8231_v33 }
 0x412   : > { %7794 = vmatpush3.bf16.msra.mxu1 %v8231_v33  ;;  %v5062_v33 = vshll.u32 %v9770_v59, 16 }
 0x413   : > { %7795 = vmatprep.subr.bf16.mxu1 %v8233_v50 }
 0x414   : > { %v5064_v10 = vrot.slane %v5062_v33, 5 }
 0x415   : > { %7788 = vmatmul.mubr.bf16.gmra.mrb[20].mxu1 %v6927_v15  ;;  %v8254_v15 = vld [vmem:[%s10057_s7 + $0x118] sm:$0xff]  }
 0x416   : > { %7796 = vmatpush3.bf16.msra.mxu1 %v8233_v50  ;;  %7807 = vmatprep.mubr.bf16.mxu1 %v6960_v0  ;;  %v5079_v50 = vsel %vm8589_vm10, %v5074_v36, %v5078_v37  ;;  %v5065_v39 = vsel %vm8589_vm10, %v5060_v58, %v5064_v10  ;;  %v5042_v0 = vld [vmem:[#allocation3 + $0x20] sm:$0xf]  ;;  %v9814_v37 = vld [vmem:[#allocation3 + $0x44] sm:$0x1] }
 0x417   : > { %7797 = vmatprep.subr.bf16.mxu1 %v8234_v35  ;;  %v5095_v47 = vshrl.u32 %v5042_v0, 16  ;;  %v8259_v36 = vld [vmem:[%s10057_s7 + $0x140] sm:$0xff]  }
 0x419   : > { %v5097_v53 = vrot.slane %v5095_v47, 4 }
 0x41a   : > { %7798 = vmatpush3.bf16.msra.mxu1 %v8234_v35  ;;  %v7016_v35 = vcombine.low %v5065_v39, %v5079_v50 }
 0x41b   : > { %7799 = vmatprep.subr.bf16.mxu1 %v8235_v32 }
 0x41e   : > { %7800 = vmatpush3.bf16.msra.mxu1 %v8235_v32  ;;  %v5046_v32 = vld [vmem:[#allocation3 + $0x30] sm:$0xf] }
 0x41f   : > { %7801 = vmatprep.subr.bf16.mxu1 %v8236_v62  ;;  %v5123_v21 = vshrl.u32 %v5046_v32, 16  ;;  %v5126_v11 = vshll.u32 %v5046_v32, 16 }
 0x421   : > { %v5125_v49 = vrot.slane %v5123_v21, 4 }
 0x422   : > { %7802 = vmatpush3.bf16.msra.mxu1 %v8236_v62  ;;  %v8255_v62 = vld [vmem:[%s10057_s7 + $0x120] sm:$0xff]  }
 0x423   : > { %7803 = vmatprep.subr.bf16.mxu1 %v8237_v41 }
 0x426   : > { %7804 = vmatpush3.bf16.msra.mxu1 %v8237_v41  ;;  %v5040_v41 = vld [vmem:[#allocation3 + $0x18] sm:$0xf] }
 0x427   : > { %7805 = vmatprep.subr.bf16.mxu1 %v8238_v31  ;;  %v5084_v42 = vshll.u32 %v5040_v41, 16 }
 0x429   : > { %v5086_v51 = vrot.slane %v5084_v42, 5  ;;  %v5318_v42 = vld [vmem:[#allocation3 + $0x8] sm:$0xe] }
 0x42a   : > { %7806 = vmatpush3.bf16.msra.mxu1 %v8238_v31  ;;  %v5098_v31 = vshll.u32 %v5042_v0, 16 }
 0x42b   : > { %7815 = vmatprep.subr.bf16.mxu1 %v8239_v25 }
 0x42d   : > { %7808 = vmatmul.mubr.bf16.vlgmr.msra.gmra.mrb[16].mxu1 %v6961_v43  ;;  %v8249_v43 = vld [vmem:[%s10057_s7 + $0x100] sm:$0xff]  }
 0x42e   : > { %7811 = vmatprep.mubr.bf16.mxu1 %v6962_v23  ;;  %7816 = vmatpush3.bf16.msra.mxu1 %v8239_v25  ;;  %v5081_v25 = vshrl.u32 %v5040_v41, 16  ;;  %v5128_v23 = vrot.slane %v5126_v11, 5  ;;  %v5319_v41 = vld [vmem:[#allocation3 + $0x10] sm:$0xe] }
 0x42f   : > { %7817 = vmatprep.subr.bf16.mxu1 %v8240_v63 }
 0x430   : > { %v5083_v13 = vrot.slane %v5081_v25, 4 }
 0x432   : > { %7818 = vmatpush3.bf16.msra.mxu1 %v8240_v63  ;;  %v5100_v63 = vrot.slane %v5098_v31, 5  ;;  %v5087_v60 = vor.u32 %v5086_v51, %v5083_v13 }
 0x433   : > { %7819 = vmatprep.subr.bf16.mxu1 %v8241_v14 }
 0x434   : > { %v5088_v28 = vrot.slane %v5087_v60, 4  ;;  %v8298_v60 = vld [vmem:[%s10059_s9 + $0x18] sm:$0xff]  }
 0x435   : > { %7812 = vmatmul.mubr.bf16.gmra.mrb[20].mxu1 %v6963_v61  ;;  %v5048_v61 = vld [vmem:[#allocation3 + $0x38] sm:$0xf] }
 0x436   : > { %7820 = vmatpush3.bf16.msra.mxu1 %v8241_v14  ;;  %7831 = vmatprep.mubr.bf16.mxu1 %v8242_v4  ;;  %v9796_v14 = vld [vmem:[#allocation3 + $0x24] sm:$0x1]  ;;  %v9798_v4 = vld [vmem:[#allocation3 + $0x34] sm:$0x1]  ;;  %v5140_v56 = vshll.u32 %v5048_v61, 16 }
 0x437   : > { %7821 = vmatprep.subr.bf16.mxu1 %v8243_v57  ;;  %v5104_v6 = vshll.u32 %v9796_v14, 16  ;;  %v5132_v44 = vshll.u32 %v9798_v4, 16 }
 0x438   : > { %v5142_v33 = vrot.slane %v5140_v56, 5  ;;  %v8299_v56 = vld [vmem:[%s10059_s9 + $0x20] sm:$0xff]  }
 0x439   : > { %v5106_v38 = vrot.slane %v5104_v6, 5  ;;  %v5134_v58 = vrot.slane %v5132_v44, 5  ;;  %v8265_v6 = vld [vmem:[%s10057_s7 + $0x170] sm:$0xff]   ;;  %v5320_v44 = vld [vmem:[#allocation3 + $0x18] sm:$0xe] }
 0x43a   : > { %7822 = vmatpush3.bf16.msra.mxu1 %v8243_v57  ;;  %v5101_v57 = vor.u32 %v5100_v63, %v5097_v53  ;;  %v8261_v63 = vld [vmem:[%s10057_s7 + $0x150] sm:$0xff]  }
 0x43b   : > { %7823 = vmatprep.subr.bf16.mxu1 %v8244_v5 }
 0x43c   : > { %v5102_v20 = vrot.slane %v5101_v57, 4  ;;  %v8296_v57 = vld [vmem:[%s10059_s9 + $0x8] sm:$0xff]  }
 0x43e   : > { %7824 = vmatpush3.bf16.msra.mxu1 %v8244_v5  ;;  %v5151_v5 = vshrl.u32 %v5050_v29, 16  ;;  %v5107_v50 = vsel %vm8589_vm10, %v5102_v20, %v5106_v38  ;;  %v5356_v20 = vrot.slane %v9796_v14, 5  ;;  %v5352_v38 = vrot.slane %v9800_v16, 5 }
 0x43f   : > { %7825 = vmatprep.subr.bf16.mxu1 %v8245_v8 }
 0x440   : > { %v5153_v34 = vrot.slane %v5151_v5, 4  ;;  %v8263_v5 = vld [vmem:[%s10057_s7 + $0x160] sm:$0xff]  }
 0x442   : > { %7826 = vmatpush3.bf16.msra.mxu1 %v8245_v8  ;;  %v5154_v8 = vshll.u32 %v5050_v29, 16 }
 0x443   : > { %7827 = vmatprep.subr.bf16.mxu1 %v8246_v46 }
 0x444   : > { %v5156_v48 = vrot.slane %v5154_v8, 5  ;;  %v8297_v8 = vld [vmem:[%s10059_s9 + $0x10] sm:$0xff]  }
 0x446   : > { %7828 = vmatpush3.bf16.msra.mxu1 %v8246_v46  ;;  %v5129_v46 = vor.u32 %v5128_v23, %v5125_v49  ;;  %v7028_v49 = vrot.slane %v5318_v42, 9  ;;  %v5344_v23 = vrot.slane %v9770_v59, 5  ;;  %v8262_v59 = vld [vmem:[%s10057_s7 + $0x158] sm:$0xff]  }
 0x447   : > { %7829 = vmatprep.subr.bf16.mxu1 %v8247_v18  ;;  %v5701_v42 = vld [vmem:[#allocation3 + $0x18] sm:$0xf] }
 0x448   : > { %v5345_v12 = vsel %vm9654_vm1, %v7028_v49, %v5344_v23 }
 0x44a   : > { %7830 = vmatpush3.bf16.msra.mxu1 %v8247_v18  ;;  %v5137_v18 = vshrl.u32 %v5048_v61, 16  ;;  %v8295_v61 = vld [vmem:[%s10059_s9] sm:$0xff]  }
 0x44b   : > { %7839 = vmatprep.subr.bf16.mxu1 %v8249_v43  ;;  %7959 = vmatprep.subr.bf16.mxu0 %v8295_v61 }
 0x44c   : > { %7960 = vmatpush3.bf16.msra.mxu0 %v8295_v61 }
 0x44d   : > { %7832 = vmatmul.mubr.bf16.vlgmr.msra.gmra.mrb[16].mxu1 %v8248_v7  ;;  %v5118_v7 = vshll.u32 %v9803_v24, 16  ;;  %7961 = vmatprep.subr.bf16.mxu0 %v8296_v57 }
 0x44e   : > { %7835 = vmatprep.mubr.bf16.mxu1 %v8250_v9  ;;  %7840 = vmatpush3.bf16.msra.mxu1 %v8249_v43  ;;  %v5090_v43 = vshll.u32 %v9800_v16, 16  ;;  %v5139_v9 = vrot.slane %v5137_v18, 4  ;;  %v5321_v18 = vld [vmem:[#allocation3 + $0x20] sm:$0xe] }
 0x44f   : > { %7841 = vmatprep.subr.bf16.mxu1 %v8251_v30  ;;  %v5120_v39 = vrot.slane %v5118_v7, 5  ;;  %v5364_v7 = vrot.slane %v9798_v4, 5 }
 0x450   : > { %v5092_v10 = vrot.slane %v5090_v43, 5  ;;  %v5143_v32 = vor.u32 %v5142_v33, %v5139_v9  ;;  %7962 = vmatpush3.bf16.msra.mxu0 %v8296_v57  ;;  %v7031_v43 = vrot.slane %v5321_v18, 9  ;;  %v8267_v9 = vld [vmem:[%s10057_s7 + $0x180] sm:$0xff]   ;;  %v5360_v33 = vrot.slane %v9803_v24, 5  ;;  %v8268_v24 = vld [vmem:[%s10057_s7 + $0x188] sm:$0xff]  }
 0x451   : > { %7963 = vmatprep.subr.bf16.mxu0 %v8297_v8 }
 0x452   : > { %7842 = vmatpush3.bf16.msra.mxu1 %v8251_v30  ;;  %v5130_v30 = vrot.slane %v5129_v46, 4  ;;  %v5093_v0 = vsel %vm8589_vm10, %v5088_v28, %v5092_v10  ;;  %v5144_v55 = vrot.slane %v5143_v32, 4  ;;  %v8264_v46 = vld [vmem:[%s10057_s7 + $0x168] sm:$0xff]   ;;  %v7030_v28 = vrot.slane %v5320_v44, 9 }
 0x453   : > { %7843 = vmatprep.subr.bf16.mxu1 %v8253_v2  ;;  %v7017_v47 = vcombine.low %v5093_v0, %v5107_v50  ;;  %v5357_v4 = vsel %vm9654_vm1, %v7031_v43, %v5356_v20  ;;  %v5324_v50 = vld [vmem:[#allocation3 + $0x38] sm:$0xe] }
 0x454   : > { %7964 = vmatpush3.bf16.msra.mxu0 %v8297_v8  ;;  %v5353_v16 = vsel %vm9654_vm1, %v7030_v28, %v5352_v38  ;;  %v7034_v0 = vrot.slane %v5324_v50, 9  ;;  %v8282_v43 = vld [vmem:[%s10057_s7 + $0x1d8] sm:$0xff]  }
 0x455   : > { %7836 = vmatmul.mubr.bf16.gmra.mrb[20].mxu1 %v8252_v54  ;;  %v5157_v54 = vor.u32 %v5156_v48, %v5153_v34  ;;  %7965 = vmatprep.subr.bf16.mxu0 %v8298_v60  ;;  %v5322_v34 = vld [vmem:[#allocation3 + $0x28] sm:$0xe] }
 0x456   : > { %7844 = vmatpush3.bf16.msra.mxu1 %v8253_v2  ;;  %7855 = vmatprep.mubr.bf16.mxu1 %v7016_v35  ;;  %v5116_v2 = vrot.slane %v5115_v17, 4  ;;  %v9820_v35 = vld [vmem:[#allocation3 + $0x3c] sm:$0x1]  ;;  %v7032_v14 = vrot.slane %v5322_v34, 9  ;;  %v5705_v34 = vld [vmem:[#allocation3 + $0x28] sm:$0xf] }
 0x457   : > { %7845 = vmatprep.subr.bf16.mxu1 %v8254_v15  ;;  %v5146_v11 = vshll.u32 %v9820_v35, 16  ;;  %v5158_v25 = vrot.slane %v5157_v54, 4  ;;  %v8266_v17 = vld [vmem:[%s10057_s7 + $0x178] sm:$0xff]   ;;  %v5368_v32 = vrot.slane %v9820_v35, 5  ;;  %v8272_v35 = vld [vmem:[%s10057_s7 + $0x1a0] sm:$0xff]   ;;  %v5758_v28 = vshrl.u32 %v5705_v34, 16 }
 0x458   : > { %v5121_v31 = vsel %vm8589_vm10, %v5116_v2, %v5120_v39  ;;  %7966 = vmatpush3.bf16.msra.mxu0 %v8298_v60  ;;  %v5325_v2 = vld [vmem:[#allocation3 + $0x40] sm:$0xe]  ;;  %v5361_v10 = vsel %vm9654_vm1, %v7032_v14, %v5360_v33  ;;  %v8281_v60 = vld [vmem:[%s10057_s7 + $0x1d0] sm:$0xff]   ;;  %v5761_v38 = vshll.u32 %v5705_v34, 16 }
 0x459   : > { %v5148_v29 = vrot.slane %v5146_v11, 5  ;;  %7967 = vmatprep.subr.bf16.mxu0 %v8299_v56  ;;  %v7035_v39 = vrot.slane %v5325_v2, 9  ;;  %v5699_v11 = vld [vmem:[#allocation3 + $0x10] sm:$0xf]  ;;  %v8284_v2 = vld [vmem:[%s10057_s7 + $0x1e8] sm:$0xff]  }
 0x45a   : > { %7846 = vmatpush3.bf16.msra.mxu1 %v8254_v15  ;;  %v5135_v15 = vsel %vm8589_vm10, %v5130_v30, %v5134_v58  ;;  %v8300_v30 = vld [vmem:[%s10059_s9 + $0x28] sm:$0xff]   ;;  %v7053_v58 = vcombine.low %v5353_v16, %v5357_v4  ;;  %v5763_v50 = vrot.slane %v5761_v38, 5 }
 0x45b   : > { %7847 = vmatprep.subr.bf16.mxu1 %v8255_v62  ;;  %v7018_v21 = vcombine.low %v5121_v31, %v5135_v15  ;;  %v5149_v45 = vsel %vm8589_vm10, %v5144_v55, %v5148_v29  ;;  %v5372_v15 = vrot.slane %v9814_v37, 5  ;;  %v8271_v31 = vld [vmem:[%s10057_s7 + $0x198] sm:$0xff]   ;;  %v8277_v29 = vld [vmem:[%s10057_s7 + $0x1c0] sm:$0xff]  }
 0x45c   : > { %7968 = vmatpush3.bf16.msra.mxu0 %v8299_v56  ;;  %v8275_v55 = vld [vmem:[%s10057_s7 + $0x1b8] sm:$0xff]  }
 0x45d   : > { %7969 = vmatprep.subr.bf16.mxu0 %v8300_v30 }
 0x45e   : > { %7848 = vmatpush3.bf16.msra.mxu1 %v8255_v62  ;;  %v5160_v62 = vshll.u32 %v9814_v37, 16 }
 0x45f   : > { %7849 = vmatprep.subr.bf16.mxu1 %v8256_v3 }
 0x460   : > { %v5162_v53 = vrot.slane %v5160_v62, 5  ;;  %7970 = vmatpush3.bf16.msra.mxu0 %v8300_v30  ;;  %v8269_v62 = vld [vmem:[%s10057_s7 + $0x190] sm:$0xff]   ;;  %v5703_v30 = vld [vmem:[#allocation3 + $0x20] sm:$0xf] }
 0x461   : > { %v5744_v4 = vshrl.u32 %v5703_v30, 16 }
 0x462   : > { %7850 = vmatpush3.bf16.msra.mxu1 %v8256_v3  ;;  %v7029_v3 = vrot.slane %v5319_v41, 9  ;;  %v5373_v41 = vsel %vm9654_vm1, %v7035_v39, %v5372_v15  ;;  %v5711_v15 = vld [vmem:[#allocation3 + $0x40] sm:$0xf] }
 0x463   : > { %7851 = vmatprep.subr.bf16.mxu1 %v8257_v19 }
 0x464   : > { %v5349_v13 = vsel %vm9654_vm1, %v7029_v3, %v5348_v27  ;;  %v5716_v3 = vshrl.u32 %v5699_v11, 16  ;;  %v5719_v27 = vshll.u32 %v5699_v11, 16  ;;  %v5800_v11 = vshrl.u32 %v5711_v15, 16 }
 0x465   : > { %v7052_v22 = vcombine.low %v5345_v12, %v5349_v13  ;;  %v9924_v12 = vld [vmem:[#allocation3 + $0x1c] sm:$0x1] }
 0x466   : > { %7852 = vmatpush3.bf16.msra.mxu1 %v8257_v19  ;;  %v5163_v19 = vsel %vm8589_vm10, %v5158_v25, %v5162_v53  ;;  %v8274_v25 = vld [vmem:[%s10057_s7 + $0x1b0] sm:$0xff]   ;;  %v5730_v53 = vshrl.u32 %v5701_v42, 16  ;;  %v5718_v49 = vrot.slane %v5716_v3, 4  ;;  %v5721_v23 = vrot.slane %v5719_v27, 5 }
 0x467   : > { %7853 = vmatprep.subr.bf16.mxu1 %v8258_v40  ;;  %v7019_v51 = vcombine.low %v5149_v45, %v5163_v19  ;;  %v9922_v45 = vld [vmem:[#allocation3 + $0x14] sm:$0x1] }
 0x468   : > { %v5732_v19 = vrot.slane %v5730_v53, 4  ;;  %v5725_v61 = vshll.u32 %v9922_v45, 16  ;;  %v9957_v53 = vld [vmem:[#allocation3 + $0x3c] sm:$0x1] }
 0x46a   : > { %7854 = vmatpush3.bf16.msra.mxu1 %v8258_v40  ;;  %v5323_v40 = vld [vmem:[#allocation3 + $0x30] sm:$0xe] }
 0x46b   : > { %7863 = vmatprep.subr.bf16.mxu1 %v8259_v36  ;;  %v7033_v48 = vrot.slane %v5323_v40, 9 }
 0x46d   : > { %7856 = vmatmul.mubr.bf16.vlgmr.msra.gmra.mrb[16].mxu1 %v7017_v47  ;;  %v5369_v47 = vsel %vm9654_vm1, %v7034_v0, %v5368_v32  ;;  %v5746_v0 = vrot.slane %v5744_v4, 4 }
 0x46e   : > { %7859 = vmatprep.mubr.bf16.mxu1 %v7018_v21  ;;  %7864 = vmatpush3.bf16.msra.mxu1 %v8259_v36  ;;  %v5365_v36 = vsel %vm9654_vm1, %v7033_v48, %v5364_v7  ;;  %v7055_v37 = vcombine.low %v5369_v47, %v5373_v41  ;;  %v8273_v21 = vld [vmem:[%s10057_s7 + $0x1a8] sm:$0xff]   ;;  %v5707_v48 = vld [vmem:[#allocation3 + $0x30] sm:$0xf]  ;;  %v8283_v7 = vld [vmem:[%s10057_s7 + $0x1e0] sm:$0xff]  }
 0x46f   : > { %7865 = vmatprep.subr.bf16.mxu1 %v8260_v1  ;;  %v7054_v54 = vcombine.low %v5361_v10, %v5365_v36  ;;  %v5772_v14 = vshrl.u32 %v5707_v48, 16  ;;  %v5775_v33 = vshll.u32 %v5707_v48, 16  ;;  %v5747_v36 = vshll.u32 %v5703_v30, 16  ;;  %v5713_v10 = vld [vmem:[#allocation3 + $0x48] sm:$0xf]  ;;  %v8285_v41 = vld [vmem:[%s10057_s7 + $0x1f0] sm:$0xff]  }
 0x470   : > { %v9950_v47 = vld [vmem:[#allocation3 + $0x2c] sm:$0x1] }
 0x471   : > { %v5777_v39 = vrot.slane %v5775_v33, 5  ;;  %v5749_v32 = vrot.slane %v5747_v36, 5 }
 0x472   : > { %7866 = vmatpush3.bf16.msra.mxu1 %v8260_v1  ;;  %v8270_v1 = vld [vmem:[#allocation3 + $0x10] ss:$8 sps:$4 sm:$0xff]  }
 0x473   : > { %7867 = vmatprep.subr.bf16.mxu1 %v8261_v63  ;;  %v5750_v27 = vor.u32 %v5749_v32, %v5746_v0 }
 0x475   : > { %7860 = vmatmul.mubr.bf16.gmra.mrb[20].mxu1 %v7019_v51  ;;  %v5722_v51 = vor.u32 %v5721_v23, %v5718_v49 }
 0x476   : > { %7868 = vmatpush3.bf16.msra.mxu1 %v8261_v63  ;;  %7879 = vmatprep.mubr.bf16.mxu1 %v7052_v22  ;;  %v5733_v63 = vshll.u32 %v5701_v42, 16  ;;  %v8279_v22 = vld [vmem:[%s10057_s7 + $0x1c8] sm:$0xff]   ;;  %v9954_v42 = vld [vmem:[#allocation3 + $0x24] sm:$0x1] }
 0x477   : > { %7869 = vmatprep.subr.bf16.mxu1 %v8262_v59  ;;  %v5723_v8 = vrot.slane %v5722_v51, 4 }
 0x478   : > { %v5735_v13 = vrot.slane %v5733_v63, 5  ;;  %v8286_v63 = vld [vmem:[%s10057_s7 + $0x1f8] sm:$0xff]  }
 0x47a   : > { %7870 = vmatpush3.bf16.msra.mxu1 %v8262_v59  ;;  %v8276_v59 = vld [vmem:[#allocation3 + $0x20] ss:$8 sps:$4 sm:$0xff]   ;;  %v5736_v57 = vor.u32 %v5735_v13, %v5732_v19  ;;  %v5753_v13 = vshll.u32 %v9954_v42, 16 }
 0x47b   : > { %7871 = vmatprep.subr.bf16.mxu1 %v8263_v5 }
 0x47c   : > { %v5737_v18 = vrot.slane %v5736_v57, 4  ;;  %v5795_v57 = vshll.u32 %v9957_v53, 16 }
 0x47e   : > { %7872 = vmatpush3.bf16.msra.mxu1 %v8263_v5  ;;  %v8278_v5 = vld [vmem:[#allocation3 + $0x30] ss:$8 sps:$4 sm:$0xff]   ;;  %v5797_v48 = vrot.slane %v5795_v57, 5 }
 0x47f   : > { %7873 = vmatprep.subr.bf16.mxu1 %v8264_v46 }
 0x482   : > { %7874 = vmatpush3.bf16.msra.mxu1 %v8264_v46  ;;  %v5739_v46 = vshll.u32 %v9924_v12, 16 }
 0x483   : > { %7875 = vmatprep.subr.bf16.mxu1 %v8265_v6 }
 0x484   : > { %v5741_v40 = vrot.slane %v5739_v46, 5  ;;  %v9965_v46 = vld [vmem:[#allocation3 + $0x4c] sm:$0x1] }
 0x486   : > { %7876 = vmatpush3.bf16.msra.mxu1 %v8265_v6  ;;  %v5727_v6 = vrot.slane %v5725_v61, 5  ;;  %v5742_v44 = vsel %vm8589_vm10, %v5737_v18, %v5741_v40 }
 0x487   : > { %7877 = vmatprep.subr.bf16.mxu1 %v8266_v17 }
 0x488   : > { %v5728_v56 = vsel %vm8589_vm10, %v5723_v8, %v5727_v6 }
 0x489   : > { %v7108_v20 = vcombine.low %v5728_v56, %v5742_v44  ;;  %v9970_v56 = vld [vmem:[#allocation3 + $0x44] sm:$0x1] }
 0x48a   : > { %7878 = vmatpush3.bf16.msra.mxu1 %v8266_v17  ;;  %v8280_v17 = vld [vmem:[#allocation3 + $0x40] ss:$8 sps:$4 sm:$0xff]   ;;  %v5809_v30 = vshll.u32 %v9970_v56, 16 }
 0x48b   : > { %7887 = vmatprep.subr.bf16.mxu1 %v8267_v9 }
 0x48d   : > { %7880 = vmatmul.mubr.bf16.vlgmr.msra.gmra.mrb[16].mxu1 %v7053_v58 }
 0x48e   : > { %7883 = vmatprep.mubr.bf16.mxu1 %v7054_v54  ;;  %7888 = vmatpush3.bf16.msra.mxu1 %v8267_v9  ;;  %v5709_v9 = vld [vmem:[#allocation3 + $0x38] sm:$0xf]  ;;  %v5774_v54 = vrot.slane %v5772_v14, 4  ;;  %v8288_v14 = vld [vmem:[%s10057_s7 + $0x208] sm:$0xff]  }
 0x48f   : > { %7889 = vmatprep.subr.bf16.mxu1 %v8268_v24  ;;  %v5786_v16 = vshrl.u32 %v5709_v9, 16  ;;  %v5789_v58 = vshll.u32 %v5709_v9, 16 }
 0x490   : > { %v5778_v3 = vor.u32 %v5777_v39, %v5774_v54  ;;  %v6011_v39 = vrot.slane %v9924_v12, 5 }
 0x492   : > { %7890 = vmatpush3.bf16.msra.mxu1 %v8268_v24  ;;  %v5760_v24 = vrot.slane %v5758_v28, 4  ;;  %v5779_v61 = vrot.slane %v5778_v3, 4  ;;  %v5981_v28 = vld [vmem:[#allocation3 + $0x10] sm:$0xe] }
 0x493   : > { %7891 = vmatprep.subr.bf16.mxu1 %v8269_v62 }
 0x495   : > { %7884 = vmatmul.mubr.bf16.gmra.mrb[20].mxu1 %v7055_v37  ;;  %v5788_v37 = vrot.slane %v5786_v16, 4  ;;  %v5982_v16 = vld [vmem:[#allocation3 + $0x18] sm:$0xe] }
 0x496   : > { %7892 = vmatpush3.bf16.msra.mxu1 %v8269_v62  ;;  %7903 = vmatprep.mubr.bf16.mxu1 %v8270_v1  ;;  %v5814_v62 = vshrl.u32 %v5713_v10, 16  ;;  %v5817_v1 = vshll.u32 %v5713_v10, 16  ;;  %v6007_v10 = vrot.slane %v9922_v45, 5  ;;  %v7121_v54 = vrot.slane %v5982_v16, 9 }
 0x497   : > { %7893 = vmatprep.subr.bf16.mxu1 %v8271_v31 }
 0x498   : > { %v5819_v19 = vrot.slane %v5817_v1, 5  ;;  %v5984_v1 = vld [vmem:[#allocation3 + $0x28] sm:$0xe] }
 0x499   : > { %v7123_v3 = vrot.slane %v5984_v1, 9 }
 0x49a   : > { %7894 = vmatpush3.bf16.msra.mxu1 %v8271_v31  ;;  %v5791_v31 = vrot.slane %v5789_v58, 5  ;;  %v7120_v58 = vrot.slane %v5981_v28, 9 }
 0x49b   : > { %7895 = vmatprep.subr.bf16.mxu1 %v8272_v35 }
 0x49c   : > { %v5792_v23 = vor.u32 %v5791_v31, %v5788_v37  ;;  %v6008_v45 = vsel %vm9654_vm1, %v7120_v58, %v6007_v10  ;;  %v8292_v37 = vld [vmem:[%s10057_s7 + $0x228] sm:$0xff]   ;;  %v8293_v31 = vld [vmem:[%s10057_s7 + $0x230] sm:$0xff]  }
 0x49e   : > { %7896 = vmatpush3.bf16.msra.mxu1 %v8272_v35  ;;  %v5764_v35 = vor.u32 %v5763_v50, %v5760_v24  ;;  %v5793_v18 = vrot.slane %v5792_v23, 4  ;;  %v5811_v24 = vrot.slane %v5809_v30, 5  ;;  %v8289_v50 = vld [vmem:[%s10057_s7 + $0x210] sm:$0xff]  }
 0x49f   : > { %7897 = vmatprep.subr.bf16.mxu1 %v8273_v21 }
 0x4a0   : > { %v5765_v51 = vrot.slane %v5764_v35, 4  ;;  %v5798_v9 = vsel %vm8589_vm10, %v5793_v18, %v5797_v48  ;;  %v5985_v35 = vld [vmem:[#allocation3 + $0x30] sm:$0xe] }
 0x4a2   : > { %7898 = vmatpush3.bf16.msra.mxu1 %v8273_v21  ;;  %v9952_v21 = vld [vmem:[#allocation3 + $0x34] sm:$0x1] }
 0x4a3   : > { %7899 = vmatprep.subr.bf16.mxu1 %v8274_v25  ;;  %v5781_v49 = vshll.u32 %v9952_v21, 16 }
 0x4a5   : > { %v5783_v6 = vrot.slane %v5781_v49, 5  ;;  %v6023_v49 = vrot.slane %v9952_v21, 5 }
 0x4a6   : > { %7900 = vmatpush3.bf16.msra.mxu1 %v8274_v25  ;;  %v5803_v25 = vshll.u32 %v5711_v15, 16 }
 0x4a7   : > { %7901 = vmatprep.subr.bf16.mxu1 %v8275_v55  ;;  %v5784_v34 = vsel %vm8589_vm10, %v5779_v61, %v5783_v6 }
 0x4a8   : > { %v7110_v33 = vcombine.low %v5784_v34, %v5798_v9 }
 0x4aa   : > { %7902 = vmatpush3.bf16.msra.mxu1 %v8275_v55  ;;  %v5767_v55 = vshll.u32 %v9950_v47, 16 }
 0x4ab   : > { %7911 = vmatprep.subr.bf16.mxu1 %v8277_v29 }
 0x4ac   : > { %v5769_v8 = vrot.slane %v5767_v55, 5  ;;  %v5986_v55 = vld [vmem:[#allocation3 + $0x38] sm:$0xe] }
 0x4ad   : > { %7904 = vmatmul.mubr.bf16.vlgmr.msra.gmra.mrb[16].mxu1 %v8276_v59  ;;  %v5802_v59 = vrot.slane %v5800_v11, 4  ;;  %v8294_v11 = vld [vmem:[%s10057_s7 + $0x238] sm:$0xff]  }
 0x4ae   : > { %7907 = vmatprep.mubr.bf16.mxu1 %v8278_v5  ;;  %7912 = vmatpush3.bf16.msra.mxu1 %v8277_v29  ;;  %v5816_v29 = vrot.slane %v5814_v62, 4  ;;  %v5751_v5 = vrot.slane %v5750_v27, 4  ;;  %v5770_v44 = vsel %vm8589_vm10, %v5765_v51, %v5769_v8  ;;  %v6012_v62 = vsel %vm9654_vm1, %v7121_v54, %v6011_v39 }
 0x4af   : > { %7913 = vmatprep.subr.bf16.mxu1 %v8279_v22  ;;  %v7144_v12 = vcombine.low %v6008_v45, %v6012_v62  ;;  %v6019_v27 = vrot.slane %v9950_v47, 5  ;;  %v5987_v47 = vld [vmem:[#allocation3 + $0x40] sm:$0xe] }
 0x4b0   : > { %v5820_v40 = vor.u32 %v5819_v19, %v5816_v29  ;;  %v6015_v29 = vrot.slane %v9954_v42, 5  ;;  %v7125_v19 = vrot.slane %v5986_v55, 9  ;;  %v7126_v8 = vrot.slane %v5987_v47, 9 }
 0x4b1   : > { %v6020_v51 = vsel %vm9654_vm1, %v7123_v3, %v6019_v27 }
 0x4b2   : > { %7914 = vmatpush3.bf16.msra.mxu1 %v8279_v22  ;;  %v5805_v22 = vrot.slane %v5803_v25, 5  ;;  %v5821_v36 = vrot.slane %v5820_v40, 4  ;;  %v5983_v25 = vld [vmem:[#allocation3 + $0x20] sm:$0xe] }
 0x4b3   : > { %7915 = vmatprep.subr.bf16.mxu1 %v8281_v60  ;;  %v7122_v23 = vrot.slane %v5983_v25, 9 }
 0x4b5   : > { %7908 = vmatmul.mubr.bf16.gmra.mrb[20].mxu1 %v8280_v17  ;;  %v5755_v17 = vrot.slane %v5753_v13, 5  ;;  %v6027_v13 = vrot.slane %v9957_v53, 5  ;;  %v6016_v21 = vsel %vm9654_vm1, %v7122_v23, %v6015_v29  ;;  %v6031_v53 = vrot.slane %v9970_v56, 5  ;;  %v8302_v56 = vld [vmem:[%s10059_s9 + $0x38] sm:$0xff]  }
 0x4b6   : > { %7916 = vmatpush3.bf16.msra.mxu1 %v8281_v60  ;;  %7927 = vmatprep.mubr.bf16.mxu1 %v7108_v20  ;;  %v8287_v60 = vld [vmem:[%s10057_s7 + $0x200] sm:$0xff]   ;;  %v5823_v20 = vshll.u32 %v9965_v46, 16  ;;  %v7145_v61 = vcombine.low %v6016_v21, %v6020_v51 }
 0x4b7   : > { %7917 = vmatprep.subr.bf16.mxu1 %v8282_v43  ;;  %v6028_v42 = vsel %vm9654_vm1, %v7125_v19, %v6027_v13  ;;  %v6032_v6 = vsel %vm9654_vm1, %v7126_v8, %v6031_v53 }
 0x4ba   : > { %7918 = vmatpush3.bf16.msra.mxu1 %v8282_v43  ;;  %v5806_v43 = vor.u32 %v5805_v22, %v5802_v59  ;;  %v5988_v59 = vld [vmem:[#allocation3 + $0x48] sm:$0xe] }
 0x4bb   : > { %7919 = vmatprep.subr.bf16.mxu1 %v8283_v7  ;;  %v7127_v57 = vrot.slane %v5988_v59, 9 }
 0x4bc   : > { %v5807_v4 = vrot.slane %v5806_v43, 4 }
 0x4be   : > { %7920 = vmatpush3.bf16.msra.mxu1 %v8283_v7  ;;  %v5756_v7 = vsel %vm8589_vm10, %v5751_v5, %v5755_v17  ;;  %v5812_v15 = vsel %vm8589_vm10, %v5807_v4, %v5811_v24  ;;  %v8301_v17 = vld [vmem:[%s10059_s9 + $0x30] sm:$0xff]  }
 0x4bf   : > { %7921 = vmatprep.subr.bf16.mxu1 %v8284_v2  ;;  %v7109_v38 = vcombine.low %v5756_v7, %v5770_v44  ;;  %7971 = vmatprep.subr.bf16.mxu0 %v8301_v17 }
 0x4c0   : > { %7972 = vmatpush3.bf16.msra.mxu0 %v8301_v17 }
 0x4c1   : > { %7973 = vmatprep.subr.bf16.mxu0 %v8302_v56 }
 0x4c2   : > { %7922 = vmatpush3.bf16.msra.mxu1 %v8284_v2  ;;  %v5825_v2 = vrot.slane %v5823_v20, 5 }
 0x4c3   : > { %7923 = vmatprep.subr.bf16.mxu1 %v8285_v41 }
 0x4c4   : > { %v5826_v0 = vsel %vm8589_vm10, %v5821_v36, %v5825_v2  ;;  %7974 = vmatpush3.bf16.msra.mxu0 %v8302_v56 }
 0x4c5   : > { %v7111_v32 = vcombine.low %v5812_v15, %v5826_v0 }
 0x4c6   : > { %7924 = vmatpush3.bf16.msra.mxu1 %v8285_v41  ;;  %v8290_v41 = vld [vmem:[%s10057_s7 + $0x218] sm:$0xff]  }
 0x4c7   : > { %7925 = vmatprep.subr.bf16.mxu1 %v8286_v63 }
 0x4ca   : > { %7926 = vmatpush3.bf16.msra.mxu1 %v8286_v63  ;;  %v7124_v63 = vrot.slane %v5985_v35, 9 }
 0x4cb   : > { %7935 = vmatprep.subr.bf16.mxu1 %v8287_v60 }
 0x4cc   : > { %v6024_v22 = vsel %vm9654_vm1, %v7124_v63, %v6023_v49 }
 0x4cd   : > { %7928 = vmatmul.mubr.bf16.vlgmr.msra.gmra.mrb[16].mxu1 %v7109_v38  ;;  %v7146_v5 = vcombine.low %v6024_v22, %v6028_v42 }
 0x4ce   : > { %7931 = vmatprep.mubr.bf16.mxu1 %v7110_v33  ;;  %7936 = vmatpush3.bf16.msra.mxu1 %v8287_v60  ;;  %v6035_v60 = vrot.slane %v9965_v46, 5  ;;  %v7156_v46 = vld [vmem:[%s10058_s8] ss:$0 sm:$0xff] }
 0x4cf   : > { %7937 = vmatprep.subr.bf16.mxu1 %v8288_v14 }
 0x4d0   : > { %v6036_v18 = vsel %vm9654_vm1, %v7127_v57, %v6035_v60 }
 0x4d1   : > { %v7147_v40 = vcombine.low %v6032_v6, %v6036_v18 }
 0x4d2   : > { %7938 = vmatpush3.bf16.msra.mxu1 %v8288_v14 }
 0x4d3   : > { %7939 = vmatprep.subr.bf16.mxu1 %v8289_v50 }
 0x4d5   : > { %7932 = vmatmul.mubr.bf16.gmra.mrb[20].mxu1 %v7111_v32 }
 0x4d6   : > { %7940 = vmatpush3.bf16.msra.mxu1 %v8289_v50  ;;  %7951 = vmatprep.mubr.bf16.mxu1 %v7144_v12 }
 0x4d7   : > { %7941 = vmatprep.subr.bf16.mxu1 %v8290_v41 }
 0x4da   : > { %7942 = vmatpush3.bf16.msra.mxu1 %v8290_v41  ;;  %v7157_v41 = vld [vmem:[%s10060_s10] ss:$0 sm:$0xff] }
 0x4db   : > { %7943 = vmatprep.subr.bf16.mxu1 %v8291_v52 }
 0x4de   : > { %7944 = vmatpush3.bf16.msra.mxu1 %v8291_v52 }
 0x4df   : > { %7945 = vmatprep.subr.bf16.mxu1 %v8292_v37 }
 0x4e2   : > { %7946 = vmatpush3.bf16.msra.mxu1 %v8292_v37 }
 0x4e3   : > { %7947 = vmatprep.subr.bf16.mxu1 %v8293_v31 }
 0x4e6   : > { %7948 = vmatpush3.bf16.msra.mxu1 %v8293_v31 }
 0x4e7   : > { %7949 = vmatprep.subr.bf16.mxu1 %v8294_v11 }
 0x4ea   : > { %7950 = vmatpush3.bf16.msra.mxu1 %v8294_v11 }
 0x4ed   : > { %7952 = vmatmul.mubr.bf16.vlgmr.msra.gmra.mrb[16].mxu1 %v7145_v61 }
 0x4ee   : > { %7955 = vmatprep.mubr.bf16.mxu1 %v7146_v5 }
 0x4f5   : > { %7956 = vmatmul.mubr.bf16.gmra.mrb[20].mxu1 %v7147_v40 }
 0x5c0   : > { %v7953_v26 = vpop.f32.mrb[16].mxu1 }
 0x5c1   : > { %v6200_v44 = vadd.f32 %v7953_v26, %v7156_v46  ;;  %v6152_v43 = vpop.f32.mrb[17].mxu1 }
 0x5c2   : > { %v6198_v20 = vadd.f32 %v7156_v46, %v6152_v43  ;;  %v7954_v34 = vpop.f32.mrb[18].mxu1 }
 0x5c3   : > { %v6201_v48 = vadd.f32 %v7954_v34, %v7156_v46  ;;  %v6155_v7 = vpop.f32.mrb[19].mxu1  ;;  %v6208_v28 = vmax.f32 %v6200_v44, 0.0 }
 0x5c4   : > { %v6199_v30 = vadd.f32 %v7156_v46, %v6155_v7  ;;  %v6206_v9 = vmax.f32 %v6198_v20, 0.0 }
 0x5c5   : > { %v6209_v38 = vmax.f32 %v6201_v48, 0.0 }
 0x5c6   : > { %v6207_v14 = vmax.f32 %v6199_v30, 0.0 }
 0x5c7   : > { %v6215_v33 = vpack.c.bf16 %v6209_v38, %v6208_v28 }
 0x5c8   : > { %v6214_v4 = vpack.c.bf16 %v6207_v14, %v6206_v9  ;;  %v7957_v36 = vpop.f32.mrb[20].mxu1 }
 0x5c9   : > { %v6204_v2 = vadd.f32 %v7957_v36, %v7156_v46  ;;  %v6168_v16 = vpop.f32.mrb[21].mxu1 }
 0x5ca   : > { %v6202_v58 = vadd.f32 %v7156_v46, %v6168_v16  ;;  %v7958_v10 = vpop.f32.mrb[22].mxu1  ;;  %7975 = vmatprep.mubr.bf16.mxu0 %v6214_v4 }
 0x5cb   : > { %v6205_v24 = vadd.f32 %v7958_v10, %v7156_v46  ;;  %v6171_v50 = vpop.f32.mrb[23].mxu1  ;;  %7976 = vmatmul.mubr.bf16.vlgmr.msra.gmra.mrb[152].mxu0 %v6215_v33  ;;  %v6212_v39 = vmax.f32 %v6204_v2, 0.0 }
 0x5cc   : > { %v6203_v54 = vadd.f32 %v7156_v46, %v6171_v50  ;;  %v6210_v0 = vmax.f32 %v6202_v58, 0.0 }
 0x5cd   : > { %v6213_v15 = vmax.f32 %v6205_v24, 0.0 }
 0x5ce   : > { %v6211_v45 = vmax.f32 %v6203_v54, 0.0 }
 0x5cf   : > { %v6217_v32 = vpack.c.bf16 %v6213_v15, %v6212_v39 }
 0x5d0   : > { %v6216_v62 = vpack.c.bf16 %v6211_v45, %v6210_v0 }
 0x5d2   : > { %7979 = vmatprep.mubr.bf16.mxu0 %v6216_v62 }
 0x5d3   : > { %7980 = vmatmul.mubr.bf16.gmra.mrb[156].mxu0 %v6217_v32 }
 0x69e   : > { %v7977_v12 = vpop.f32.mrb[152].mxu0 }
 0x69f   : > { %v6332_v52 = vadd.f32 %v7977_v12, %v7157_v41  ;;  %v6323_v37 = vpop.f32.mrb[153].mxu0 }
 0x6a0   : > { %v6324_v31 = vadd.f32 %v7157_v41, %v6323_v37  ;;  %v7978_v1 = vpop.f32.mrb[154].mxu0 }
 0x6a1   : > { %6356 = vst [vmem:[%s386_s13 + $0x10] sm:$0xff] %v6332_v52  ;;  %v6335_v35 = vadd.f32 %v7978_v1, %v7157_v41  ;;  %v6326_v11 = vpop.f32.mrb[155].mxu0 }
 0x6a2   : > { %6354 = vst [vmem:[%s386_s13] sm:$0xff] %v6324_v31  ;;  %v6327_v25 = vadd.f32 %v7157_v41, %v6326_v11 }
 0x6a3   : > { %6357 = vst [vmem:[%s386_s13 + $0x18] sm:$0xff] %v6335_v35 }
 0x6a4   : > { %6355 = vst [vmem:[%s386_s13 + $0x8] sm:$0xff] %v6327_v25 }
 0x6a6   : > { %v7981_v3 = vpop.f32.mrb[156].mxu0 }
 0x6a7   : > { %v6348_v27 = vadd.f32 %v7981_v3, %v7157_v41  ;;  %v6339_v55 = vpop.f32.mrb[157].mxu0 }
 0x6a8   : > { %v6340_v63 = vadd.f32 %v7157_v41, %v6339_v55  ;;  %v7982_v49 = vpop.f32.mrb[158].mxu0 }
 0x6a9   : > { %6360 = vst [vmem:[%s386_s13 + $0x30] sm:$0xff] %v6348_v27  ;;  %v6351_v23 = vadd.f32 %v7982_v49, %v7157_v41  ;;  %v6342_v29 = vpop.f32.mrb[159].mxu0 }
 0x6aa   : > { %6358 = vst [vmem:[%s386_s13 + $0x20] sm:$0xff] %v6340_v63  ;;  %v6343_v19 = vadd.f32 %v7157_v41, %v6342_v29 }
 0x6ab   : > { %6361 = vst [vmem:[%s386_s13 + $0x38] sm:$0xff] %v6351_v23 }
 0x6ac   : > { %6359 = vst [vmem:[%s386_s13 + $0x28] sm:$0xff] %v6343_v19 }
 0x6ad PF: > { %s21_s17 = sadd.s32 1, %s8311_s17  }
 0x6ae   : > { %p18_p4 = scmp.ge.s32.totalorder %s21_s17, 4  }
 0x6b0   :  { %20 = sbr.rel (!%p18_p4) target bundleno = 1 (0x1), region = 109 }

</bundles_post_ra>
